<compile_context>
chip_gen: v6e
topology: v6e:2x2x1
jax: 0.10.0
libtpu: 0.0.40
codegen_flags: <defaults>
</compile_context>

<pallas_src>
import functools
import math

import jax
import jax.numpy as jnp
from jax.experimental import pallas as pl
from jax.experimental.pallas import tpu as pltpu


# ----------------------------- in-kernel helpers ---------------------------- #

def _ln(x, g, b, eps):
    """f32 LayerNorm over last dim. x:[S,D], g/b:[1,D]."""
    mu = jnp.mean(x, axis=-1, keepdims=True)
    xc = x - mu
    var = jnp.mean(xc * xc, axis=-1, keepdims=True)
    return xc * jax.lax.rsqrt(var + eps) * g + b


_ERF_P, _ERF_A1, _ERF_A2 = 0.3275911, 0.254829592, -0.284496736
_ERF_A3, _ERF_A4, _ERF_A5 = 1.421413741, -1.453152027, 1.061405429


def _erf_f32(x):
    # Abramowitz & Stegun 7.1.26 (|err| < 1.5e-7): matches PyTorch exact-erf GELU
    # to f32 precision using only exp/abs/where.
    sign = jnp.where(x >= 0.0, 1.0, -1.0)
    ax = jnp.abs(x)
    t = 1.0 / (1.0 + _ERF_P * ax)
    poly = ((((_ERF_A5 * t + _ERF_A4) * t + _ERF_A3) * t + _ERF_A2) * t + _ERF_A1) * t
    return sign * (1.0 - poly * jnp.exp(-ax * ax))


def _gelu_exact(x):
    return 0.5 * x * (1.0 + _erf_f32(x * (1.0 / math.sqrt(2.0))))


def _mha_core(q, k, v, heads, causal):
    """Multi-head attention entirely inside the kernel.
    q:[Sq,D] f32, k/v:[Sk,D] f32 -> [Sq,D] f32 (heads packed in lane axis)."""
    Sq, D = q.shape
    Sk = k.shape[0]
    Dh = D // heads
    scale = 1.0 / math.sqrt(Dh)
    neg = float(jnp.finfo(jnp.float32).min)
    if causal:
        qi = jax.lax.broadcasted_iota(jnp.int32, (Sq, Sk), 0)
        ki = jax.lax.broadcasted_iota(jnp.int32, (Sq, Sk), 1)
        mask = ki <= qi
    outs = []
    for h in range(heads):                       # static unroll (heads is tiny)
        qh = q[:, h * Dh:(h + 1) * Dh].astype(jnp.bfloat16)
        kh = k[:, h * Dh:(h + 1) * Dh].astype(jnp.bfloat16)
        vh = v[:, h * Dh:(h + 1) * Dh].astype(jnp.bfloat16)
        s = jnp.einsum("qd,kd->qk", qh, kh,
                       preferred_element_type=jnp.float32) * scale
        if causal:
            s = jnp.where(mask, s, neg)
        m = jnp.max(s, axis=-1, keepdims=True)
        p = jnp.exp(s - m)                        # f32 softmax (v5e-safe)
        l = jnp.sum(p, axis=-1, keepdims=True)
        oh = jnp.dot(p.astype(jnp.bfloat16), vh,
                     preferred_element_type=jnp.float32)
        outs.append(oh * pl.reciprocal(l, approx=True))
    return jnp.concatenate(outs, axis=-1)


# ------------------------------ fused stack kernels -------------------------- #

def _enc_stack_kernel(x_ref,
                      ln1g_ref, ln1b_ref, wqkv_ref, bqkv_ref, wo_ref, bo_ref,
                      ln2g_ref, ln2b_ref, w1_ref, b1_ref, w2_ref, b2_ref,
                      lnfg_ref, lnfb_ref,
                      o_ref, x_sc, *, heads, eps):
    """One grid step = one (batch, layer) pair.  The activation for the current
    batch element lives in VMEM scratch `x_sc` and is carried across layers."""
    l = pl.program_id(1)

    @pl.when(l == 0)
    def _():
        x_sc[...] = x_ref[0].astype(jnp.float32)

    x = x_sc[...]
    D = x.shape[-1]

    # --- self-attention sub-block (pre-LN) ---
    h = _ln(x, ln1g_ref[0], ln1b_ref[0], eps)
    qkv = jnp.dot(h.astype(jnp.bfloat16), wqkv_ref[0],
                  preferred_element_type=jnp.float32) + bqkv_ref[0]
    attn = _mha_core(qkv[:, :D], qkv[:, D:2 * D], qkv[:, 2 * D:], heads,
                     causal=False)
    x = x + (jnp.dot(attn.astype(jnp.bfloat16), wo_ref[0],
                     preferred_element_type=jnp.float32) + bo_ref[0])

    # --- MLP sub-block (pre-LN, exact GELU) ---
    h = _ln(x, ln2g_ref[0], ln2b_ref[0], eps)
    h1 = _gelu_exact(jnp.dot(h.astype(jnp.bfloat16), w1_ref[0],
                             preferred_element_type=jnp.float32) + b1_ref[0])
    x = x + (jnp.dot(h1.astype(jnp.bfloat16), w2_ref[0],
                     preferred_element_type=jnp.float32) + b2_ref[0])

    x_sc[...] = x

    @pl.when(l == pl.num_programs(1) - 1)
    def _():
        # fused final encoder LayerNorm
        o_ref[0] = _ln(x, lnfg_ref[...], lnfb_ref[...], eps).astype(o_ref.dtype)


def _dec_stack_kernel(x_ref, enc_ref,
                      ln1g_ref, ln1b_ref, wqkv_ref, bqkv_ref, wo1_ref, bo1_ref,
                      ln2g_ref, ln2b_ref, wq_ref, bq_ref, wkv_ref, bkv_ref,
                      wo2_ref, bo2_ref,
                      ln3g_ref, ln3b_ref, w1_ref, b1_ref, w2_ref, b2_ref,
                      lnfg_ref, lnfb_ref, outw_ref, outb_ref,
                      o_ref, x_sc, *, heads, eps):
    l = pl.program_id(1)

    @pl.when(l == 0)
    def _():
        x_sc[...] = x_ref[0].astype(jnp.float32)

    x = x_sc[...]
    D = x.shape[-1]
    enc = enc_ref[0].astype(jnp.float32)

    # --- causal self-attention sub-block ---
    h = _ln(x, ln1g_ref[0], ln1b_ref[0], eps)
    qkv = jnp.dot(h.astype(jnp.bfloat16), wqkv_ref[0],
                  preferred_element_type=jnp.float32) + bqkv_ref[0]
    attn = _mha_core(qkv[:, :D], qkv[:, D:2 * D], qkv[:, 2 * D:], heads,
                     causal=True)
    x = x + (jnp.dot(attn.astype(jnp.bfloat16), wo1_ref[0],
                     preferred_element_type=jnp.float32) + bo1_ref[0])

    # --- cross-attention over encoder features ---
    h = _ln(x, ln2g_ref[0], ln2b_ref[0], eps)
    q = jnp.dot(h.astype(jnp.bfloat16), wq_ref[0],
                preferred_element_type=jnp.float32) + bq_ref[0]
    kv = jnp.dot(enc.astype(jnp.bfloat16), wkv_ref[0],
                 preferred_element_type=jnp.float32) + bkv_ref[0]     # fused K|V
    attn = _mha_core(q, kv[:, :D], kv[:, D:], heads, causal=False)
    x = x + (jnp.dot(attn.astype(jnp.bfloat16), wo2_ref[0],
                     preferred_element_type=jnp.float32) + bo2_ref[0])

    # --- MLP sub-block ---
    h = _ln(x, ln3g_ref[0], ln3b_ref[0], eps)
    h1 = _gelu_exact(jnp.dot(h.astype(jnp.bfloat16), w1_ref[0],
                             preferred_element_type=jnp.float32) + b1_ref[0])
    x = x + (jnp.dot(h1.astype(jnp.bfloat16), w2_ref[0],
                     preferred_element_type=jnp.float32) + b2_ref[0])

    x_sc[...] = x

    @pl.when(l == pl.num_programs(1) - 1)
    def _():
        # fused final LayerNorm + vocab projection -> logits
        hf = _ln(x, lnfg_ref[...], lnfb_ref[...], eps)
        o_ref[0] = (jnp.dot(hf.astype(jnp.bfloat16), outw_ref[...],
                            preferred_element_type=jnp.float32)
                    + outb_ref[...]).astype(o_ref.dtype)


def _linear_kernel(x_ref, w_ref, b_ref, o_ref):
    y = jnp.dot(x_ref[...].astype(jnp.bfloat16), w_ref[...],
                preferred_element_type=jnp.float32) + b_ref[...]
    o_ref[...] = y.astype(o_ref.dtype)


# ------------------------------ kernel wrappers ------------------------------ #

def _lspec(*shape):
    """Per-layer stacked param: array [L, *shape], block (1, *shape), index by layer."""
    zeros = (0,) * len(shape)
    return pl.BlockSpec((1,) + tuple(shape), lambda b, l, _z=zeros: (l,) + _z)


def _cspec(*shape):
    """Grid-invariant param (DMA'd once)."""
    zeros = (0,) * len(shape)
    return pl.BlockSpec(tuple(shape), lambda b, l, _z=zeros: _z)


def encoder_stack(x, stk, lnf_g, lnf_b, *, heads, eps=1e-5):
    B, S, D = x.shape
    L = stk["wqkv"].shape[0]
    F = stk["w1"].shape[2]
    xspec = pl.BlockSpec((1, S, D), lambda b, l: (b, 0, 0))
    ce = pl.CostEstimate(
        flops=B * L * (2 * S * D * 3 * D + 4 * S * S * D + 2 * S * D * D
                       + 4 * S * D * F),
        transcendentals=B * L * (heads * S * S + S * F),
        bytes_accessed=2 * B * S * D * 4 + L * (4 * D * D + 2 * D * F) * 2)
    return pl.pallas_call(
        functools.partial(_enc_stack_kernel, heads=heads, eps=eps),
        out_shape=jax.ShapeDtypeStruct((B, S, D), jnp.float32),
        grid=(B, L),
        in_specs=[
            xspec,
            _lspec(1, D), _lspec(1, D),                 # ln1 g/b
            _lspec(D, 3 * D), _lspec(1, 3 * D),         # wqkv / bqkv
            _lspec(D, D), _lspec(1, D),                 # wo / bo
            _lspec(1, D), _lspec(1, D),                 # ln2 g/b
            _lspec(D, F), _lspec(1, F),                 # w1 / b1
            _lspec(F, D), _lspec(1, D),                 # w2 / b2
            _cspec(1, D), _cspec(1, D),                 # final LN g/b
        ],
        out_specs=xspec,
        scratch_shapes=[pltpu.VMEM((S, D), jnp.float32)],
        compiler_params=pltpu.CompilerParams(
            dimension_semantics=("parallel", "arbitrary")),
        cost_estimate=ce,
    )(x,
      stk["ln1_g"], stk["ln1_b"], stk["wqkv"], stk["bqkv"], stk["wo"], stk["bo"],
      stk["ln2_g"], stk["ln2_b"], stk["w1"], stk["b1"], stk["w2"], stk["b2"],
      lnf_g.reshape(1, D), lnf_b.reshape(1, D))


def decoder_stack(x, enc, stk, lnf_g, lnf_b, out_w, out_b, *, heads, eps=1e-5):
    B, T, D = x.shape
    Se = enc.shape[1]
    V = out_w.shape[1]
    L = stk["wqkv"].shape[0]
    F = stk["w1"].shape[2]
    ce = pl.CostEstimate(
        flops=B * L * (2 * T * D * 3 * D + 4 * T * T * D + 2 * T * D * D
                       + 2 * T * D * D + 2 * Se * D * 2 * D + 4 * T * Se * D
                       + 2 * T * D * D + 4 * T * D * F) + B * 2 * T * D * V,
        transcendentals=B * L * (heads * T * T + heads * T * Se + T * F),
        bytes_accessed=(B * T * D * 4 + B * Se * D * 4 + B * T * V * 4
                        + L * (8 * D * D + 2 * D * F) * 2 + D * V * 2))
    return pl.pallas_call(
        functools.partial(_dec_stack_kernel, heads=heads, eps=eps),
        out_shape=jax.ShapeDtypeStruct((B, T, V), jnp.float32),
        grid=(B, L),
        in_specs=[
            pl.BlockSpec((1, T, D), lambda b, l: (b, 0, 0)),
            pl.BlockSpec((1, Se, D), lambda b, l: (b, 0, 0)),
            _lspec(1, D), _lspec(1, D),                 # ln1 g/b
            _lspec(D, 3 * D), _lspec(1, 3 * D),         # wqkv / bqkv
            _lspec(D, D), _lspec(1, D),                 # wo1 / bo1
            _lspec(1, D), _lspec(1, D),                 # ln2 g/b
            _lspec(D, D), _lspec(1, D),                 # wq / bq
            _lspec(D, 2 * D), _lspec(1, 2 * D),         # wkv / bkv
            _lspec(D, D), _lspec(1, D),                 # wo2 / bo2
            _lspec(1, D), _lspec(1, D),                 # ln3 g/b
            _lspec(D, F), _lspec(1, F),                 # w1 / b1
            _lspec(F, D), _lspec(1, D),                 # w2 / b2
            _cspec(1, D), _cspec(1, D),                 # final LN g/b
            _cspec(D, V), _cspec(1, V),                 # vocab projection
        ],
        out_specs=pl.BlockSpec((1, T, V), lambda b, l: (b, 0, 0)),
        scratch_shapes=[pltpu.VMEM((T, D), jnp.float32)],
        compiler_params=pltpu.CompilerParams(
            dimension_semantics=("parallel", "arbitrary")),
        cost_estimate=ce,
    )(x, enc,
      stk["ln1_g"], stk["ln1_b"], stk["wqkv"], stk["bqkv"], stk["wo1"], stk["bo1"],
      stk["ln2_g"], stk["ln2_b"], stk["wq"], stk["bq"], stk["wkv"], stk["bkv"],
      stk["wo2"], stk["bo2"],
      stk["ln3_g"], stk["ln3_b"], stk["w1"], stk["b1"], stk["w2"], stk["b2"],
      lnf_g.reshape(1, D), lnf_b.reshape(1, D), out_w, out_b.reshape(1, V))


def linear(x, w, b):
    M, K = x.shape
    N = w.shape[1]
    return pl.pallas_call(
        _linear_kernel,
        out_shape=jax.ShapeDtypeStruct((M, N), jnp.float32),
        grid=(1,),
        in_specs=[pl.BlockSpec((M, K), lambda i: (0, 0)),
                  pl.BlockSpec((K, N), lambda i: (0, 0)),
                  pl.BlockSpec((1, N), lambda i: (0, 0))],
        out_specs=pl.BlockSpec((M, N), lambda i: (0, 0)),
        compiler_params=pltpu.CompilerParams(
            dimension_semantics=("arbitrary",)),
    )(x, w, b.reshape(1, N))


# ----------------------------- model (thin glue) ----------------------------- #

def vit_encoder(images, p, cfg):
    B, C, Hi, Wi = images.shape
    ph = cfg["patch"]
    gh, gw = Hi // ph, Wi // ph
    n_patch = gh * gw
    D, H = cfg["hidden"], cfg["heads"]
    # Patchify (NCHW, non-overlapping ph x ph windows) == Conv2d(kernel=ph, stride=ph)
    patches = images.reshape(B, C, gh, ph, gw, ph)
    patches = patches.transpose(0, 2, 4, 1, 3, 5).reshape(B * n_patch, C * ph * ph)
    x = linear(patches, p["patch_w"], p["patch_b"]).reshape(B, n_patch, D)
    cls = jnp.broadcast_to(p["cls"], (B, 1, D))
    x = jnp.concatenate([cls, x], axis=1)                       # prepend [CLS]
    S = n_patch + 1
    x = x + p["pos"][:, :S, :]
    # whole encoder transformer stack + final LN in a single pallas_call
    return encoder_stack(x, p["stack"], p["ln_g"], p["ln_b"], heads=H)


def title_generator(enc_feats, tgt_title, p, cfg):
    B, Se, D = enc_feats.shape
    T = tgt_title.shape[1]
    tok = jnp.take(p["tok_embed"], tgt_title, axis=0)           # embedding gather (glue)
    x = tok + p["pos"][:, :T, :]
    # whole decoder stack + final LN + vocab projection in a single pallas_call
    return decoder_stack(x, enc_feats, p["stack"], p["ln_g"], p["ln_b"],
                         p["out_w"], p["out_b"], heads=cfg["heads"])


def vit_encoder_decoder_forward(images, tgt_title, params, cfg):
    """Mirrors ViTEncoderDecoder.forward: returns {'title': logits}."""
    enc_feats = vit_encoder(images, params["vit"], cfg)
    title_logits = title_generator(enc_feats, tgt_title, params["dec"], cfg)
    return {"title": title_logits}
    # TODO(synk): autoregressive generate() (argmax decoding loop) is inference-only
    # host-side control flow and is intentionally not ported; only forward() is covered.


# ----------------------------- parameter creation ---------------------------- #

def _init_params(key, cfg):
    D, V, F = cfg["hidden"], cfg["vocab"], cfg["mlp"]
    C, ph = cfg["channels"], cfg["patch"]
    Le, Ld = cfg["enc_layers"], cfg["dec_layers"]
    max_pos = cfg["max_pos"]
    keys = iter(jax.random.split(key, 64))

    def w(shape, scale=0.02):
        # Matmul weights stored in bf16 (MXU inputs); everything else stays f32.
        return (scale * jax.random.normal(next(keys), shape, dtype=jnp.float32)
                ).astype(jnp.bfloat16)

    def f32(shape, scale=0.02):
        return scale * jax.random.normal(next(keys), shape, dtype=jnp.float32)

    ones = lambda s: jnp.ones(s, jnp.float32)
    zeros = lambda s: jnp.zeros(s, jnp.float32)

    enc_stack_p = {
        "ln1_g": ones((Le, 1, D)), "ln1_b": zeros((Le, 1, D)),
        "wqkv": w((Le, D, 3 * D)), "bqkv": zeros((Le, 1, 3 * D)),
        "wo": w((Le, D, D)), "bo": zeros((Le, 1, D)),
        "ln2_g": ones((Le, 1, D)), "ln2_b": zeros((Le, 1, D)),
        "w1": w((Le, D, F)), "b1": zeros((Le, 1, F)),
        "w2": w((Le, F, D)), "b2": zeros((Le, 1, D)),
    }
    dec_stack_p = {
        "ln1_g": ones((Ld, 1, D)), "ln1_b": zeros((Ld, 1, D)),
        "wqkv": w((Ld, D, 3 * D)), "bqkv": zeros((Ld, 1, 3 * D)),
        "wo1": w((Ld, D, D)), "bo1": zeros((Ld, 1, D)),
        "ln2_g": ones((Ld, 1, D)), "ln2_b": zeros((Ld, 1, D)),
        "wq": w((Ld, D, D)), "bq": zeros((Ld, 1, D)),
        "wkv": w((Ld, D, 2 * D)), "bkv": zeros((Ld, 1, 2 * D)),
        "wo2": w((Ld, D, D)), "bo2": zeros((Ld, 1, D)),
        "ln3_g": ones((Ld, 1, D)), "ln3_b": zeros((Ld, 1, D)),
        "w1": w((Ld, D, F)), "b1": zeros((Ld, 1, F)),
        "w2": w((Ld, F, D)), "b2": zeros((Ld, 1, D)),
    }
    vit = {
        "patch_w": w((C * ph * ph, D)), "patch_b": zeros((D,)),
        "cls": f32((1, 1, D)), "pos": f32((1, max_pos, D)),
        "stack": enc_stack_p,
        "ln_g": ones((D,)), "ln_b": zeros((D,)),
    }
    dec = {
        "tok_embed": f32((V, D)), "pos": f32((1, max_pos, D)),
        "stack": dec_stack_p,
        "ln_g": ones((D,)), "ln_b": zeros((D,)),
        "out_w": w((D, V)), "out_b": zeros((V,)),
    }
    return {"vit": vit, "dec": dec}


# ----------------------------------- main ------------------------------------ #

if __name__ == "__main__":
    # hidden and vocab chosen as 128 so every kernel output is lane-dense (full 128
    # lanes); heads=4 -> head_dim=32, packed in lanes.
    cfg = dict(vocab=128, hidden=128, heads=4, mlp=512,
               channels=3, patch=16, enc_layers=2, dec_layers=2, max_pos=64)
    B, T = 2, 8
    key = jax.random.PRNGKey(0)
    k_img, k_tgt, k_par = jax.random.split(key, 3)

    images = jax.random.normal(k_img, (B, 3, 32, 32), dtype=jnp.float32)      # NCHW
    tgt_title = jax.random.randint(k_tgt, (B, T), 0, cfg["vocab"], dtype=jnp.int32)
    params = _init_params(k_par, cfg)

    fwd = jax.jit(functools.partial(vit_encoder_decoder_forward, cfg=cfg))
    out = fwd(images, tgt_title, params)
    logits = jax.block_until_ready(out["title"])

    assert logits.shape == (B, T, cfg["vocab"]), logits.shape
    assert bool(jnp.all(jnp.isfinite(logits)))
    print("KERNEL_OK")
</pallas_src>

<mosaic_0001>
module attributes {stable_mosaic.version = 11 : i64} {
  func.func @_linear_kernel(%arg0: i32, %arg1: memref<8x768xf32, #tpu.memory_space<vmem>>, %arg2: memref<768x128xbf16, #tpu.memory_space<vmem>>, %arg3: memref<1x128xf32, #tpu.memory_space<vmem>>, %arg4: memref<8x128xf32, #tpu.memory_space<vmem>>) attributes {dimension_semantics = [#tpu.dimension_semantics<arbitrary>], iteration_bounds = array<i64: 1>, scalar_prefetch = 0 : i64, scratch_operands = 0 : i64, tpu.core_type = #tpu.core_type<tc>, window_params = [{pipeline_mode = #tpu.pipeline_mode<synchronous>, transform_indices = @transform_0, window_bounds = array<i64: 8, 768>}, {pipeline_mode = #tpu.pipeline_mode<synchronous>, transform_indices = @transform_1, window_bounds = array<i64: 768, 128>}, {pipeline_mode = #tpu.pipeline_mode<synchronous>, transform_indices = @transform_2, window_bounds = array<i64: 1, 128>}, {pipeline_mode = #tpu.pipeline_mode<synchronous>, transform_indices = @transform_3, window_bounds = array<i64: 8, 128>}]} {
    %c0 = arith.constant 0 : index
    %c0_0 = arith.constant 0 : index
    %0 = vector.load %arg1[%c0, %c0_0] : memref<8x768xf32, #tpu.memory_space<vmem>>, vector<8x768xf32>
    %1 = arith.truncf %0 : vector<8x768xf32> to vector<8x768xbf16>
    %c0_1 = arith.constant 0 : index
    %c0_2 = arith.constant 0 : index
    %2 = vector.load %arg2[%c0_1, %c0_2] : memref<768x128xbf16, #tpu.memory_space<vmem>>, vector<768x128xbf16>
    %cst = arith.constant dense<0.000000e+00> : vector<8x128xf32>
    %3 = tpu.matmul %1, %2, %cst {dimension_numbers = #tpu.dot_dimension_numbers<[1], [0], [0], [1], [0, 0, 1, 1], [], []>} : vector<8x768xbf16>, vector<768x128xbf16>, vector<8x128xf32> -> vector<8x128xf32>
    %c0_3 = arith.constant 0 : index
    %c0_4 = arith.constant 0 : index
    %4 = vector.load %arg3[%c0_3, %c0_4] : memref<1x128xf32, #tpu.memory_space<vmem>>, vector<1x128xf32>
    %5 = vector.broadcast %4 : vector<1x128xf32> to vector<8x128xf32>
    %6 = arith.addf %3, %5 : vector<8x128xf32>
    %c0_5 = arith.constant 0 : index
    %c0_6 = arith.constant 0 : index
    %7 = vector.load %arg4[%c0_5, %c0_6] : memref<8x128xf32, #tpu.memory_space<vmem>>, vector<8x128xf32>
    tpu.vector_store %arg4[%c0_5, %c0_6], %6 {strides = array<i32>} : memref<8x128xf32, #tpu.memory_space<vmem>>, vector<8x128xf32>,
    return
  }
  func.func @transform_0(%arg0: i32) -> (i32, i32) {
    %c0_i32 = arith.constant 0 : i32
    %c0_i32_0 = arith.constant 0 : i32
    %c0_i32_1 = arith.constant 0 : i32
    return %c0_i32, %c0_i32_0 : i32, i32
  }
  func.func @transform_1(%arg0: i32) -> (i32, i32) {
    %c0_i32 = arith.constant 0 : i32
    %c0_i32_0 = arith.constant 0 : i32
    %c0_i32_1 = arith.constant 0 : i32
    return %c0_i32, %c0_i32_0 : i32, i32
  }
  func.func @transform_2(%arg0: i32) -> (i32, i32) {
    %c0_i32 = arith.constant 0 : i32
    %c0_i32_0 = arith.constant 0 : i32
    %c0_i32_1 = arith.constant 0 : i32
    return %c0_i32, %c0_i32_0 : i32, i32
  }
  func.func @transform_3(%arg0: i32) -> (i32, i32) {
    %c0_i32 = arith.constant 0 : i32
    %c0_i32_0 = arith.constant 0 : i32
    %c0_i32_1 = arith.constant 0 : i32
    return %c0_i32, %c0_i32_0 : i32, i32
  }
}

module attributes {stable_mosaic.version = 11 : i64} {
  func.func @_enc_stack_kernel(%arg0: i32, %arg1: i32, %arg2: memref<1x5x128xf32, #tpu.memory_space<vmem>>, %arg3: memref<1x1x128xf32, #tpu.memory_space<vmem>>, %arg4: memref<1x1x128xf32, #tpu.memory_space<vmem>>, %arg5: memref<1x128x384xbf16, #tpu.memory_space<vmem>>, %arg6: memref<1x1x384xf32, #tpu.memory_space<vmem>>, %arg7: memref<1x128x128xbf16, #tpu.memory_space<vmem>>, %arg8: memref<1x1x128xf32, #tpu.memory_space<vmem>>, %arg9: memref<1x1x128xf32, #tpu.memory_space<vmem>>, %arg10: memref<1x1x128xf32, #tpu.memory_space<vmem>>, %arg11: memref<1x128x512xbf16, #tpu.memory_space<vmem>>, %arg12: memref<1x1x512xf32, #tpu.memory_space<vmem>>, %arg13: memref<1x512x128xbf16, #tpu.memory_space<vmem>>, %arg14: memref<1x1x128xf32, #tpu.memory_space<vmem>>, %arg15: memref<1x128xf32, #tpu.memory_space<vmem>>, %arg16: memref<1x128xf32, #tpu.memory_space<vmem>>, %arg17: memref<1x5x128xf32, #tpu.memory_space<vmem>>, %arg18: memref<5x128xf32, #tpu.memory_space<vmem>>) attributes {dimension_semantics = [#tpu.dimension_semantics<parallel>, #tpu.dimension_semantics<arbitrary>], iteration_bounds = array<i64: 2, 2>, scalar_prefetch = 0 : i64, scratch_operands = 1 : i64, tpu.core_type = #tpu.core_type<tc>, window_params = [{transform_indices = @transform_0, window_bounds = array<i64: 1, 5, 128>}, {transform_indices = @transform_1, window_bounds = array<i64: 1, 1, 128>}, {transform_indices = @transform_2, window_bounds = array<i64: 1, 1, 128>}, {transform_indices = @transform_3, window_bounds = array<i64: 1, 128, 384>}, {transform_indices = @transform_4, window_bounds = array<i64: 1, 1, 384>}, {transform_indices = @transform_5, window_bounds = array<i64: 1, 128, 128>}, {transform_indices = @transform_6, window_bounds = array<i64: 1, 1, 128>}, {transform_indices = @transform_7, window_bounds = array<i64: 1, 1, 128>}, {transform_indices = @transform_8, window_bounds = array<i64: 1, 1, 128>}, {transform_indices = @transform_9, window_bounds = array<i64: 1, 128, 512>}, {transform_indices = @transform_10, window_bounds = array<i64: 1, 1, 512>}, {transform_indices = @transform_11, window_bounds = array<i64: 1, 512, 128>}, {transform_indices = @transform_12, window_bounds = array<i64: 1, 1, 128>}, {pipeline_mode = #tpu.pipeline_mode<synchronous>, transform_indices = @transform_13, window_bounds = array<i64: 1, 128>}, {pipeline_mode = #tpu.pipeline_mode<synchronous>, transform_indices = @transform_14, window_bounds = array<i64: 1, 128>}, {transform_indices = @transform_15, window_bounds = array<i64: 1, 5, 128>}]} {
    %c0_i32 = arith.constant 0 : i32
    %0 = arith.cmpi eq, %arg1, %c0_i32 : i32
    %1 = arith.extui %0 : i1 to i32
    %c0_i32_0 = arith.constant 0 : i32
    %2 = arith.cmpi ne, %1, %c0_i32_0 : i32
    scf.if %2 {
      %c0_90 = arith.constant 0 : index
      %c0_91 = arith.constant 0 : index
      %c0_92 = arith.constant 0 : index
      %219 = vector.load %arg2[%c0_90, %c0_91, %c0_92] : memref<1x5x128xf32, #tpu.memory_space<vmem>>, vector<1x5x128xf32>
      %220 = vector.shape_cast %219 : vector<1x5x128xf32> to vector<5x128xf32>
      %c0_93 = arith.constant 0 : index
      %c0_94 = arith.constant 0 : index
      %221 = vector.load %arg18[%c0_93, %c0_94] : memref<5x128xf32, #tpu.memory_space<vmem>>, vector<5x128xf32>
      tpu.vector_store %arg18[%c0_93, %c0_94], %220 {strides = array<i32>} : memref<5x128xf32, #tpu.memory_space<vmem>>, vector<5x128xf32>,
    } else {
    }
    %c0 = arith.constant 0 : index
    %c0_1 = arith.constant 0 : index
    %3 = vector.load %arg18[%c0, %c0_1] : memref<5x128xf32, #tpu.memory_space<vmem>>, vector<5x128xf32>
    %c0_2 = arith.constant 0 : index
    %c0_3 = arith.constant 0 : index
    %c0_4 = arith.constant 0 : index
    %4 = vector.load %arg3[%c0_2, %c0_3, %c0_4] : memref<1x1x128xf32, #tpu.memory_space<vmem>>, vector<1x1x128xf32>
    %5 = vector.shape_cast %4 : vector<1x1x128xf32> to vector<1x128xf32>
    %c0_5 = arith.constant 0 : index
    %c0_6 = arith.constant 0 : index
    %c0_7 = arith.constant 0 : index
    %6 = vector.load %arg4[%c0_5, %c0_6, %c0_7] : memref<1x1x128xf32, #tpu.memory_space<vmem>>, vector<1x1x128xf32>
    %7 = vector.shape_cast %6 : vector<1x1x128xf32> to vector<1x128xf32>
    %cst = arith.constant dense<0.000000e+00> : vector<5xf32>
    %8 = vector.multi_reduction <add>, %3, %cst [1] : vector<5x128xf32> to vector<5xf32>
    %9 = vector.shape_cast %8 : vector<5xf32> to vector<5x1xf32>
    %cst_8 = arith.constant 1.280000e+02 : f32
    %10 = vector.broadcast %cst_8 : f32 to vector<5x1xf32>
    %11 = arith.divf %9, %10 : vector<5x1xf32>
    %12 = vector.broadcast %11 : vector<5x1xf32> to vector<5x128xf32>
    %13 = arith.subf %3, %12 : vector<5x128xf32>
    %14 = arith.mulf %13, %13 : vector<5x128xf32>
    %cst_9 = arith.constant dense<0.000000e+00> : vector<5xf32>
    %15 = vector.multi_reduction <add>, %14, %cst_9 [1] : vector<5x128xf32> to vector<5xf32>
    %16 = vector.shape_cast %15 : vector<5xf32> to vector<5x1xf32>
    %cst_10 = arith.constant 1.280000e+02 : f32
    %17 = vector.broadcast %cst_10 : f32 to vector<5x1xf32>
    %18 = arith.divf %16, %17 : vector<5x1xf32>
    %cst_11 = arith.constant 9.99999974E-6 : f32
    %19 = vector.broadcast %cst_11 : f32 to vector<5x1xf32>
    %20 = arith.addf %18, %19 : vector<5x1xf32>
    %21 = math.rsqrt %20 : vector<5x1xf32>
    %22 = vector.broadcast %21 : vector<5x1xf32> to vector<5x128xf32>
    %23 = arith.mulf %13, %22 : vector<5x128xf32>
    %24 = vector.broadcast %5 : vector<1x128xf32> to vector<5x128xf32>
    %25 = arith.mulf %23, %24 : vector<5x128xf32>
    %26 = vector.broadcast %7 : vector<1x128xf32> to vector<5x128xf32>
    %27 = arith.addf %25, %26 : vector<5x128xf32>
    %28 = arith.truncf %27 : vector<5x128xf32> to vector<5x128xbf16>
    %c0_12 = arith.constant 0 : index
    %c0_13 = arith.constant 0 : index
    %c0_14 = arith.constant 0 : index
    %29 = vector.load %arg5[%c0_12, %c0_13, %c0_14] : memref<1x128x384xbf16, #tpu.memory_space<vmem>>, vector<1x128x384xbf16>
    %30 = vector.shape_cast %29 : vector<1x128x384xbf16> to vector<128x384xbf16>
    %cst_15 = arith.constant dense<0.000000e+00> : vector<5x384xf32>
    %31 = tpu.matmul %28, %30, %cst_15 {dimension_numbers = #tpu.dot_dimension_numbers<[1], [0], [0], [1], [0, 0, 1, 1], [], []>} : vector<5x128xbf16>, vector<128x384xbf16>, vector<5x384xf32> -> vector<5x384xf32>
    %c0_16 = arith.constant 0 : index
    %c0_17 = arith.constant 0 : index
    %c0_18 = arith.constant 0 : index
    %32 = vector.load %arg6[%c0_16, %c0_17, %c0_18] : memref<1x1x384xf32, #tpu.memory_space<vmem>>, vector<1x1x384xf32>
    %33 = vector.shape_cast %32 : vector<1x1x384xf32> to vector<1x384xf32>
    %34 = vector.broadcast %33 : vector<1x384xf32> to vector<5x384xf32>
    %35 = arith.addf %31, %34 : vector<5x384xf32>
    %36 = vector.extract_strided_slice %35 {offsets = [0, 0], sizes = [5, 128], strides = [1, 1]} : vector<5x384xf32> to vector<5x128xf32>
    %37 = vector.extract_strided_slice %35 {offsets = [0, 128], sizes = [5, 128], strides = [1, 1]} : vector<5x384xf32> to vector<5x128xf32>
    %38 = vector.extract_strided_slice %35 {offsets = [0, 256], sizes = [5, 128], strides = [1, 1]} : vector<5x384xf32> to vector<5x128xf32>
    %39 = vector.extract_strided_slice %36 {offsets = [0, 0], sizes = [5, 32], strides = [1, 1]} : vector<5x128xf32> to vector<5x32xf32>
    %40 = arith.truncf %39 : vector<5x32xf32> to vector<5x32xbf16>
    %41 = vector.extract_strided_slice %37 {offsets = [0, 0], sizes = [5, 32], strides = [1, 1]} : vector<5x128xf32> to vector<5x32xf32>
    %42 = arith.truncf %41 : vector<5x32xf32> to vector<5x32xbf16>
    %43 = vector.extract_strided_slice %38 {offsets = [0, 0], sizes = [5, 32], strides = [1, 1]} : vector<5x128xf32> to vector<5x32xf32>
    %44 = arith.truncf %43 : vector<5x32xf32> to vector<5x32xbf16>
    "tpu.trace_start"() <{level = 10 : i32, message = "qd,kd->qk"}> : () -> ()
    %cst_19 = arith.constant dense<0.000000e+00> : vector<5x5xf32>
    %45 = tpu.matmul %40, %42, %cst_19 {dimension_numbers = #tpu.dot_dimension_numbers<[1], [1], [0], [0], [0, 0, 1, 0], [], []>} : vector<5x32xbf16>, vector<5x32xbf16>, vector<5x5xf32> -> vector<5x5xf32>
    "tpu.trace_stop"() : () -> ()
    %cst_20 = arith.constant 0.176776692 : f32
    %46 = vector.broadcast %cst_20 : f32 to vector<5x5xf32>
    %47 = arith.mulf %45, %46 : vector<5x5xf32>
    %cst_21 = arith.constant dense<0xFF800000> : vector<5xf32>
    %48 = vector.multi_reduction <maximumf>, %47, %cst_21 [1] : vector<5x5xf32> to vector<5xf32>
    %49 = vector.shape_cast %48 : vector<5xf32> to vector<5x1xf32>
    %50 = vector.broadcast %49 : vector<5x1xf32> to vector<5x5xf32>
    %51 = arith.subf %47, %50 : vector<5x5xf32>
    %52 = math.exp %51 : vector<5x5xf32>
    %cst_22 = arith.constant dense<0.000000e+00> : vector<5xf32>
    %53 = vector.multi_reduction <add>, %52, %cst_22 [1] : vector<5x5xf32> to vector<5xf32>
    %54 = vector.shape_cast %53 : vector<5xf32> to vector<5x1xf32>
    %55 = arith.truncf %52 : vector<5x5xf32> to vector<5x5xbf16>
    %cst_23 = arith.constant dense<0.000000e+00> : vector<5x32xf32>
    %56 = tpu.matmul %55, %44, %cst_23 {dimension_numbers = #tpu.dot_dimension_numbers<[1], [0], [0], [1], [0, 0, 1, 1], [], []>} : vector<5x5xbf16>, vector<5x32xbf16>, vector<5x32xf32> -> vector<5x32xf32>
    %57 = tpu.reciprocal %54 {approx = true} : vector<5x1xf32> -> vector<5x1xf32>
    %58 = vector.broadcast %57 : vector<5x1xf32> to vector<5x32xf32>
    %59 = arith.mulf %56, %58 : vector<5x32xf32>
    %60 = vector.extract_strided_slice %36 {offsets = [0, 32], sizes = [5, 32], strides = [1, 1]} : vector<5x128xf32> to vector<5x32xf32>
    %61 = arith.truncf %60 : vector<5x32xf32> to vector<5x32xbf16>
    %62 = vector.extract_strided_slice %37 {offsets = [0, 32], sizes = [5, 32], strides = [1, 1]} : vector<5x128xf32> to vector<5x32xf32>
    %63 = arith.truncf %62 : vector<5x32xf32> to vector<5x32xbf16>
    %64 = vector.extract_strided_slice %38 {offsets = [0, 32], sizes = [5, 32], strides = [1, 1]} : vector<5x128xf32> to vector<5x32xf32>
    %65 = arith.truncf %64 : vector<5x32xf32> to vector<5x32xbf16>
    "tpu.trace_start"() <{level = 10 : i32, message = "qd,kd->qk"}> : () -> ()
    %cst_24 = arith.constant dense<0.000000e+00> : vector<5x5xf32>
    %66 = tpu.matmul %61, %63, %cst_24 {dimension_numbers = #tpu.dot_dimension_numbers<[1], [1], [0], [0], [0, 0, 1, 0], [], []>} : vector<5x32xbf16>, vector<5x32xbf16>, vector<5x5xf32> -> vector<5x5xf32>
    "tpu.trace_stop"() : () -> ()
    %cst_25 = arith.constant 0.176776692 : f32
    %67 = vector.broadcast %cst_25 : f32 to vector<5x5xf32>
    %68 = arith.mulf %66, %67 : vector<5x5xf32>
    %cst_26 = arith.constant dense<0xFF800000> : vector<5xf32>
    %69 = vector.multi_reduction <maximumf>, %68, %cst_26 [1] : vector<5x5xf32> to vector<5xf32>
    %70 = vector.shape_cast %69 : vector<5xf32> to vector<5x1xf32>
    %71 = vector.broadcast %70 : vector<5x1xf32> to vector<5x5xf32>
    %72 = arith.subf %68, %71 : vector<5x5xf32>
    %73 = math.exp %72 : vector<5x5xf32>
    %cst_27 = arith.constant dense<0.000000e+00> : vector<5xf32>
    %74 = vector.multi_reduction <add>, %73, %cst_27 [1] : vector<5x5xf32> to vector<5xf32>
    %75 = vector.shape_cast %74 : vector<5xf32> to vector<5x1xf32>
    %76 = arith.truncf %73 : vector<5x5xf32> to vector<5x5xbf16>
    %cst_28 = arith.constant dense<0.000000e+00> : vector<5x32xf32>
    %77 = tpu.matmul %76, %65, %cst_28 {dimension_numbers = #tpu.dot_dimension_numbers<[1], [0], [0], [1], [0, 0, 1, 1], [], []>} : vector<5x5xbf16>, vector<5x32xbf16>, vector<5x32xf32> -> vector<5x32xf32>
    %78 = tpu.reciprocal %75 {approx = true} : vector<5x1xf32> -> vector<5x1xf32>
    %79 = vector.broadcast %78 : vector<5x1xf32> to vector<5x32xf32>
    %80 = arith.mulf %77, %79 : vector<5x32xf32>
    %81 = vector.extract_strided_slice %36 {offsets = [0, 64], sizes = [5, 32], strides = [1, 1]} : vector<5x128xf32> to vector<5x32xf32>
    %82 = arith.truncf %81 : vector<5x32xf32> to vector<5x32xbf16>
    %83 = vector.extract_strided_slice %37 {offsets = [0, 64], sizes = [5, 32], strides = [1, 1]} : vector<5x128xf32> to vector<5x32xf32>
    %84 = arith.truncf %83 : vector<5x32xf32> to vector<5x32xbf16>
    %85 = vector.extract_strided_slice %38 {offsets = [0, 64], sizes = [5, 32], strides = [1, 1]} : vector<5x128xf32> to vector<5x32xf32>
    %86 = arith.truncf %85 : vector<5x32xf32> to vector<5x32xbf16>
    "tpu.trace_start"() <{level = 10 : i32, message = "qd,kd->qk"}> : () -> ()
    %cst_29 = arith.constant dense<0.000000e+00> : vector<5x5xf32>
    %87 = tpu.matmul %82, %84, %cst_29 {dimension_numbers = #tpu.dot_dimension_numbers<[1], [1], [0], [0], [0, 0, 1, 0], [], []>} : vector<5x32xbf16>, vector<5x32xbf16>, vector<5x5xf32> -> vector<5x5xf32>
    "tpu.trace_stop"() : () -> ()
    %cst_30 = arith.constant 0.176776692 : f32
    %88 = vector.broadcast %cst_30 : f32 to vector<5x5xf32>
    %89 = arith.mulf %87, %88 : vector<5x5xf32>
    %cst_31 = arith.constant dense<0xFF800000> : vector<5xf32>
    %90 = vector.multi_reduction <maximumf>, %89, %cst_31 [1] : vector<5x5xf32> to vector<5xf32>
    %91 = vector.shape_cast %90 : vector<5xf32> to vector<5x1xf32>
    %92 = vector.broadcast %91 : vector<5x1xf32> to vector<5x5xf32>
    %93 = arith.subf %89, %92 : vector<5x5xf32>
    %94 = math.exp %93 : vector<5x5xf32>
    %cst_32 = arith.constant dense<0.000000e+00> : vector<5xf32>
    %95 = vector.multi_reduction <add>, %94, %cst_32 [1] : vector<5x5xf32> to vector<5xf32>
    %96 = vector.shape_cast %95 : vector<5xf32> to vector<5x1xf32>
    %97 = arith.truncf %94 : vector<5x5xf32> to vector<5x5xbf16>
    %cst_33 = arith.constant dense<0.000000e+00> : vector<5x32xf32>
    %98 = tpu.matmul %97, %86, %cst_33 {dimension_numbers = #tpu.dot_dimension_numbers<[1], [0], [0], [1], [0, 0, 1, 1], [], []>} : vector<5x5xbf16>, vector<5x32xbf16>, vector<5x32xf32> -> vector<5x32xf32>
    %99 = tpu.reciprocal %96 {approx = true} : vector<5x1xf32> -> vector<5x1xf32>
    %100 = vector.broadcast %99 : vector<5x1xf32> to vector<5x32xf32>
    %101 = arith.mulf %98, %100 : vector<5x32xf32>
    %102 = vector.extract_strided_slice %36 {offsets = [0, 96], sizes = [5, 32], strides = [1, 1]} : vector<5x128xf32> to vector<5x32xf32>
    %103 = arith.truncf %102 : vector<5x32xf32> to vector<5x32xbf16>
    %104 = vector.extract_strided_slice %37 {offsets = [0, 96], sizes = [5, 32], strides = [1, 1]} : vector<5x128xf32> to vector<5x32xf32>
    %105 = arith.truncf %104 : vector<5x32xf32> to vector<5x32xbf16>
    %106 = vector.extract_strided_slice %38 {offsets = [0, 96], sizes = [5, 32], strides = [1, 1]} : vector<5x128xf32> to vector<5x32xf32>
    %107 = arith.truncf %106 : vector<5x32xf32> to vector<5x32xbf16>
    "tpu.trace_start"() <{level = 10 : i32, message = "qd,kd->qk"}> : () -> ()
    %cst_34 = arith.constant dense<0.000000e+00> : vector<5x5xf32>
    %108 = tpu.matmul %103, %105, %cst_34 {dimension_numbers = #tpu.dot_dimension_numbers<[1], [1], [0], [0], [0, 0, 1, 0], [], []>} : vector<5x32xbf16>, vector<5x32xbf16>, vector<5x5xf32> -> vector<5x5xf32>
    "tpu.trace_stop"() : () -> ()
    %cst_35 = arith.constant 0.176776692 : f32
    %109 = vector.broadcast %cst_35 : f32 to vector<5x5xf32>
    %110 = arith.mulf %108, %109 : vector<5x5xf32>
    %cst_36 = arith.constant dense<0xFF800000> : vector<5xf32>
    %111 = vector.multi_reduction <maximumf>, %110, %cst_36 [1] : vector<5x5xf32> to vector<5xf32>
    %112 = vector.shape_cast %111 : vector<5xf32> to vector<5x1xf32>
    %113 = vector.broadcast %112 : vector<5x1xf32> to vector<5x5xf32>
    %114 = arith.subf %110, %113 : vector<5x5xf32>
    %115 = math.exp %114 : vector<5x5xf32>
    %cst_37 = arith.constant dense<0.000000e+00> : vector<5xf32>
    %116 = vector.multi_reduction <add>, %115, %cst_37 [1] : vector<5x5xf32> to vector<5xf32>
    %117 = vector.shape_cast %116 : vector<5xf32> to vector<5x1xf32>
    %118 = arith.truncf %115 : vector<5x5xf32> to vector<5x5xbf16>
    %cst_38 = arith.constant dense<0.000000e+00> : vector<5x32xf32>
    %119 = tpu.matmul %118, %107, %cst_38 {dimension_numbers = #tpu.dot_dimension_numbers<[1], [0], [0], [1], [0, 0, 1, 1], [], []>} : vector<5x5xbf16>, vector<5x32xbf16>, vector<5x32xf32> -> vector<5x32xf32>
    %120 = tpu.reciprocal %117 {approx = true} : vector<5x1xf32> -> vector<5x1xf32>
    %121 = vector.broadcast %120 : vector<5x1xf32> to vector<5x32xf32>
    %122 = arith.mulf %119, %121 : vector<5x32xf32>
    %123 = tpu.concatenate %59, %80, %101, %122 in 1 : vector<5x32xf32>, vector<5x32xf32>, vector<5x32xf32>, vector<5x32xf32> -> vector<5x128xf32>
    %124 = arith.truncf %123 : vector<5x128xf32> to vector<5x128xbf16>
    %c0_39 = arith.constant 0 : index
    %c0_40 = arith.constant 0 : index
    %c0_41 = arith.constant 0 : index
    %125 = vector.load %arg7[%c0_39, %c0_40, %c0_41] : memref<1x128x128xbf16, #tpu.memory_space<vmem>>, vector<1x128x128xbf16>
    %126 = vector.shape_cast %125 : vector<1x128x128xbf16> to vector<128x128xbf16>
    %cst_42 = arith.constant dense<0.000000e+00> : vector<5x128xf32>
    %127 = tpu.matmul %124, %126, %cst_42 {dimension_numbers = #tpu.dot_dimension_numbers<[1], [0], [0], [1], [0, 0, 1, 1], [], []>} : vector<5x128xbf16>, vector<128x128xbf16>, vector<5x128xf32> -> vector<5x128xf32>
    %c0_43 = arith.constant 0 : index
    %c0_44 = arith.constant 0 : index
    %c0_45 = arith.constant 0 : index
    %128 = vector.load %arg8[%c0_43, %c0_44, %c0_45] : memref<1x1x128xf32, #tpu.memory_space<vmem>>, vector<1x1x128xf32>
    %129 = vector.shape_cast %128 : vector<1x1x128xf32> to vector<1x128xf32>
    %130 = vector.broadcast %129 : vector<1x128xf32> to vector<5x128xf32>
    %131 = arith.addf %127, %130 : vector<5x128xf32>
    %132 = arith.addf %3, %131 : vector<5x128xf32>
    %c0_46 = arith.constant 0 : index
    %c0_47 = arith.constant 0 : index
    %c0_48 = arith.constant 0 : index
    %133 = vector.load %arg9[%c0_46, %c0_47, %c0_48] : memref<1x1x128xf32, #tpu.memory_space<vmem>>, vector<1x1x128xf32>
    %134 = vector.shape_cast %133 : vector<1x1x128xf32> to vector<1x128xf32>
    %c0_49 = arith.constant 0 : index
    %c0_50 = arith.constant 0 : index
    %c0_51 = arith.constant 0 : index
    %135 = vector.load %arg10[%c0_49, %c0_50, %c0_51] : memref<1x1x128xf32, #tpu.memory_space<vmem>>, vector<1x1x128xf32>
    %136 = vector.shape_cast %135 : vector<1x1x128xf32> to vector<1x128xf32>
    %cst_52 = arith.constant dense<0.000000e+00> : vector<5xf32>
    %137 = vector.multi_reduction <add>, %132, %cst_52 [1] : vector<5x128xf32> to vector<5xf32>
    %138 = vector.shape_cast %137 : vector<5xf32> to vector<5x1xf32>
    %cst_53 = arith.constant 1.280000e+02 : f32
    %139 = vector.broadcast %cst_53 : f32 to vector<5x1xf32>
    %140 = arith.divf %138, %139 : vector<5x1xf32>
    %141 = vector.broadcast %140 : vector<5x1xf32> to vector<5x128xf32>
    %142 = arith.subf %132, %141 : vector<5x128xf32>
    %143 = arith.mulf %142, %142 : vector<5x128xf32>
    %cst_54 = arith.constant dense<0.000000e+00> : vector<5xf32>
    %144 = vector.multi_reduction <add>, %143, %cst_54 [1] : vector<5x128xf32> to vector<5xf32>
    %145 = vector.shape_cast %144 : vector<5xf32> to vector<5x1xf32>
    %cst_55 = arith.constant 1.280000e+02 : f32
    %146 = vector.broadcast %cst_55 : f32 to vector<5x1xf32>
    %147 = arith.divf %145, %146 : vector<5x1xf32>
    %cst_56 = arith.constant 9.99999974E-6 : f32
    %148 = vector.broadcast %cst_56 : f32 to vector<5x1xf32>
    %149 = arith.addf %147, %148 : vector<5x1xf32>
    %150 = math.rsqrt %149 : vector<5x1xf32>
    %151 = vector.broadcast %150 : vector<5x1xf32> to vector<5x128xf32>
    %152 = arith.mulf %142, %151 : vector<5x128xf32>
    %153 = vector.broadcast %134 : vector<1x128xf32> to vector<5x128xf32>
    %154 = arith.mulf %152, %153 : vector<5x128xf32>
    %155 = vector.broadcast %136 : vector<1x128xf32> to vector<5x128xf32>
    %156 = arith.addf %154, %155 : vector<5x128xf32>
    %157 = arith.truncf %156 : vector<5x128xf32> to vector<5x128xbf16>
    %c0_57 = arith.constant 0 : index
    %c0_58 = arith.constant 0 : index
    %c0_59 = arith.constant 0 : index
    %158 = vector.load %arg11[%c0_57, %c0_58, %c0_59] : memref<1x128x512xbf16, #tpu.memory_space<vmem>>, vector<1x128x512xbf16>
    %159 = vector.shape_cast %158 : vector<1x128x512xbf16> to vector<128x512xbf16>
    %cst_60 = arith.constant dense<0.000000e+00> : vector<5x512xf32>
    %160 = tpu.matmul %157, %159, %cst_60 {dimension_numbers = #tpu.dot_dimension_numbers<[1], [0], [0], [1], [0, 0, 1, 1], [], []>} : vector<5x128xbf16>, vector<128x512xbf16>, vector<5x512xf32> -> vector<5x512xf32>
    %c0_61 = arith.constant 0 : index
    %c0_62 = arith.constant 0 : index
    %c0_63 = arith.constant 0 : index
    %161 = vector.load %arg12[%c0_61, %c0_62, %c0_63] : memref<1x1x512xf32, #tpu.memory_space<vmem>>, vector<1x1x512xf32>
    %162 = vector.shape_cast %161 : vector<1x1x512xf32> to vector<1x512xf32>
    %163 = vector.broadcast %162 : vector<1x512xf32> to vector<5x512xf32>
    %164 = arith.addf %160, %163 : vector<5x512xf32>
    %cst_64 = arith.constant 5.000000e-01 : f32
    %165 = vector.broadcast %cst_64 : f32 to vector<5x512xf32>
    %166 = arith.mulf %165, %164 : vector<5x512xf32>
    %cst_65 = arith.constant 0.707106769 : f32
    %167 = vector.broadcast %cst_65 : f32 to vector<5x512xf32>
    %168 = arith.mulf %164, %167 : vector<5x512xf32>
    %cst_66 = arith.constant 0.000000e+00 : f32
    %169 = vector.broadcast %cst_66 : f32 to vector<5x512xf32>
    %170 = arith.cmpf oge, %168, %169 : vector<5x512xf32>
    %cst_67 = arith.constant 1.000000e+00 : f32
    %cst_68 = arith.constant -1.000000e+00 : f32
    %171 = vector.broadcast %cst_67 : f32 to vector<5x512xf32>
    %172 = vector.broadcast %cst_68 : f32 to vector<5x512xf32>
    %173 = arith.select %170, %171, %172 : vector<5x512xi1>, vector<5x512xf32>
    %174 = math.absf %168 : vector<5x512xf32>
    %cst_69 = arith.constant 0.327591091 : f32
    %175 = vector.broadcast %cst_69 : f32 to vector<5x512xf32>
    %176 = arith.mulf %175, %174 : vector<5x512xf32>
    %cst_70 = arith.constant 1.000000e+00 : f32
    %177 = vector.broadcast %cst_70 : f32 to vector<5x512xf32>
    %178 = arith.addf %177, %176 : vector<5x512xf32>
    %cst_71 = arith.constant 1.000000e+00 : f32
    %179 = vector.broadcast %cst_71 : f32 to vector<5x512xf32>
    %180 = arith.divf %179, %178 : vector<5x512xf32>
    %cst_72 = arith.constant 1.06140542 : f32
    %181 = vector.broadcast %cst_72 : f32 to vector<5x512xf32>
    %182 = arith.mulf %181, %180 : vector<5x512xf32>
    %cst_73 = arith.constant -1.45315206 : f32
    %183 = vector.broadcast %cst_73 : f32 to vector<5x512xf32>
    %184 = arith.addf %182, %183 : vector<5x512xf32>
    %185 = arith.mulf %184, %180 : vector<5x512xf32>
    %cst_74 = arith.constant 1.42141378 : f32
    %186 = vector.broadcast %cst_74 : f32 to vector<5x512xf32>
    %187 = arith.addf %185, %186 : vector<5x512xf32>
    %188 = arith.mulf %187, %180 : vector<5x512xf32>
    %cst_75 = arith.constant -0.284496725 : f32
    %189 = vector.broadcast %cst_75 : f32 to vector<5x512xf32>
    %190 = arith.addf %188, %189 : vector<5x512xf32>
    %191 = arith.mulf %190, %180 : vector<5x512xf32>
    %cst_76 = arith.constant 0.254829586 : f32
    %192 = vector.broadcast %cst_76 : f32 to vector<5x512xf32>
    %193 = arith.addf %191, %192 : vector<5x512xf32>
    %194 = arith.mulf %193, %180 : vector<5x512xf32>
    %cst_77 = arith.constant 0.000000e+00 : f32
    %195 = vector.broadcast %cst_77 : f32 to vector<5x512xf32>
    %196 = arith.subf %195, %174 : vector<5x512xf32>
    %197 = arith.mulf %196, %174 : vector<5x512xf32>
    %198 = math.exp %197 : vector<5x512xf32>
    %199 = arith.mulf %194, %198 : vector<5x512xf32>
    %cst_78 = arith.constant 1.000000e+00 : f32
    %200 = vector.broadcast %cst_78 : f32 to vector<5x512xf32>
    %201 = arith.subf %200, %199 : vector<5x512xf32>
    %202 = arith.mulf %173, %201 : vector<5x512xf32>
    %cst_79 = arith.constant 1.000000e+00 : f32
    %203 = vector.broadcast %cst_79 : f32 to vector<5x512xf32>
    %204 = arith.addf %203, %202 : vector<5x512xf32>
    %205 = arith.mulf %166, %204 : vector<5x512xf32>
    %206 = arith.truncf %205 : vector<5x512xf32> to vector<5x512xbf16>
    %c0_80 = arith.constant 0 : index
    %c0_81 = arith.constant 0 : index
    %c0_82 = arith.constant 0 : index
    %207 = vector.load %arg13[%c0_80, %c0_81, %c0_82] : memref<1x512x128xbf16, #tpu.memory_space<vmem>>, vector<1x512x128xbf16>
    %208 = vector.shape_cast %207 : vector<1x512x128xbf16> to vector<512x128xbf16>
    %cst_83 = arith.constant dense<0.000000e+00> : vector<5x128xf32>
    %209 = tpu.matmul %206, %208, %cst_83 {dimension_numbers = #tpu.dot_dimension_numbers<[1], [0], [0], [1], [0, 0, 1, 1], [], []>} : vector<5x512xbf16>, vector<512x128xbf16>, vector<5x128xf32> -> vector<5x128xf32>
    %c0_84 = arith.constant 0 : index
    %c0_85 = arith.constant 0 : index
    %c0_86 = arith.constant 0 : index
    %210 = vector.load %arg14[%c0_84, %c0_85, %c0_86] : memref<1x1x128xf32, #tpu.memory_space<vmem>>, vector<1x1x128xf32>
    %211 = vector.shape_cast %210 : vector<1x1x128xf32> to vector<1x128xf32>
    %212 = vector.broadcast %211 : vector<1x128xf32> to vector<5x128xf32>
    %213 = arith.addf %209, %212 : vector<5x128xf32>
    %214 = arith.addf %132, %213 : vector<5x128xf32>
    %c0_87 = arith.constant 0 : index
    %c0_88 = arith.constant 0 : index
    %215 = vector.load %arg18[%c0_87, %c0_88] : memref<5x128xf32, #tpu.memory_space<vmem>>, vector<5x128xf32>
    tpu.vector_store %arg18[%c0_87, %c0_88], %214 {strides = array<i32>} : memref<5x128xf32, #tpu.memory_space<vmem>>, vector<5x128xf32>,
    %c1_i32 = arith.constant 1 : i32
    %216 = arith.cmpi eq, %arg1, %c1_i32 : i32
    %217 = arith.extui %216 : i1 to i32
    %c0_i32_89 = arith.constant 0 : i32
    %218 = arith.cmpi ne, %217, %c0_i32_89 : i32
    scf.if %218 {
      %c0_90 = arith.constant 0 : index
      %c0_91 = arith.constant 0 : index
      %219 = vector.load %arg15[%c0_90, %c0_91] : memref<1x128xf32, #tpu.memory_space<vmem>>, vector<1x128xf32>
      %c0_92 = arith.constant 0 : index
      %c0_93 = arith.constant 0 : index
      %220 = vector.load %arg16[%c0_92, %c0_93] : memref<1x128xf32, #tpu.memory_space<vmem>>, vector<1x128xf32>
      %cst_94 = arith.constant dense<0.000000e+00> : vector<5xf32>
      %221 = vector.multi_reduction <add>, %214, %cst_94 [1] : vector<5x128xf32> to vector<5xf32>
      %222 = vector.shape_cast %221 : vector<5xf32> to vector<5x1xf32>
      %cst_95 = arith.constant 1.280000e+02 : f32
      %223 = vector.broadcast %cst_95 : f32 to vector<5x1xf32>
      %224 = arith.divf %222, %223 : vector<5x1xf32>
      %225 = vector.broadcast %224 : vector<5x1xf32> to vector<5x128xf32>
      %226 = arith.subf %214, %225 : vector<5x128xf32>
      %227 = arith.mulf %226, %226 : vector<5x128xf32>
      %cst_96 = arith.constant dense<0.000000e+00> : vector<5xf32>
      %228 = vector.multi_reduction <add>, %227, %cst_96 [1] : vector<5x128xf32> to vector<5xf32>
      %229 = vector.shape_cast %228 : vector<5xf32> to vector<5x1xf32>
      %cst_97 = arith.constant 1.280000e+02 : f32
      %230 = vector.broadcast %cst_97 : f32 to vector<5x1xf32>
      %231 = arith.divf %229, %230 : vector<5x1xf32>
      %cst_98 = arith.constant 9.99999974E-6 : f32
      %232 = vector.broadcast %cst_98 : f32 to vector<5x1xf32>
      %233 = arith.addf %231, %232 : vector<5x1xf32>
      %234 = math.rsqrt %233 : vector<5x1xf32>
      %235 = vector.broadcast %234 : vector<5x1xf32> to vector<5x128xf32>
      %236 = arith.mulf %226, %235 : vector<5x128xf32>
      %237 = vector.broadcast %219 : vector<1x128xf32> to vector<5x128xf32>
      %238 = arith.mulf %236, %237 : vector<5x128xf32>
      %239 = vector.broadcast %220 : vector<1x128xf32> to vector<5x128xf32>
      %240 = arith.addf %238, %239 : vector<5x128xf32>
      %c0_99 = arith.constant 0 : index
      %c0_100 = arith.constant 0 : index
      %c0_101 = arith.constant 0 : index
      %241 = vector.load %arg17[%c0_99, %c0_100, %c0_101] : memref<1x5x128xf32, #tpu.memory_space<vmem>>, vector<1x5x128xf32>
      %242 = vector.shape_cast %241 : vector<1x5x128xf32> to vector<5x128xf32>
      %243 = vector.shape_cast %240 : vector<5x128xf32> to vector<1x5x128xf32>
      tpu.vector_store %arg17[%c0_99, %c0_100, %c0_101], %243 {strides = array<i32>} : memref<1x5x128xf32, #tpu.memory_space<vmem>>, vector<1x5x128xf32>,
    } else {
    }
    return
  }
  func.func @transform_0(%arg0: i32, %arg1: i32) -> (i32, i32, i32) {
    %c0_i32 = arith.constant 0 : i32
    %c0_i32_0 = arith.constant 0 : i32
    %c0_i32_1 = arith.constant 0 : i32
    return %arg0, %c0_i32, %c0_i32_0 : i32, i32, i32
  }
  func.func @transform_1(%arg0: i32, %arg1: i32) -> (i32, i32, i32) {
    %c0_i32 = arith.constant 0 : i32
    %c0_i32_0 = arith.constant 0 : i32
    %c0_i32_1 = arith.constant 0 : i32
    return %arg1, %c0_i32, %c0_i32_0 : i32, i32, i32
  }
  func.func @transform_2(%arg0: i32, %arg1: i32) -> (i32, i32, i32) {
    %c0_i32 = arith.constant 0 : i32
    %c0_i32_0 = arith.constant 0 : i32
    %c0_i32_1 = arith.constant 0 : i32
    return %arg1, %c0_i32, %c0_i32_0 : i32, i32, i32
  }
  func.func @transform_3(%arg0: i32, %arg1: i32) -> (i32, i32, i32) {
    %c0_i32 = arith.constant 0 : i32
    %c0_i32_0 = arith.constant 0 : i32
    %c0_i32_1 = arith.constant 0 : i32
    return %arg1, %c0_i32, %c0_i32_0 : i32, i32, i32
  }
  func.func @transform_4(%arg0: i32, %arg1: i32) -> (i32, i32, i32) {
    %c0_i32 = arith.constant 0 : i32
    %c0_i32_0 = arith.constant 0 : i32
    %c0_i32_1 = arith.constant 0 : i32
    return %arg1, %c0_i32, %c0_i32_0 : i32, i32, i32
  }
  func.func @transform_5(%arg0: i32, %arg1: i32) -> (i32, i32, i32) {
    %c0_i32 = arith.constant 0 : i32
    %c0_i32_0 = arith.constant 0 : i32
    %c0_i32_1 = arith.constant 0 : i32
    return %arg1, %c0_i32, %c0_i32_0 : i32, i32, i32
  }
  func.func @transform_6(%arg0: i32, %arg1: i32) -> (i32, i32, i32) {
    %c0_i32 = arith.constant 0 : i32
    %c0_i32_0 = arith.constant 0 : i32
    %c0_i32_1 = arith.constant 0 : i32
    return %arg1, %c0_i32, %c0_i32_0 : i32, i32, i32
  }
  func.func @transform_7(%arg0: i32, %arg1: i32) -> (i32, i32, i32) {
    %c0_i32 = arith.constant 0 : i32
    %c0_i32_0 = arith.constant 0 : i32
    %c0_i32_1 = arith.constant 0 : i32
    return %arg1, %c0_i32, %c0_i32_0 : i32, i32, i32
  }
  func.func @transform_8(%arg0: i32, %arg1: i32) -> (i32, i32, i32) {
    %c0_i32 = arith.constant 0 : i32
    %c0_i32_0 = arith.constant 0 : i32
    %c0_i32_1 = arith.constant 0 : i32
    return %arg1, %c0_i32, %c0_i32_0 : i32, i32, i32
  }
  func.func @transform_9(%arg0: i32, %arg1: i32) -> (i32, i32, i32) {
    %c0_i32 = arith.constant 0 : i32
    %c0_i32_0 = arith.constant 0 : i32
    %c0_i32_1 = arith.constant 0 : i32
    return %arg1, %c0_i32, %c0_i32_0 : i32, i32, i32
  }
  func.func @transform_10(%arg0: i32, %arg1: i32) -> (i32, i32, i32) {
    %c0_i32 = arith.constant 0 : i32
    %c0_i32_0 = arith.constant 0 : i32
    %c0_i32_1 = arith.constant 0 : i32
    return %arg1, %c0_i32, %c0_i32_0 : i32, i32, i32
  }
  func.func @transform_11(%arg0: i32, %arg1: i32) -> (i32, i32, i32) {
    %c0_i32 = arith.constant 0 : i32
    %c0_i32_0 = arith.constant 0 : i32
    %c0_i32_1 = arith.constant 0 : i32
    return %arg1, %c0_i32, %c0_i32_0 : i32, i32, i32
  }
  func.func @transform_12(%arg0: i32, %arg1: i32) -> (i32, i32, i32) {
    %c0_i32 = arith.constant 0 : i32
    %c0_i32_0 = arith.constant 0 : i32
    %c0_i32_1 = arith.constant 0 : i32
    return %arg1, %c0_i32, %c0_i32_0 : i32, i32, i32
  }
  func.func @transform_13(%arg0: i32, %arg1: i32) -> (i32, i32) {
    %c0_i32 = arith.constant 0 : i32
    %c0_i32_0 = arith.constant 0 : i32
    %c0_i32_1 = arith.constant 0 : i32
    return %c0_i32, %c0_i32_0 : i32, i32
  }
  func.func @transform_14(%arg0: i32, %arg1: i32) -> (i32, i32) {
    %c0_i32 = arith.constant 0 : i32
    %c0_i32_0 = arith.constant 0 : i32
    %c0_i32_1 = arith.constant 0 : i32
    return %c0_i32, %c0_i32_0 : i32, i32
  }
  func.func @transform_15(%arg0: i32, %arg1: i32) -> (i32, i32, i32) {
    %c0_i32 = arith.constant 0 : i32
    %c0_i32_0 = arith.constant 0 : i32
    %c0_i32_1 = arith.constant 0 : i32
    return %arg0, %c0_i32, %c0_i32_0 : i32, i32, i32
  }
}

module attributes {stable_mosaic.version = 11 : i64} {
  func.func @_dec_stack_kernel(%arg0: i32, %arg1: i32, %arg2: memref<1x8x128xf32, #tpu.memory_space<vmem>>, %arg3: memref<1x5x128xf32, #tpu.memory_space<vmem>>, %arg4: memref<1x1x128xf32, #tpu.memory_space<vmem>>, %arg5: memref<1x1x128xf32, #tpu.memory_space<vmem>>, %arg6: memref<1x128x384xbf16, #tpu.memory_space<vmem>>, %arg7: memref<1x1x384xf32, #tpu.memory_space<vmem>>, %arg8: memref<1x128x128xbf16, #tpu.memory_space<vmem>>, %arg9: memref<1x1x128xf32, #tpu.memory_space<vmem>>, %arg10: memref<1x1x128xf32, #tpu.memory_space<vmem>>, %arg11: memref<1x1x128xf32, #tpu.memory_space<vmem>>, %arg12: memref<1x128x128xbf16, #tpu.memory_space<vmem>>, %arg13: memref<1x1x128xf32, #tpu.memory_space<vmem>>, %arg14: memref<1x128x256xbf16, #tpu.memory_space<vmem>>, %arg15: memref<1x1x256xf32, #tpu.memory_space<vmem>>, %arg16: memref<1x128x128xbf16, #tpu.memory_space<vmem>>, %arg17: memref<1x1x128xf32, #tpu.memory_space<vmem>>, %arg18: memref<1x1x128xf32, #tpu.memory_space<vmem>>, %arg19: memref<1x1x128xf32, #tpu.memory_space<vmem>>, %arg20: memref<1x128x512xbf16, #tpu.memory_space<vmem>>, %arg21: memref<1x1x512xf32, #tpu.memory_space<vmem>>, %arg22: memref<1x512x128xbf16, #tpu.memory_space<vmem>>, %arg23: memref<1x1x128xf32, #tpu.memory_space<vmem>>, %arg24: memref<1x128xf32, #tpu.memory_space<vmem>>, %arg25: memref<1x128xf32, #tpu.memory_space<vmem>>, %arg26: memref<128x128xbf16, #tpu.memory_space<vmem>>, %arg27: memref<1x128xf32, #tpu.memory_space<vmem>>, %arg28: memref<1x8x128xf32, #tpu.memory_space<vmem>>, %arg29: memref<8x128xf32, #tpu.memory_space<vmem>>) attributes {dimension_semantics = [#tpu.dimension_semantics<parallel>, #tpu.dimension_semantics<arbitrary>], iteration_bounds = array<i64: 2, 2>, scalar_prefetch = 0 : i64, scratch_operands = 1 : i64, tpu.core_type = #tpu.core_type<tc>, window_params = [{transform_indices = @transform_0, window_bounds = array<i64: 1, 8, 128>}, {transform_indices = @transform_1, window_bounds = array<i64: 1, 5, 128>}, {transform_indices = @transform_2, window_bounds = array<i64: 1, 1, 128>}, {transform_indices = @transform_3, window_bounds = array<i64: 1, 1, 128>}, {transform_indices = @transform_4, window_bounds = array<i64: 1, 128, 384>}, {transform_indices = @transform_5, window_bounds = array<i64: 1, 1, 384>}, {transform_indices = @transform_6, window_bounds = array<i64: 1, 128, 128>}, {transform_indices = @transform_7, window_bounds = array<i64: 1, 1, 128>}, {transform_indices = @transform_8, window_bounds = array<i64: 1, 1, 128>}, {transform_indices = @transform_9, window_bounds = array<i64: 1, 1, 128>}, {transform_indices = @transform_10, window_bounds = array<i64: 1, 128, 128>}, {transform_indices = @transform_11, window_bounds = array<i64: 1, 1, 128>}, {transform_indices = @transform_12, window_bounds = array<i64: 1, 128, 256>}, {transform_indices = @transform_13, window_bounds = array<i64: 1, 1, 256>}, {transform_indices = @transform_14, window_bounds = array<i64: 1, 128, 128>}, {transform_indices = @transform_15, window_bounds = array<i64: 1, 1, 128>}, {transform_indices = @transform_16, window_bounds = array<i64: 1, 1, 128>}, {transform_indices = @transform_17, window_bounds = array<i64: 1, 1, 128>}, {transform_indices = @transform_18, window_bounds = array<i64: 1, 128, 512>}, {transform_indices = @transform_19, window_bounds = array<i64: 1, 1, 512>}, {transform_indices = @transform_20, window_bounds = array<i64: 1, 512, 128>}, {transform_indices = @transform_21, window_bounds = array<i64: 1, 1, 128>}, {pipeline_mode = #tpu.pipeline_mode<synchronous>, transform_indices = @transform_22, window_bounds = array<i64: 1, 128>}, {pipeline_mode = #tpu.pipeline_mode<synchronous>, transform_indices = @transform_23, window_bounds = array<i64: 1, 128>}, {pipeline_mode = #tpu.pipeline_mode<synchronous>, transform_indices = @transform_24, window_bounds = array<i64: 128, 128>}, {pipeline_mode = #tpu.pipeline_mode<synchronous>, transform_indices = @transform_25, window_bounds = array<i64: 1, 128>}, {transform_indices = @transform_26, window_bounds = array<i64: 1, 8, 128>}]} {
    %c0_i32 = arith.constant 0 : i32
    %0 = arith.cmpi eq, %arg1, %c0_i32 : i32
    %1 = arith.extui %0 : i1 to i32
    %c0_i32_0 = arith.constant 0 : i32
    %2 = arith.cmpi ne, %1, %c0_i32_0 : i32
    scf.if %2 {
      %c0_149 = arith.constant 0 : index
      %c0_150 = arith.constant 0 : index
      %c0_151 = arith.constant 0 : index
      %368 = vector.load %arg2[%c0_149, %c0_150, %c0_151] : memref<1x8x128xf32, #tpu.memory_space<vmem>>, vector<1x8x128xf32>
      %369 = vector.shape_cast %368 : vector<1x8x128xf32> to vector<8x128xf32>
      %c0_152 = arith.constant 0 : index
      %c0_153 = arith.constant 0 : index
      %370 = vector.load %arg29[%c0_152, %c0_153] : memref<8x128xf32, #tpu.memory_space<vmem>>, vector<8x128xf32>
      tpu.vector_store %arg29[%c0_152, %c0_153], %369 {strides = array<i32>} : memref<8x128xf32, #tpu.memory_space<vmem>>, vector<8x128xf32>,
    } else {
    }
    %c0 = arith.constant 0 : index
    %c0_1 = arith.constant 0 : index
    %3 = vector.load %arg29[%c0, %c0_1] : memref<8x128xf32, #tpu.memory_space<vmem>>, vector<8x128xf32>
    %c0_2 = arith.constant 0 : index
    %c0_3 = arith.constant 0 : index
    %c0_4 = arith.constant 0 : index
    %4 = vector.load %arg3[%c0_2, %c0_3, %c0_4] : memref<1x5x128xf32, #tpu.memory_space<vmem>>, vector<1x5x128xf32>
    %5 = vector.shape_cast %4 : vector<1x5x128xf32> to vector<5x128xf32>
    %c0_5 = arith.constant 0 : index
    %c0_6 = arith.constant 0 : index
    %c0_7 = arith.constant 0 : index
    %6 = vector.load %arg4[%c0_5, %c0_6, %c0_7] : memref<1x1x128xf32, #tpu.memory_space<vmem>>, vector<1x1x128xf32>
    %7 = vector.shape_cast %6 : vector<1x1x128xf32> to vector<1x128xf32>
    %c0_8 = arith.constant 0 : index
    %c0_9 = arith.constant 0 : index
    %c0_10 = arith.constant 0 : index
    %8 = vector.load %arg5[%c0_8, %c0_9, %c0_10] : memref<1x1x128xf32, #tpu.memory_space<vmem>>, vector<1x1x128xf32>
    %9 = vector.shape_cast %8 : vector<1x1x128xf32> to vector<1x128xf32>
    %cst = arith.constant dense<0.000000e+00> : vector<8xf32>
    %10 = vector.multi_reduction <add>, %3, %cst [1] : vector<8x128xf32> to vector<8xf32>
    %11 = vector.shape_cast %10 : vector<8xf32> to vector<8x1xf32>
    %cst_11 = arith.constant 1.280000e+02 : f32
    %12 = vector.broadcast %cst_11 : f32 to vector<8x1xf32>
    %13 = arith.divf %11, %12 : vector<8x1xf32>
    %14 = vector.broadcast %13 : vector<8x1xf32> to vector<8x128xf32>
    %15 = arith.subf %3, %14 : vector<8x128xf32>
    %16 = arith.mulf %15, %15 : vector<8x128xf32>
    %cst_12 = arith.constant dense<0.000000e+00> : vector<8xf32>
    %17 = vector.multi_reduction <add>, %16, %cst_12 [1] : vector<8x128xf32> to vector<8xf32>
    %18 = vector.shape_cast %17 : vector<8xf32> to vector<8x1xf32>
    %cst_13 = arith.constant 1.280000e+02 : f32
    %19 = vector.broadcast %cst_13 : f32 to vector<8x1xf32>
    %20 = arith.divf %18, %19 : vector<8x1xf32>
    %cst_14 = arith.constant 9.99999974E-6 : f32
    %21 = vector.broadcast %cst_14 : f32 to vector<8x1xf32>
    %22 = arith.addf %20, %21 : vector<8x1xf32>
    %23 = math.rsqrt %22 : vector<8x1xf32>
    %24 = vector.broadcast %23 : vector<8x1xf32> to vector<8x128xf32>
    %25 = arith.mulf %15, %24 : vector<8x128xf32>
    %26 = vector.broadcast %7 : vector<1x128xf32> to vector<8x128xf32>
    %27 = arith.mulf %25, %26 : vector<8x128xf32>
    %28 = vector.broadcast %9 : vector<1x128xf32> to vector<8x128xf32>
    %29 = arith.addf %27, %28 : vector<8x128xf32>
    %30 = arith.truncf %29 : vector<8x128xf32> to vector<8x128xbf16>
    %c0_15 = arith.constant 0 : index
    %c0_16 = arith.constant 0 : index
    %c0_17 = arith.constant 0 : index
    %31 = vector.load %arg6[%c0_15, %c0_16, %c0_17] : memref<1x128x384xbf16, #tpu.memory_space<vmem>>, vector<1x128x384xbf16>
    %32 = vector.shape_cast %31 : vector<1x128x384xbf16> to vector<128x384xbf16>
    %cst_18 = arith.constant dense<0.000000e+00> : vector<8x384xf32>
    %33 = tpu.matmul %30, %32, %cst_18 {dimension_numbers = #tpu.dot_dimension_numbers<[1], [0], [0], [1], [0, 0, 1, 1], [], []>} : vector<8x128xbf16>, vector<128x384xbf16>, vector<8x384xf32> -> vector<8x384xf32>
    %c0_19 = arith.constant 0 : index
    %c0_20 = arith.constant 0 : index
    %c0_21 = arith.constant 0 : index
    %34 = vector.load %arg7[%c0_19, %c0_20, %c0_21] : memref<1x1x384xf32, #tpu.memory_space<vmem>>, vector<1x1x384xf32>
    %35 = vector.shape_cast %34 : vector<1x1x384xf32> to vector<1x384xf32>
    %36 = vector.broadcast %35 : vector<1x384xf32> to vector<8x384xf32>
    %37 = arith.addf %33, %36 : vector<8x384xf32>
    %38 = vector.extract_strided_slice %37 {offsets = [0, 0], sizes = [8, 128], strides = [1, 1]} : vector<8x384xf32> to vector<8x128xf32>
    %39 = vector.extract_strided_slice %37 {offsets = [0, 128], sizes = [8, 128], strides = [1, 1]} : vector<8x384xf32> to vector<8x128xf32>
    %40 = vector.extract_strided_slice %37 {offsets = [0, 256], sizes = [8, 128], strides = [1, 1]} : vector<8x384xf32> to vector<8x128xf32>
    %41 = tpu.iota {dimensions = array<i32: 0>} : vector<8x8xi32>
    %42 = tpu.iota {dimensions = array<i32: 1>} : vector<8x8xi32>
    %43 = arith.cmpi sle, %42, %41 : vector<8x8xi32>
    %44 = vector.extract_strided_slice %38 {offsets = [0, 0], sizes = [8, 32], strides = [1, 1]} : vector<8x128xf32> to vector<8x32xf32>
    %45 = arith.truncf %44 : vector<8x32xf32> to vector<8x32xbf16>
    %46 = vector.extract_strided_slice %39 {offsets = [0, 0], sizes = [8, 32], strides = [1, 1]} : vector<8x128xf32> to vector<8x32xf32>
    %47 = arith.truncf %46 : vector<8x32xf32> to vector<8x32xbf16>
    %48 = vector.extract_strided_slice %40 {offsets = [0, 0], sizes = [8, 32], strides = [1, 1]} : vector<8x128xf32> to vector<8x32xf32>
    %49 = arith.truncf %48 : vector<8x32xf32> to vector<8x32xbf16>
    "tpu.trace_start"() <{level = 10 : i32, message = "qd,kd->qk"}> : () -> ()
    %cst_22 = arith.constant dense<0.000000e+00> : vector<8x8xf32>
    %50 = tpu.matmul %45, %47, %cst_22 {dimension_numbers = #tpu.dot_dimension_numbers<[1], [1], [0], [0], [0, 0, 1, 0], [], []>} : vector<8x32xbf16>, vector<8x32xbf16>, vector<8x8xf32> -> vector<8x8xf32>
    "tpu.trace_stop"() : () -> ()
    %cst_23 = arith.constant 0.176776692 : f32
    %51 = vector.broadcast %cst_23 : f32 to vector<8x8xf32>
    %52 = arith.mulf %50, %51 : vector<8x8xf32>
    %cst_24 = arith.constant -3.40282347E+38 : f32
    %53 = vector.broadcast %cst_24 : f32 to vector<8x8xf32>
    %54 = arith.select %43, %52, %53 : vector<8x8xi1>, vector<8x8xf32>
    %cst_25 = arith.constant dense<0xFF800000> : vector<8xf32>
    %55 = vector.multi_reduction <maximumf>, %54, %cst_25 [1] : vector<8x8xf32> to vector<8xf32>
    %56 = vector.shape_cast %55 : vector<8xf32> to vector<8x1xf32>
    %57 = vector.broadcast %56 : vector<8x1xf32> to vector<8x8xf32>
    %58 = arith.subf %54, %57 : vector<8x8xf32>
    %59 = math.exp %58 : vector<8x8xf32>
    %cst_26 = arith.constant dense<0.000000e+00> : vector<8xf32>
    %60 = vector.multi_reduction <add>, %59, %cst_26 [1] : vector<8x8xf32> to vector<8xf32>
    %61 = vector.shape_cast %60 : vector<8xf32> to vector<8x1xf32>
    %62 = arith.truncf %59 : vector<8x8xf32> to vector<8x8xbf16>
    %cst_27 = arith.constant dense<0.000000e+00> : vector<8x32xf32>
    %63 = tpu.matmul %62, %49, %cst_27 {dimension_numbers = #tpu.dot_dimension_numbers<[1], [0], [0], [1], [0, 0, 1, 1], [], []>} : vector<8x8xbf16>, vector<8x32xbf16>, vector<8x32xf32> -> vector<8x32xf32>
    %64 = tpu.reciprocal %61 {approx = true} : vector<8x1xf32> -> vector<8x1xf32>
    %65 = vector.broadcast %64 : vector<8x1xf32> to vector<8x32xf32>
    %66 = arith.mulf %63, %65 : vector<8x32xf32>
    %67 = vector.extract_strided_slice %38 {offsets = [0, 32], sizes = [8, 32], strides = [1, 1]} : vector<8x128xf32> to vector<8x32xf32>
    %68 = arith.truncf %67 : vector<8x32xf32> to vector<8x32xbf16>
    %69 = vector.extract_strided_slice %39 {offsets = [0, 32], sizes = [8, 32], strides = [1, 1]} : vector<8x128xf32> to vector<8x32xf32>
    %70 = arith.truncf %69 : vector<8x32xf32> to vector<8x32xbf16>
    %71 = vector.extract_strided_slice %40 {offsets = [0, 32], sizes = [8, 32], strides = [1, 1]} : vector<8x128xf32> to vector<8x32xf32>
    %72 = arith.truncf %71 : vector<8x32xf32> to vector<8x32xbf16>
    "tpu.trace_start"() <{level = 10 : i32, message = "qd,kd->qk"}> : () -> ()
    %cst_28 = arith.constant dense<0.000000e+00> : vector<8x8xf32>
    %73 = tpu.matmul %68, %70, %cst_28 {dimension_numbers = #tpu.dot_dimension_numbers<[1], [1], [0], [0], [0, 0, 1, 0], [], []>} : vector<8x32xbf16>, vector<8x32xbf16>, vector<8x8xf32> -> vector<8x8xf32>
    "tpu.trace_stop"() : () -> ()
    %cst_29 = arith.constant 0.176776692 : f32
    %74 = vector.broadcast %cst_29 : f32 to vector<8x8xf32>
    %75 = arith.mulf %73, %74 : vector<8x8xf32>
    %cst_30 = arith.constant -3.40282347E+38 : f32
    %76 = vector.broadcast %cst_30 : f32 to vector<8x8xf32>
    %77 = arith.select %43, %75, %76 : vector<8x8xi1>, vector<8x8xf32>
    %cst_31 = arith.constant dense<0xFF800000> : vector<8xf32>
    %78 = vector.multi_reduction <maximumf>, %77, %cst_31 [1] : vector<8x8xf32> to vector<8xf32>
    %79 = vector.shape_cast %78 : vector<8xf32> to vector<8x1xf32>
    %80 = vector.broadcast %79 : vector<8x1xf32> to vector<8x8xf32>
    %81 = arith.subf %77, %80 : vector<8x8xf32>
    %82 = math.exp %81 : vector<8x8xf32>
    %cst_32 = arith.constant dense<0.000000e+00> : vector<8xf32>
    %83 = vector.multi_reduction <add>, %82, %cst_32 [1] : vector<8x8xf32> to vector<8xf32>
    %84 = vector.shape_cast %83 : vector<8xf32> to vector<8x1xf32>
    %85 = arith.truncf %82 : vector<8x8xf32> to vector<8x8xbf16>
    %cst_33 = arith.constant dense<0.000000e+00> : vector<8x32xf32>
    %86 = tpu.matmul %85, %72, %cst_33 {dimension_numbers = #tpu.dot_dimension_numbers<[1], [0], [0], [1], [0, 0, 1, 1], [], []>} : vector<8x8xbf16>, vector<8x32xbf16>, vector<8x32xf32> -> vector<8x32xf32>
    %87 = tpu.reciprocal %84 {approx = true} : vector<8x1xf32> -> vector<8x1xf32>
    %88 = vector.broadcast %87 : vector<8x1xf32> to vector<8x32xf32>
    %89 = arith.mulf %86, %88 : vector<8x32xf32>
    %90 = vector.extract_strided_slice %38 {offsets = [0, 64], sizes = [8, 32], strides = [1, 1]} : vector<8x128xf32> to vector<8x32xf32>
    %91 = arith.truncf %90 : vector<8x32xf32> to vector<8x32xbf16>
    %92 = vector.extract_strided_slice %39 {offsets = [0, 64], sizes = [8, 32], strides = [1, 1]} : vector<8x128xf32> to vector<8x32xf32>
    %93 = arith.truncf %92 : vector<8x32xf32> to vector<8x32xbf16>
    %94 = vector.extract_strided_slice %40 {offsets = [0, 64], sizes = [8, 32], strides = [1, 1]} : vector<8x128xf32> to vector<8x32xf32>
    %95 = arith.truncf %94 : vector<8x32xf32> to vector<8x32xbf16>
    "tpu.trace_start"() <{level = 10 : i32, message = "qd,kd->qk"}> : () -> ()
    %cst_34 = arith.constant dense<0.000000e+00> : vector<8x8xf32>
    %96 = tpu.matmul %91, %93, %cst_34 {dimension_numbers = #tpu.dot_dimension_numbers<[1], [1], [0], [0], [0, 0, 1, 0], [], []>} : vector<8x32xbf16>, vector<8x32xbf16>, vector<8x8xf32> -> vector<8x8xf32>
    "tpu.trace_stop"() : () -> ()
    %cst_35 = arith.constant 0.176776692 : f32
    %97 = vector.broadcast %cst_35 : f32 to vector<8x8xf32>
    %98 = arith.mulf %96, %97 : vector<8x8xf32>
    %cst_36 = arith.constant -3.40282347E+38 : f32
    %99 = vector.broadcast %cst_36 : f32 to vector<8x8xf32>
    %100 = arith.select %43, %98, %99 : vector<8x8xi1>, vector<8x8xf32>
    %cst_37 = arith.constant dense<0xFF800000> : vector<8xf32>
    %101 = vector.multi_reduction <maximumf>, %100, %cst_37 [1] : vector<8x8xf32> to vector<8xf32>
    %102 = vector.shape_cast %101 : vector<8xf32> to vector<8x1xf32>
    %103 = vector.broadcast %102 : vector<8x1xf32> to vector<8x8xf32>
    %104 = arith.subf %100, %103 : vector<8x8xf32>
    %105 = math.exp %104 : vector<8x8xf32>
    %cst_38 = arith.constant dense<0.000000e+00> : vector<8xf32>
    %106 = vector.multi_reduction <add>, %105, %cst_38 [1] : vector<8x8xf32> to vector<8xf32>
    %107 = vector.shape_cast %106 : vector<8xf32> to vector<8x1xf32>
    %108 = arith.truncf %105 : vector<8x8xf32> to vector<8x8xbf16>
    %cst_39 = arith.constant dense<0.000000e+00> : vector<8x32xf32>
    %109 = tpu.matmul %108, %95, %cst_39 {dimension_numbers = #tpu.dot_dimension_numbers<[1], [0], [0], [1], [0, 0, 1, 1], [], []>} : vector<8x8xbf16>, vector<8x32xbf16>, vector<8x32xf32> -> vector<8x32xf32>
    %110 = tpu.reciprocal %107 {approx = true} : vector<8x1xf32> -> vector<8x1xf32>
    %111 = vector.broadcast %110 : vector<8x1xf32> to vector<8x32xf32>
    %112 = arith.mulf %109, %111 : vector<8x32xf32>
    %113 = vector.extract_strided_slice %38 {offsets = [0, 96], sizes = [8, 32], strides = [1, 1]} : vector<8x128xf32> to vector<8x32xf32>
    %114 = arith.truncf %113 : vector<8x32xf32> to vector<8x32xbf16>
    %115 = vector.extract_strided_slice %39 {offsets = [0, 96], sizes = [8, 32], strides = [1, 1]} : vector<8x128xf32> to vector<8x32xf32>
    %116 = arith.truncf %115 : vector<8x32xf32> to vector<8x32xbf16>
    %117 = vector.extract_strided_slice %40 {offsets = [0, 96], sizes = [8, 32], strides = [1, 1]} : vector<8x128xf32> to vector<8x32xf32>
    %118 = arith.truncf %117 : vector<8x32xf32> to vector<8x32xbf16>
    "tpu.trace_start"() <{level = 10 : i32, message = "qd,kd->qk"}> : () -> ()
    %cst_40 = arith.constant dense<0.000000e+00> : vector<8x8xf32>
    %119 = tpu.matmul %114, %116, %cst_40 {dimension_numbers = #tpu.dot_dimension_numbers<[1], [1], [0], [0], [0, 0, 1, 0], [], []>} : vector<8x32xbf16>, vector<8x32xbf16>, vector<8x8xf32> -> vector<8x8xf32>
    "tpu.trace_stop"() : () -> ()
    %cst_41 = arith.constant 0.176776692 : f32
    %120 = vector.broadcast %cst_41 : f32 to vector<8x8xf32>
    %121 = arith.mulf %119, %120 : vector<8x8xf32>
    %cst_42 = arith.constant -3.40282347E+38 : f32
    %122 = vector.broadcast %cst_42 : f32 to vector<8x8xf32>
    %123 = arith.select %43, %121, %122 : vector<8x8xi1>, vector<8x8xf32>
    %cst_43 = arith.constant dense<0xFF800000> : vector<8xf32>
    %124 = vector.multi_reduction <maximumf>, %123, %cst_43 [1] : vector<8x8xf32> to vector<8xf32>
    %125 = vector.shape_cast %124 : vector<8xf32> to vector<8x1xf32>
    %126 = vector.broadcast %125 : vector<8x1xf32> to vector<8x8xf32>
    %127 = arith.subf %123, %126 : vector<8x8xf32>
    %128 = math.exp %127 : vector<8x8xf32>
    %cst_44 = arith.constant dense<0.000000e+00> : vector<8xf32>
    %129 = vector.multi_reduction <add>, %128, %cst_44 [1] : vector<8x8xf32> to vector<8xf32>
    %130 = vector.shape_cast %129 : vector<8xf32> to vector<8x1xf32>
    %131 = arith.truncf %128 : vector<8x8xf32> to vector<8x8xbf16>
    %cst_45 = arith.constant dense<0.000000e+00> : vector<8x32xf32>
    %132 = tpu.matmul %131, %118, %cst_45 {dimension_numbers = #tpu.dot_dimension_numbers<[1], [0], [0], [1], [0, 0, 1, 1], [], []>} : vector<8x8xbf16>, vector<8x32xbf16>, vector<8x32xf32> -> vector<8x32xf32>
    %133 = tpu.reciprocal %130 {approx = true} : vector<8x1xf32> -> vector<8x1xf32>
    %134 = vector.broadcast %133 : vector<8x1xf32> to vector<8x32xf32>
    %135 = arith.mulf %132, %134 : vector<8x32xf32>
    %136 = tpu.concatenate %66, %89, %112, %135 in 1 : vector<8x32xf32>, vector<8x32xf32>, vector<8x32xf32>, vector<8x32xf32> -> vector<8x128xf32>
    %137 = arith.truncf %136 : vector<8x128xf32> to vector<8x128xbf16>
    %c0_46 = arith.constant 0 : index
    %c0_47 = arith.constant 0 : index
    %c0_48 = arith.constant 0 : index
    %138 = vector.load %arg8[%c0_46, %c0_47, %c0_48] : memref<1x128x128xbf16, #tpu.memory_space<vmem>>, vector<1x128x128xbf16>
    %139 = vector.shape_cast %138 : vector<1x128x128xbf16> to vector<128x128xbf16>
    %cst_49 = arith.constant dense<0.000000e+00> : vector<8x128xf32>
    %140 = tpu.matmul %137, %139, %cst_49 {dimension_numbers = #tpu.dot_dimension_numbers<[1], [0], [0], [1], [0, 0, 1, 1], [], []>} : vector<8x128xbf16>, vector<128x128xbf16>, vector<8x128xf32> -> vector<8x128xf32>
    %c0_50 = arith.constant 0 : index
    %c0_51 = arith.constant 0 : index
    %c0_52 = arith.constant 0 : index
    %141 = vector.load %arg9[%c0_50, %c0_51, %c0_52] : memref<1x1x128xf32, #tpu.memory_space<vmem>>, vector<1x1x128xf32>
    %142 = vector.shape_cast %141 : vector<1x1x128xf32> to vector<1x128xf32>
    %143 = vector.broadcast %142 : vector<1x128xf32> to vector<8x128xf32>
    %144 = arith.addf %140, %143 : vector<8x128xf32>
    %145 = arith.addf %3, %144 : vector<8x128xf32>
    %c0_53 = arith.constant 0 : index
    %c0_54 = arith.constant 0 : index
    %c0_55 = arith.constant 0 : index
    %146 = vector.load %arg10[%c0_53, %c0_54, %c0_55] : memref<1x1x128xf32, #tpu.memory_space<vmem>>, vector<1x1x128xf32>
    %147 = vector.shape_cast %146 : vector<1x1x128xf32> to vector<1x128xf32>
    %c0_56 = arith.constant 0 : index
    %c0_57 = arith.constant 0 : index
    %c0_58 = arith.constant 0 : index
    %148 = vector.load %arg11[%c0_56, %c0_57, %c0_58] : memref<1x1x128xf32, #tpu.memory_space<vmem>>, vector<1x1x128xf32>
    %149 = vector.shape_cast %148 : vector<1x1x128xf32> to vector<1x128xf32>
    %cst_59 = arith.constant dense<0.000000e+00> : vector<8xf32>
    %150 = vector.multi_reduction <add>, %145, %cst_59 [1] : vector<8x128xf32> to vector<8xf32>
    %151 = vector.shape_cast %150 : vector<8xf32> to vector<8x1xf32>
    %cst_60 = arith.constant 1.280000e+02 : f32
    %152 = vector.broadcast %cst_60 : f32 to vector<8x1xf32>
    %153 = arith.divf %151, %152 : vector<8x1xf32>
    %154 = vector.broadcast %153 : vector<8x1xf32> to vector<8x128xf32>
    %155 = arith.subf %145, %154 : vector<8x128xf32>
    %156 = arith.mulf %155, %155 : vector<8x128xf32>
    %cst_61 = arith.constant dense<0.000000e+00> : vector<8xf32>
    %157 = vector.multi_reduction <add>, %156, %cst_61 [1] : vector<8x128xf32> to vector<8xf32>
    %158 = vector.shape_cast %157 : vector<8xf32> to vector<8x1xf32>
    %cst_62 = arith.constant 1.280000e+02 : f32
    %159 = vector.broadcast %cst_62 : f32 to vector<8x1xf32>
    %160 = arith.divf %158, %159 : vector<8x1xf32>
    %cst_63 = arith.constant 9.99999974E-6 : f32
    %161 = vector.broadcast %cst_63 : f32 to vector<8x1xf32>
    %162 = arith.addf %160, %161 : vector<8x1xf32>
    %163 = math.rsqrt %162 : vector<8x1xf32>
    %164 = vector.broadcast %163 : vector<8x1xf32> to vector<8x128xf32>
    %165 = arith.mulf %155, %164 : vector<8x128xf32>
    %166 = vector.broadcast %147 : vector<1x128xf32> to vector<8x128xf32>
    %167 = arith.mulf %165, %166 : vector<8x128xf32>
    %168 = vector.broadcast %149 : vector<1x128xf32> to vector<8x128xf32>
    %169 = arith.addf %167, %168 : vector<8x128xf32>
    %170 = arith.truncf %169 : vector<8x128xf32> to vector<8x128xbf16>
    %c0_64 = arith.constant 0 : index
    %c0_65 = arith.constant 0 : index
    %c0_66 = arith.constant 0 : index
    %171 = vector.load %arg12[%c0_64, %c0_65, %c0_66] : memref<1x128x128xbf16, #tpu.memory_space<vmem>>, vector<1x128x128xbf16>
    %172 = vector.shape_cast %171 : vector<1x128x128xbf16> to vector<128x128xbf16>
    %cst_67 = arith.constant dense<0.000000e+00> : vector<8x128xf32>
    %173 = tpu.matmul %170, %172, %cst_67 {dimension_numbers = #tpu.dot_dimension_numbers<[1], [0], [0], [1], [0, 0, 1, 1], [], []>} : vector<8x128xbf16>, vector<128x128xbf16>, vector<8x128xf32> -> vector<8x128xf32>
    %c0_68 = arith.constant 0 : index
    %c0_69 = arith.constant 0 : index
    %c0_70 = arith.constant 0 : index
    %174 = vector.load %arg13[%c0_68, %c0_69, %c0_70] : memref<1x1x128xf32, #tpu.memory_space<vmem>>, vector<1x1x128xf32>
    %175 = vector.shape_cast %174 : vector<1x1x128xf32> to vector<1x128xf32>
    %176 = vector.broadcast %175 : vector<1x128xf32> to vector<8x128xf32>
    %177 = arith.addf %173, %176 : vector<8x128xf32>
    %178 = arith.truncf %5 : vector<5x128xf32> to vector<5x128xbf16>
    %c0_71 = arith.constant 0 : index
    %c0_72 = arith.constant 0 : index
    %c0_73 = arith.constant 0 : index
    %179 = vector.load %arg14[%c0_71, %c0_72, %c0_73] : memref<1x128x256xbf16, #tpu.memory_space<vmem>>, vector<1x128x256xbf16>
    %180 = vector.shape_cast %179 : vector<1x128x256xbf16> to vector<128x256xbf16>
    %cst_74 = arith.constant dense<0.000000e+00> : vector<5x256xf32>
    %181 = tpu.matmul %178, %180, %cst_74 {dimension_numbers = #tpu.dot_dimension_numbers<[1], [0], [0], [1], [0, 0, 1, 1], [], []>} : vector<5x128xbf16>, vector<128x256xbf16>, vector<5x256xf32> -> vector<5x256xf32>
    %c0_75 = arith.constant 0 : index
    %c0_76 = arith.constant 0 : index
    %c0_77 = arith.constant 0 : index
    %182 = vector.load %arg15[%c0_75, %c0_76, %c0_77] : memref<1x1x256xf32, #tpu.memory_space<vmem>>, vector<1x1x256xf32>
    %183 = vector.shape_cast %182 : vector<1x1x256xf32> to vector<1x256xf32>
    %184 = vector.broadcast %183 : vector<1x256xf32> to vector<5x256xf32>
    %185 = arith.addf %181, %184 : vector<5x256xf32>
    %186 = vector.extract_strided_slice %185 {offsets = [0, 0], sizes = [5, 128], strides = [1, 1]} : vector<5x256xf32> to vector<5x128xf32>
    %187 = vector.extract_strided_slice %185 {offsets = [0, 128], sizes = [5, 128], strides = [1, 1]} : vector<5x256xf32> to vector<5x128xf32>
    %188 = vector.extract_strided_slice %177 {offsets = [0, 0], sizes = [8, 32], strides = [1, 1]} : vector<8x128xf32> to vector<8x32xf32>
    %189 = arith.truncf %188 : vector<8x32xf32> to vector<8x32xbf16>
    %190 = vector.extract_strided_slice %186 {offsets = [0, 0], sizes = [5, 32], strides = [1, 1]} : vector<5x128xf32> to vector<5x32xf32>
    %191 = arith.truncf %190 : vector<5x32xf32> to vector<5x32xbf16>
    %192 = vector.extract_strided_slice %187 {offsets = [0, 0], sizes = [5, 32], strides = [1, 1]} : vector<5x128xf32> to vector<5x32xf32>
    %193 = arith.truncf %192 : vector<5x32xf32> to vector<5x32xbf16>
    "tpu.trace_start"() <{level = 10 : i32, message = "qd,kd->qk"}> : () -> ()
    %cst_78 = arith.constant dense<0.000000e+00> : vector<8x5xf32>
    %194 = tpu.matmul %189, %191, %cst_78 {dimension_numbers = #tpu.dot_dimension_numbers<[1], [1], [0], [0], [0, 0, 1, 0], [], []>} : vector<8x32xbf16>, vector<5x32xbf16>, vector<8x5xf32> -> vector<8x5xf32>
    "tpu.trace_stop"() : () -> ()
    %cst_79 = arith.constant 0.176776692 : f32
    %195 = vector.broadcast %cst_79 : f32 to vector<8x5xf32>
    %196 = arith.mulf %194, %195 : vector<8x5xf32>
    %cst_80 = arith.constant dense<0xFF800000> : vector<8xf32>
    %197 = vector.multi_reduction <maximumf>, %196, %cst_80 [1] : vector<8x5xf32> to vector<8xf32>
    %198 = vector.shape_cast %197 : vector<8xf32> to vector<8x1xf32>
    %199 = vector.broadcast %198 : vector<8x1xf32> to vector<8x5xf32>
    %200 = arith.subf %196, %199 : vector<8x5xf32>
    %201 = math.exp %200 : vector<8x5xf32>
    %cst_81 = arith.constant dense<0.000000e+00> : vector<8xf32>
    %202 = vector.multi_reduction <add>, %201, %cst_81 [1] : vector<8x5xf32> to vector<8xf32>
    %203 = vector.shape_cast %202 : vector<8xf32> to vector<8x1xf32>
    %204 = arith.truncf %201 : vector<8x5xf32> to vector<8x5xbf16>
    %cst_82 = arith.constant dense<0.000000e+00> : vector<8x32xf32>
    %205 = tpu.matmul %204, %193, %cst_82 {dimension_numbers = #tpu.dot_dimension_numbers<[1], [0], [0], [1], [0, 0, 1, 1], [], []>} : vector<8x5xbf16>, vector<5x32xbf16>, vector<8x32xf32> -> vector<8x32xf32>
    %206 = tpu.reciprocal %203 {approx = true} : vector<8x1xf32> -> vector<8x1xf32>
    %207 = vector.broadcast %206 : vector<8x1xf32> to vector<8x32xf32>
    %208 = arith.mulf %205, %207 : vector<8x32xf32>
    %209 = vector.extract_strided_slice %177 {offsets = [0, 32], sizes = [8, 32], strides = [1, 1]} : vector<8x128xf32> to vector<8x32xf32>
    %210 = arith.truncf %209 : vector<8x32xf32> to vector<8x32xbf16>
    %211 = vector.extract_strided_slice %186 {offsets = [0, 32], sizes = [5, 32], strides = [1, 1]} : vector<5x128xf32> to vector<5x32xf32>
    %212 = arith.truncf %211 : vector<5x32xf32> to vector<5x32xbf16>
    %213 = vector.extract_strided_slice %187 {offsets = [0, 32], sizes = [5, 32], strides = [1, 1]} : vector<5x128xf32> to vector<5x32xf32>
    %214 = arith.truncf %213 : vector<5x32xf32> to vector<5x32xbf16>
    "tpu.trace_start"() <{level = 10 : i32, message = "qd,kd->qk"}> : () -> ()
    %cst_83 = arith.constant dense<0.000000e+00> : vector<8x5xf32>
    %215 = tpu.matmul %210, %212, %cst_83 {dimension_numbers = #tpu.dot_dimension_numbers<[1], [1], [0], [0], [0, 0, 1, 0], [], []>} : vector<8x32xbf16>, vector<5x32xbf16>, vector<8x5xf32> -> vector<8x5xf32>
    "tpu.trace_stop"() : () -> ()
    %cst_84 = arith.constant 0.176776692 : f32
    %216 = vector.broadcast %cst_84 : f32 to vector<8x5xf32>
    %217 = arith.mulf %215, %216 : vector<8x5xf32>
    %cst_85 = arith.constant dense<0xFF800000> : vector<8xf32>
    %218 = vector.multi_reduction <maximumf>, %217, %cst_85 [1] : vector<8x5xf32> to vector<8xf32>
    %219 = vector.shape_cast %218 : vector<8xf32> to vector<8x1xf32>
    %220 = vector.broadcast %219 : vector<8x1xf32> to vector<8x5xf32>
    %221 = arith.subf %217, %220 : vector<8x5xf32>
    %222 = math.exp %221 : vector<8x5xf32>
    %cst_86 = arith.constant dense<0.000000e+00> : vector<8xf32>
    %223 = vector.multi_reduction <add>, %222, %cst_86 [1] : vector<8x5xf32> to vector<8xf32>
    %224 = vector.shape_cast %223 : vector<8xf32> to vector<8x1xf32>
    %225 = arith.truncf %222 : vector<8x5xf32> to vector<8x5xbf16>
    %cst_87 = arith.constant dense<0.000000e+00> : vector<8x32xf32>
    %226 = tpu.matmul %225, %214, %cst_87 {dimension_numbers = #tpu.dot_dimension_numbers<[1], [0], [0], [1], [0, 0, 1, 1], [], []>} : vector<8x5xbf16>, vector<5x32xbf16>, vector<8x32xf32> -> vector<8x32xf32>
    %227 = tpu.reciprocal %224 {approx = true} : vector<8x1xf32> -> vector<8x1xf32>
    %228 = vector.broadcast %227 : vector<8x1xf32> to vector<8x32xf32>
    %229 = arith.mulf %226, %228 : vector<8x32xf32>
    %230 = vector.extract_strided_slice %177 {offsets = [0, 64], sizes = [8, 32], strides = [1, 1]} : vector<8x128xf32> to vector<8x32xf32>
    %231 = arith.truncf %230 : vector<8x32xf32> to vector<8x32xbf16>
    %232 = vector.extract_strided_slice %186 {offsets = [0, 64], sizes = [5, 32], strides = [1, 1]} : vector<5x128xf32> to vector<5x32xf32>
    %233 = arith.truncf %232 : vector<5x32xf32> to vector<5x32xbf16>
    %234 = vector.extract_strided_slice %187 {offsets = [0, 64], sizes = [5, 32], strides = [1, 1]} : vector<5x128xf32> to vector<5x32xf32>
    %235 = arith.truncf %234 : vector<5x32xf32> to vector<5x32xbf16>
    "tpu.trace_start"() <{level = 10 : i32, message = "qd,kd->qk"}> : () -> ()
    %cst_88 = arith.constant dense<0.000000e+00> : vector<8x5xf32>
    %236 = tpu.matmul %231, %233, %cst_88 {dimension_numbers = #tpu.dot_dimension_numbers<[1], [1], [0], [0], [0, 0, 1, 0], [], []>} : vector<8x32xbf16>, vector<5x32xbf16>, vector<8x5xf32> -> vector<8x5xf32>
    "tpu.trace_stop"() : () -> ()
    %cst_89 = arith.constant 0.176776692 : f32
    %237 = vector.broadcast %cst_89 : f32 to vector<8x5xf32>
    %238 = arith.mulf %236, %237 : vector<8x5xf32>
    %cst_90 = arith.constant dense<0xFF800000> : vector<8xf32>
    %239 = vector.multi_reduction <maximumf>, %238, %cst_90 [1] : vector<8x5xf32> to vector<8xf32>
    %240 = vector.shape_cast %239 : vector<8xf32> to vector<8x1xf32>
    %241 = vector.broadcast %240 : vector<8x1xf32> to vector<8x5xf32>
    %242 = arith.subf %238, %241 : vector<8x5xf32>
    %243 = math.exp %242 : vector<8x5xf32>
    %cst_91 = arith.constant dense<0.000000e+00> : vector<8xf32>
    %244 = vector.multi_reduction <add>, %243, %cst_91 [1] : vector<8x5xf32> to vector<8xf32>
    %245 = vector.shape_cast %244 : vector<8xf32> to vector<8x1xf32>
    %246 = arith.truncf %243 : vector<8x5xf32> to vector<8x5xbf16>
    %cst_92 = arith.constant dense<0.000000e+00> : vector<8x32xf32>
    %247 = tpu.matmul %246, %235, %cst_92 {dimension_numbers = #tpu.dot_dimension_numbers<[1], [0], [0], [1], [0, 0, 1, 1], [], []>} : vector<8x5xbf16>, vector<5x32xbf16>, vector<8x32xf32> -> vector<8x32xf32>
    %248 = tpu.reciprocal %245 {approx = true} : vector<8x1xf32> -> vector<8x1xf32>
    %249 = vector.broadcast %248 : vector<8x1xf32> to vector<8x32xf32>
    %250 = arith.mulf %247, %249 : vector<8x32xf32>
    %251 = vector.extract_strided_slice %177 {offsets = [0, 96], sizes = [8, 32], strides = [1, 1]} : vector<8x128xf32> to vector<8x32xf32>
    %252 = arith.truncf %251 : vector<8x32xf32> to vector<8x32xbf16>
    %253 = vector.extract_strided_slice %186 {offsets = [0, 96], sizes = [5, 32], strides = [1, 1]} : vector<5x128xf32> to vector<5x32xf32>
    %254 = arith.truncf %253 : vector<5x32xf32> to vector<5x32xbf16>
    %255 = vector.extract_strided_slice %187 {offsets = [0, 96], sizes = [5, 32], strides = [1, 1]} : vector<5x128xf32> to vector<5x32xf32>
    %256 = arith.truncf %255 : vector<5x32xf32> to vector<5x32xbf16>
    "tpu.trace_start"() <{level = 10 : i32, message = "qd,kd->qk"}> : () -> ()
    %cst_93 = arith.constant dense<0.000000e+00> : vector<8x5xf32>
    %257 = tpu.matmul %252, %254, %cst_93 {dimension_numbers = #tpu.dot_dimension_numbers<[1], [1], [0], [0], [0, 0, 1, 0], [], []>} : vector<8x32xbf16>, vector<5x32xbf16>, vector<8x5xf32> -> vector<8x5xf32>
    "tpu.trace_stop"() : () -> ()
    %cst_94 = arith.constant 0.176776692 : f32
    %258 = vector.broadcast %cst_94 : f32 to vector<8x5xf32>
    %259 = arith.mulf %257, %258 : vector<8x5xf32>
    %cst_95 = arith.constant dense<0xFF800000> : vector<8xf32>
    %260 = vector.multi_reduction <maximumf>, %259, %cst_95 [1] : vector<8x5xf32> to vector<8xf32>
    %261 = vector.shape_cast %260 : vector<8xf32> to vector<8x1xf32>
    %262 = vector.broadcast %261 : vector<8x1xf32> to vector<8x5xf32>
    %263 = arith.subf %259, %262 : vector<8x5xf32>
    %264 = math.exp %263 : vector<8x5xf32>
    %cst_96 = arith.constant dense<0.000000e+00> : vector<8xf32>
    %265 = vector.multi_reduction <add>, %264, %cst_96 [1] : vector<8x5xf32> to vector<8xf32>
    %266 = vector.shape_cast %265 : vector<8xf32> to vector<8x1xf32>
    %267 = arith.truncf %264 : vector<8x5xf32> to vector<8x5xbf16>
    %cst_97 = arith.constant dense<0.000000e+00> : vector<8x32xf32>
    %268 = tpu.matmul %267, %256, %cst_97 {dimension_numbers = #tpu.dot_dimension_numbers<[1], [0], [0], [1], [0, 0, 1, 1], [], []>} : vector<8x5xbf16>, vector<5x32xbf16>, vector<8x32xf32> -> vector<8x32xf32>
    %269 = tpu.reciprocal %266 {approx = true} : vector<8x1xf32> -> vector<8x1xf32>
    %270 = vector.broadcast %269 : vector<8x1xf32> to vector<8x32xf32>
    %271 = arith.mulf %268, %270 : vector<8x32xf32>
    %272 = tpu.concatenate %208, %229, %250, %271 in 1 : vector<8x32xf32>, vector<8x32xf32>, vector<8x32xf32>, vector<8x32xf32> -> vector<8x128xf32>
    %273 = arith.truncf %272 : vector<8x128xf32> to vector<8x128xbf16>
    %c0_98 = arith.constant 0 : index
    %c0_99 = arith.constant 0 : index
    %c0_100 = arith.constant 0 : index
    %274 = vector.load %arg16[%c0_98, %c0_99, %c0_100] : memref<1x128x128xbf16, #tpu.memory_space<vmem>>, vector<1x128x128xbf16>
    %275 = vector.shape_cast %274 : vector<1x128x128xbf16> to vector<128x128xbf16>
    %cst_101 = arith.constant dense<0.000000e+00> : vector<8x128xf32>
    %276 = tpu.matmul %273, %275, %cst_101 {dimension_numbers = #tpu.dot_dimension_numbers<[1], [0], [0], [1], [0, 0, 1, 1], [], []>} : vector<8x128xbf16>, vector<128x128xbf16>, vector<8x128xf32> -> vector<8x128xf32>
    %c0_102 = arith.constant 0 : index
    %c0_103 = arith.constant 0 : index
    %c0_104 = arith.constant 0 : index
    %277 = vector.load %arg17[%c0_102, %c0_103, %c0_104] : memref<1x1x128xf32, #tpu.memory_space<vmem>>, vector<1x1x128xf32>
    %278 = vector.shape_cast %277 : vector<1x1x128xf32> to vector<1x128xf32>
    %279 = vector.broadcast %278 : vector<1x128xf32> to vector<8x128xf32>
    %280 = arith.addf %276, %279 : vector<8x128xf32>
    %281 = arith.addf %145, %280 : vector<8x128xf32>
    %c0_105 = arith.constant 0 : index
    %c0_106 = arith.constant 0 : index
    %c0_107 = arith.constant 0 : index
    %282 = vector.load %arg18[%c0_105, %c0_106, %c0_107] : memref<1x1x128xf32, #tpu.memory_space<vmem>>, vector<1x1x128xf32>
    %283 = vector.shape_cast %282 : vector<1x1x128xf32> to vector<1x128xf32>
    %c0_108 = arith.constant 0 : index
    %c0_109 = arith.constant 0 : index
    %c0_110 = arith.constant 0 : index
    %284 = vector.load %arg19[%c0_108, %c0_109, %c0_110] : memref<1x1x128xf32, #tpu.memory_space<vmem>>, vector<1x1x128xf32>
    %285 = vector.shape_cast %284 : vector<1x1x128xf32> to vector<1x128xf32>
    %cst_111 = arith.constant dense<0.000000e+00> : vector<8xf32>
    %286 = vector.multi_reduction <add>, %281, %cst_111 [1] : vector<8x128xf32> to vector<8xf32>
    %287 = vector.shape_cast %286 : vector<8xf32> to vector<8x1xf32>
    %cst_112 = arith.constant 1.280000e+02 : f32
    %288 = vector.broadcast %cst_112 : f32 to vector<8x1xf32>
    %289 = arith.divf %287, %288 : vector<8x1xf32>
    %290 = vector.broadcast %289 : vector<8x1xf32> to vector<8x128xf32>
    %291 = arith.subf %281, %290 : vector<8x128xf32>
    %292 = arith.mulf %291, %291 : vector<8x128xf32>
    %cst_113 = arith.constant dense<0.000000e+00> : vector<8xf32>
    %293 = vector.multi_reduction <add>, %292, %cst_113 [1] : vector<8x128xf32> to vector<8xf32>
    %294 = vector.shape_cast %293 : vector<8xf32> to vector<8x1xf32>
    %cst_114 = arith.constant 1.280000e+02 : f32
    %295 = vector.broadcast %cst_114 : f32 to vector<8x1xf32>
    %296 = arith.divf %294, %295 : vector<8x1xf32>
    %cst_115 = arith.constant 9.99999974E-6 : f32
    %297 = vector.broadcast %cst_115 : f32 to vector<8x1xf32>
    %298 = arith.addf %296, %297 : vector<8x1xf32>
    %299 = math.rsqrt %298 : vector<8x1xf32>
    %300 = vector.broadcast %299 : vector<8x1xf32> to vector<8x128xf32>
    %301 = arith.mulf %291, %300 : vector<8x128xf32>
    %302 = vector.broadcast %283 : vector<1x128xf32> to vector<8x128xf32>
    %303 = arith.mulf %301, %302 : vector<8x128xf32>
    %304 = vector.broadcast %285 : vector<1x128xf32> to vector<8x128xf32>
    %305 = arith.addf %303, %304 : vector<8x128xf32>
    %306 = arith.truncf %305 : vector<8x128xf32> to vector<8x128xbf16>
    %c0_116 = arith.constant 0 : index
    %c0_117 = arith.constant 0 : index
    %c0_118 = arith.constant 0 : index
    %307 = vector.load %arg20[%c0_116, %c0_117, %c0_118] : memref<1x128x512xbf16, #tpu.memory_space<vmem>>, vector<1x128x512xbf16>
    %308 = vector.shape_cast %307 : vector<1x128x512xbf16> to vector<128x512xbf16>
    %cst_119 = arith.constant dense<0.000000e+00> : vector<8x512xf32>
    %309 = tpu.matmul %306, %308, %cst_119 {dimension_numbers = #tpu.dot_dimension_numbers<[1], [0], [0], [1], [0, 0, 1, 1], [], []>} : vector<8x128xbf16>, vector<128x512xbf16>, vector<8x512xf32> -> vector<8x512xf32>
    %c0_120 = arith.constant 0 : index
    %c0_121 = arith.constant 0 : index
    %c0_122 = arith.constant 0 : index
    %310 = vector.load %arg21[%c0_120, %c0_121, %c0_122] : memref<1x1x512xf32, #tpu.memory_space<vmem>>, vector<1x1x512xf32>
    %311 = vector.shape_cast %310 : vector<1x1x512xf32> to vector<1x512xf32>
    %312 = vector.broadcast %311 : vector<1x512xf32> to vector<8x512xf32>
    %313 = arith.addf %309, %312 : vector<8x512xf32>
    %cst_123 = arith.constant 5.000000e-01 : f32
    %314 = vector.broadcast %cst_123 : f32 to vector<8x512xf32>
    %315 = arith.mulf %314, %313 : vector<8x512xf32>
    %cst_124 = arith.constant 0.707106769 : f32
    %316 = vector.broadcast %cst_124 : f32 to vector<8x512xf32>
    %317 = arith.mulf %313, %316 : vector<8x512xf32>
    %cst_125 = arith.constant 0.000000e+00 : f32
    %318 = vector.broadcast %cst_125 : f32 to vector<8x512xf32>
    %319 = arith.cmpf oge, %317, %318 : vector<8x512xf32>
    %cst_126 = arith.constant 1.000000e+00 : f32
    %cst_127 = arith.constant -1.000000e+00 : f32
    %320 = vector.broadcast %cst_126 : f32 to vector<8x512xf32>
    %321 = vector.broadcast %cst_127 : f32 to vector<8x512xf32>
    %322 = arith.select %319, %320, %321 : vector<8x512xi1>, vector<8x512xf32>
    %323 = math.absf %317 : vector<8x512xf32>
    %cst_128 = arith.constant 0.327591091 : f32
    %324 = vector.broadcast %cst_128 : f32 to vector<8x512xf32>
    %325 = arith.mulf %324, %323 : vector<8x512xf32>
    %cst_129 = arith.constant 1.000000e+00 : f32
    %326 = vector.broadcast %cst_129 : f32 to vector<8x512xf32>
    %327 = arith.addf %326, %325 : vector<8x512xf32>
    %cst_130 = arith.constant 1.000000e+00 : f32
    %328 = vector.broadcast %cst_130 : f32 to vector<8x512xf32>
    %329 = arith.divf %328, %327 : vector<8x512xf32>
    %cst_131 = arith.constant 1.06140542 : f32
    %330 = vector.broadcast %cst_131 : f32 to vector<8x512xf32>
    %331 = arith.mulf %330, %329 : vector<8x512xf32>
    %cst_132 = arith.constant -1.45315206 : f32
    %332 = vector.broadcast %cst_132 : f32 to vector<8x512xf32>
    %333 = arith.addf %331, %332 : vector<8x512xf32>
    %334 = arith.mulf %333, %329 : vector<8x512xf32>
    %cst_133 = arith.constant 1.42141378 : f32
    %335 = vector.broadcast %cst_133 : f32 to vector<8x512xf32>
    %336 = arith.addf %334, %335 : vector<8x512xf32>
    %337 = arith.mulf %336, %329 : vector<8x512xf32>
    %cst_134 = arith.constant -0.284496725 : f32
    %338 = vector.broadcast %cst_134 : f32 to vector<8x512xf32>
    %339 = arith.addf %337, %338 : vector<8x512xf32>
    %340 = arith.mulf %339, %329 : vector<8x512xf32>
    %cst_135 = arith.constant 0.254829586 : f32
    %341 = vector.broadcast %cst_135 : f32 to vector<8x512xf32>
    %342 = arith.addf %340, %341 : vector<8x512xf32>
    %343 = arith.mulf %342, %329 : vector<8x512xf32>
    %cst_136 = arith.constant 0.000000e+00 : f32
    %344 = vector.broadcast %cst_136 : f32 to vector<8x512xf32>
    %345 = arith.subf %344, %323 : vector<8x512xf32>
    %346 = arith.mulf %345, %323 : vector<8x512xf32>
    %347 = math.exp %346 : vector<8x512xf32>
    %348 = arith.mulf %343, %347 : vector<8x512xf32>
    %cst_137 = arith.constant 1.000000e+00 : f32
    %349 = vector.broadcast %cst_137 : f32 to vector<8x512xf32>
    %350 = arith.subf %349, %348 : vector<8x512xf32>
    %351 = arith.mulf %322, %350 : vector<8x512xf32>
    %cst_138 = arith.constant 1.000000e+00 : f32
    %352 = vector.broadcast %cst_138 : f32 to vector<8x512xf32>
    %353 = arith.addf %352, %351 : vector<8x512xf32>
    %354 = arith.mulf %315, %353 : vector<8x512xf32>
    %355 = arith.truncf %354 : vector<8x512xf32> to vector<8x512xbf16>
    %c0_139 = arith.constant 0 : index
    %c0_140 = arith.constant 0 : index
    %c0_141 = arith.constant 0 : index
    %356 = vector.load %arg22[%c0_139, %c0_140, %c0_141] : memref<1x512x128xbf16, #tpu.memory_space<vmem>>, vector<1x512x128xbf16>
    %357 = vector.shape_cast %356 : vector<1x512x128xbf16> to vector<512x128xbf16>
    %cst_142 = arith.constant dense<0.000000e+00> : vector<8x128xf32>
    %358 = tpu.matmul %355, %357, %cst_142 {dimension_numbers = #tpu.dot_dimension_numbers<[1], [0], [0], [1], [0, 0, 1, 1], [], []>} : vector<8x512xbf16>, vector<512x128xbf16>, vector<8x128xf32> -> vector<8x128xf32>
    %c0_143 = arith.constant 0 : index
    %c0_144 = arith.constant 0 : index
    %c0_145 = arith.constant 0 : index
    %359 = vector.load %arg23[%c0_143, %c0_144, %c0_145] : memref<1x1x128xf32, #tpu.memory_space<vmem>>, vector<1x1x128xf32>
    %360 = vector.shape_cast %359 : vector<1x1x128xf32> to vector<1x128xf32>
    %361 = vector.broadcast %360 : vector<1x128xf32> to vector<8x128xf32>
    %362 = arith.addf %358, %361 : vector<8x128xf32>
    %363 = arith.addf %281, %362 : vector<8x128xf32>
    %c0_146 = arith.constant 0 : index
    %c0_147 = arith.constant 0 : index
    %364 = vector.load %arg29[%c0_146, %c0_147] : memref<8x128xf32, #tpu.memory_space<vmem>>, vector<8x128xf32>
    tpu.vector_store %arg29[%c0_146, %c0_147], %363 {strides = array<i32>} : memref<8x128xf32, #tpu.memory_space<vmem>>, vector<8x128xf32>,
    %c1_i32 = arith.constant 1 : i32
    %365 = arith.cmpi eq, %arg1, %c1_i32 : i32
    %366 = arith.extui %365 : i1 to i32
    %c0_i32_148 = arith.constant 0 : i32
    %367 = arith.cmpi ne, %366, %c0_i32_148 : i32
    scf.if %367 {
      %c0_149 = arith.constant 0 : index
      %c0_150 = arith.constant 0 : index
      %368 = vector.load %arg24[%c0_149, %c0_150] : memref<1x128xf32, #tpu.memory_space<vmem>>, vector<1x128xf32>
      %c0_151 = arith.constant 0 : index
      %c0_152 = arith.constant 0 : index
      %369 = vector.load %arg25[%c0_151, %c0_152] : memref<1x128xf32, #tpu.memory_space<vmem>>, vector<1x128xf32>
      %cst_153 = arith.constant dense<0.000000e+00> : vector<8xf32>
      %370 = vector.multi_reduction <add>, %363, %cst_153 [1] : vector<8x128xf32> to vector<8xf32>
      %371 = vector.shape_cast %370 : vector<8xf32> to vector<8x1xf32>
      %cst_154 = arith.constant 1.280000e+02 : f32
      %372 = vector.broadcast %cst_154 : f32 to vector<8x1xf32>
      %373 = arith.divf %371, %372 : vector<8x1xf32>
      %374 = vector.broadcast %373 : vector<8x1xf32> to vector<8x128xf32>
      %375 = arith.subf %363, %374 : vector<8x128xf32>
      %376 = arith.mulf %375, %375 : vector<8x128xf32>
      %cst_155 = arith.constant dense<0.000000e+00> : vector<8xf32>
      %377 = vector.multi_reduction <add>, %376, %cst_155 [1] : vector<8x128xf32> to vector<8xf32>
      %378 = vector.shape_cast %377 : vector<8xf32> to vector<8x1xf32>
      %cst_156 = arith.constant 1.280000e+02 : f32
      %379 = vector.broadcast %cst_156 : f32 to vector<8x1xf32>
      %380 = arith.divf %378, %379 : vector<8x1xf32>
      %cst_157 = arith.constant 9.99999974E-6 : f32
      %381 = vector.broadcast %cst_157 : f32 to vector<8x1xf32>
      %382 = arith.addf %380, %381 : vector<8x1xf32>
      %383 = math.rsqrt %382 : vector<8x1xf32>
      %384 = vector.broadcast %383 : vector<8x1xf32> to vector<8x128xf32>
      %385 = arith.mulf %375, %384 : vector<8x128xf32>
      %386 = vector.broadcast %368 : vector<1x128xf32> to vector<8x128xf32>
      %387 = arith.mulf %385, %386 : vector<8x128xf32>
      %388 = vector.broadcast %369 : vector<1x128xf32> to vector<8x128xf32>
      %389 = arith.addf %387, %388 : vector<8x128xf32>
      %390 = arith.truncf %389 : vector<8x128xf32> to vector<8x128xbf16>
      %c0_158 = arith.constant 0 : index
      %c0_159 = arith.constant 0 : index
      %391 = vector.load %arg26[%c0_158, %c0_159] : memref<128x128xbf16, #tpu.memory_space<vmem>>, vector<128x128xbf16>
      %cst_160 = arith.constant dense<0.000000e+00> : vector<8x128xf32>
      %392 = tpu.matmul %390, %391, %cst_160 {dimension_numbers = #tpu.dot_dimension_numbers<[1], [0], [0], [1], [0, 0, 1, 1], [], []>} : vector<8x128xbf16>, vector<128x128xbf16>, vector<8x128xf32> -> vector<8x128xf32>
      %c0_161 = arith.constant 0 : index
      %c0_162 = arith.constant 0 : index
      %393 = vector.load %arg27[%c0_161, %c0_162] : memref<1x128xf32, #tpu.memory_space<vmem>>, vector<1x128xf32>
      %394 = vector.broadcast %393 : vector<1x128xf32> to vector<8x128xf32>
      %395 = arith.addf %392, %394 : vector<8x128xf32>
      %c0_163 = arith.constant 0 : index
      %c0_164 = arith.constant 0 : index
      %c0_165 = arith.constant 0 : index
      %396 = vector.load %arg28[%c0_163, %c0_164, %c0_165] : memref<1x8x128xf32, #tpu.memory_space<vmem>>, vector<1x8x128xf32>
      %397 = vector.shape_cast %396 : vector<1x8x128xf32> to vector<8x128xf32>
      %398 = vector.shape_cast %395 : vector<8x128xf32> to vector<1x8x128xf32>
      tpu.vector_store %arg28[%c0_163, %c0_164, %c0_165], %398 {strides = array<i32>} : memref<1x8x128xf32, #tpu.memory_space<vmem>>, vector<1x8x128xf32>,
    } else {
    }
    return
  }
  func.func @transform_0(%arg0: i32, %arg1: i32) -> (i32, i32, i32) {
    %c0_i32 = arith.constant 0 : i32
    %c0_i32_0 = arith.constant 0 : i32
    %c0_i32_1 = arith.constant 0 : i32
    return %arg0, %c0_i32, %c0_i32_0 : i32, i32, i32
  }
  func.func @transform_1(%arg0: i32, %arg1: i32) -> (i32, i32, i32) {
    %c0_i32 = arith.constant 0 : i32
    %c0_i32_0 = arith.constant 0 : i32
    %c0_i32_1 = arith.constant 0 : i32
    return %arg0, %c0_i32, %c0_i32_0 : i32, i32, i32
  }
  func.func @transform_2(%arg0: i32, %arg1: i32) -> (i32, i32, i32) {
    %c0_i32 = arith.constant 0 : i32
    %c0_i32_0 = arith.constant 0 : i32
    %c0_i32_1 = arith.constant 0 : i32
    return %arg1, %c0_i32, %c0_i32_0 : i32, i32, i32
  }
  func.func @transform_3(%arg0: i32, %arg1: i32) -> (i32, i32, i32) {
    %c0_i32 = arith.constant 0 : i32
    %c0_i32_0 = arith.constant 0 : i32
    %c0_i32_1 = arith.constant 0 : i32
    return %arg1, %c0_i32, %c0_i32_0 : i32, i32, i32
  }
  func.func @transform_4(%arg0: i32, %arg1: i32) -> (i32, i32, i32) {
    %c0_i32 = arith.constant 0 : i32
    %c0_i32_0 = arith.constant 0 : i32
    %c0_i32_1 = arith.constant 0 : i32
    return %arg1, %c0_i32, %c0_i32_0 : i32, i32, i32
  }
  func.func @transform_5(%arg0: i32, %arg1: i32) -> (i32, i32, i32) {
    %c0_i32 = arith.constant 0 : i32
    %c0_i32_0 = arith.constant 0 : i32
    %c0_i32_1 = arith.constant 0 : i32
    return %arg1, %c0_i32, %c0_i32_0 : i32, i32, i32
  }
  func.func @transform_6(%arg0: i32, %arg1: i32) -> (i32, i32, i32) {
    %c0_i32 = arith.constant 0 : i32
    %c0_i32_0 = arith.constant 0 : i32
    %c0_i32_1 = arith.constant 0 : i32
    return %arg1, %c0_i32, %c0_i32_0 : i32, i32, i32
  }
  func.func @transform_7(%arg0: i32, %arg1: i32) -> (i32, i32, i32) {
    %c0_i32 = arith.constant 0 : i32
    %c0_i32_0 = arith.constant 0 : i32
    %c0_i32_1 = arith.constant 0 : i32
    return %arg1, %c0_i32, %c0_i32_0 : i32, i32, i32
  }
  func.func @transform_8(%arg0: i32, %arg1: i32) -> (i32, i32, i32) {
    %c0_i32 = arith.constant 0 : i32
    %c0_i32_0 = arith.constant 0 : i32
    %c0_i32_1 = arith.constant 0 : i32
    return %arg1, %c0_i32, %c0_i32_0 : i32, i32, i32
  }
  func.func @transform_9(%arg0: i32, %arg1: i32) -> (i32, i32, i32) {
    %c0_i32 = arith.constant 0 : i32
    %c0_i32_0 = arith.constant 0 : i32
    %c0_i32_1 = arith.constant 0 : i32
    return %arg1, %c0_i32, %c0_i32_0 : i32, i32, i32
  }
  func.func @transform_10(%arg0: i32, %arg1: i32) -> (i32, i32, i32) {
    %c0_i32 = arith.constant 0 : i32
    %c0_i32_0 = arith.constant 0 : i32
    %c0_i32_1 = arith.constant 0 : i32
    return %arg1, %c0_i32, %c0_i32_0 : i32, i32, i32
  }
  func.func @transform_11(%arg0: i32, %arg1: i32) -> (i32, i32, i32) {
    %c0_i32 = arith.constant 0 : i32
    %c0_i32_0 = arith.constant 0 : i32
    %c0_i32_1 = arith.constant 0 : i32
    return %arg1, %c0_i32, %c0_i32_0 : i32, i32, i32
  }
  func.func @transform_12(%arg0: i32, %arg1: i32) -> (i32, i32, i32) {
    %c0_i32 = arith.constant 0 : i32
    %c0_i32_0 = arith.constant 0 : i32
    %c0_i32_1 = arith.constant 0 : i32
    return %arg1, %c0_i32, %c0_i32_0 : i32, i32, i32
  }
  func.func @transform_13(%arg0: i32, %arg1: i32) -> (i32, i32, i32) {
    %c0_i32 = arith.constant 0 : i32
    %c0_i32_0 = arith.constant 0 : i32
    %c0_i32_1 = arith.constant 0 : i32
    return %arg1, %c0_i32, %c0_i32_0 : i32, i32, i32
  }
  func.func @transform_14(%arg0: i32, %arg1: i32) -> (i32, i32, i32) {
    %c0_i32 = arith.constant 0 : i32
    %c0_i32_0 = arith.constant 0 : i32
    %c0_i32_1 = arith.constant 0 : i32
    return %arg1, %c0_i32, %c0_i32_0 : i32, i32, i32
  }
  func.func @transform_15(%arg0: i32, %arg1: i32) -> (i32, i32, i32) {
    %c0_i32 = arith.constant 0 : i32
    %c0_i32_0 = arith.constant 0 : i32
    %c0_i32_1 = arith.constant 0 : i32
    return %arg1, %c0_i32, %c0_i32_0 : i32, i32, i32
  }
  func.func @transform_16(%arg0: i32, %arg1: i32) -> (i32, i32, i32) {
    %c0_i32 = arith.constant 0 : i32
    %c0_i32_0 = arith.constant 0 : i32
    %c0_i32_1 = arith.constant 0 : i32
    return %arg1, %c0_i32, %c0_i32_0 : i32, i32, i32
  }
  func.func @transform_17(%arg0: i32, %arg1: i32) -> (i32, i32, i32) {
    %c0_i32 = arith.constant 0 : i32
    %c0_i32_0 = arith.constant 0 : i32
    %c0_i32_1 = arith.constant 0 : i32
    return %arg1, %c0_i32, %c0_i32_0 : i32, i32, i32
  }
  func.func @transform_18(%arg0: i32, %arg1: i32) -> (i32, i32, i32) {
    %c0_i32 = arith.constant 0 : i32
    %c0_i32_0 = arith.constant 0 : i32
    %c0_i32_1 = arith.constant 0 : i32
    return %arg1, %c0_i32, %c0_i32_0 : i32, i32, i32
  }
  func.func @transform_19(%arg0: i32, %arg1: i32) -> (i32, i32, i32) {
    %c0_i32 = arith.constant 0 : i32
    %c0_i32_0 = arith.constant 0 : i32
    %c0_i32_1 = arith.constant 0 : i32
    return %arg1, %c0_i32, %c0_i32_0 : i32, i32, i32
  }
  func.func @transform_20(%arg0: i32, %arg1: i32) -> (i32, i32, i32) {
    %c0_i32 = arith.constant 0 : i32
    %c0_i32_0 = arith.constant 0 : i32
    %c0_i32_1 = arith.constant 0 : i32
    return %arg1, %c0_i32, %c0_i32_0 : i32, i32, i32
  }
  func.func @transform_21(%arg0: i32, %arg1: i32) -> (i32, i32, i32) {
    %c0_i32 = arith.constant 0 : i32
    %c0_i32_0 = arith.constant 0 : i32
    %c0_i32_1 = arith.constant 0 : i32
    return %arg1, %c0_i32, %c0_i32_0 : i32, i32, i32
  }
  func.func @transform_22(%arg0: i32, %arg1: i32) -> (i32, i32) {
    %c0_i32 = arith.constant 0 : i32
    %c0_i32_0 = arith.constant 0 : i32
    %c0_i32_1 = arith.constant 0 : i32
    return %c0_i32, %c0_i32_0 : i32, i32
  }
  func.func @transform_23(%arg0: i32, %arg1: i32) -> (i32, i32) {
    %c0_i32 = arith.constant 0 : i32
    %c0_i32_0 = arith.constant 0 : i32
    %c0_i32_1 = arith.constant 0 : i32
    return %c0_i32, %c0_i32_0 : i32, i32
  }
  func.func @transform_24(%arg0: i32, %arg1: i32) -> (i32, i32) {
    %c0_i32 = arith.constant 0 : i32
    %c0_i32_0 = arith.constant 0 : i32
    %c0_i32_1 = arith.constant 0 : i32
    return %c0_i32, %c0_i32_0 : i32, i32
  }
  func.func @transform_25(%arg0: i32, %arg1: i32) -> (i32, i32) {
    %c0_i32 = arith.constant 0 : i32
    %c0_i32_0 = arith.constant 0 : i32
    %c0_i32_1 = arith.constant 0 : i32
    return %c0_i32, %c0_i32_0 : i32, i32
  }
  func.func @transform_26(%arg0: i32, %arg1: i32) -> (i32, i32, i32) {
    %c0_i32 = arith.constant 0 : i32
    %c0_i32_0 = arith.constant 0 : i32
    %c0_i32_1 = arith.constant 0 : i32
    return %arg0, %c0_i32, %c0_i32_0 : i32, i32, i32
  }
}

</mosaic_0001>

<bundles_post_ra>
// kernel: vit_encoder_decoder_forward.3
= control target key start
LH: loop header
LB: loop body
LE: loop exit
PB: predicated region body
PF: predicated region fallthrough
CT: control target
= control target key end

     0   :  { %s894_s1 = inlined_call_operand.vmem [shape: bf16[768,128], index: 1, kind: input, shape index: {}]   ;;  %s895_s0 = inlined_call_operand.vmem [shape: f32[8,768], index: 0, kind: input, shape index: {}]   ;;  %s896_s2 = inlined_call_operand.vmem [shape: f32[1,128], index: 2, kind: input, shape index: {}]   ;;  %s897_s3 = inlined_call_operand.vmem [shape: f32[8,128], index: 3, kind: output, shape index: {}]  }
   0x1   :  { %v658_v0 = vld [vmem:[%s894_s1 + $0x78] sm:$0xff]   ;;  %v662_v4 = vld [vmem:[%s894_s1 + $0x70] sm:$0xff]   ;;  %v666_v8 = vld [vmem:[%s894_s1 + $0x68] sm:$0xff]  }
   0x2   :  { %v659_v1 = vld [vmem:[%s894_s1 + $0x38] sm:$0xff]   ;;  %592 = vmatprep.subr.bf16.mxu0 %v658_v0  ;;  %v663_v5 = vld [vmem:[%s894_s1 + $0x30] sm:$0xff]   ;;  %v667_v9 = vld [vmem:[%s894_s1 + $0x28] sm:$0xff]  }
   0x3   :  { %v660_v2 = vld [vmem:[%s894_s1 + $0xf8] sm:$0xff]   ;;  %593 = vmatpush3.bf16.msra.mxu0 %v659_v1  ;;  %v664_v6 = vld [vmem:[%s894_s1 + $0xf0] sm:$0xff]   ;;  %v668_v10 = vld [vmem:[%s894_s1 + $0xe8] sm:$0xff]  }
   0x4   :  { %v661_v3 = vld [vmem:[%s894_s1 + $0xb8] sm:$0xff]   ;;  %614 = vmatprep.subr.bf16.mxu1 %v660_v2  ;;  %594 = vmatprep.subr.bf16.mxu0 %v662_v4  ;;  %v665_v7 = vld [vmem:[%s894_s1 + $0xb0] sm:$0xff]   ;;  %v669_v11 = vld [vmem:[%s894_s1 + $0xa8] sm:$0xff]  }
   0x5   :  { %615 = vmatpush3.bf16.msra.mxu1 %v661_v3  ;;  %v670_v12 = vld [vmem:[%s894_s1 + $0x60] sm:$0xff]   ;;  %v674_v16 = vld [vmem:[%s894_s1 + $0x58] sm:$0xff]   ;;  %v678_v20 = vld [vmem:[%s894_s1 + $0x50] sm:$0xff]  }
   0x6   :  { %616 = vmatprep.subr.bf16.mxu1 %v664_v6  ;;  %v671_v13 = vld [vmem:[%s894_s1 + $0x20] sm:$0xff]   ;;  %v675_v17 = vld [vmem:[%s894_s1 + $0x18] sm:$0xff]   ;;  %v679_v21 = vld [vmem:[%s894_s1 + $0x10] sm:$0xff]  }
   0x7   :  { %595 = vmatpush3.bf16.msra.mxu0 %v663_v5  ;;  %v672_v14 = vld [vmem:[%s894_s1 + $0xe0] sm:$0xff]   ;;  %v676_v18 = vld [vmem:[%s894_s1 + $0xd8] sm:$0xff]   ;;  %v680_v22 = vld [vmem:[%s894_s1 + $0xd0] sm:$0xff]  }
   0x8   :  { %596 = vmatprep.subr.bf16.mxu0 %v666_v8  ;;  %v673_v15 = vld [vmem:[%s894_s1 + $0xa0] sm:$0xff]   ;;  %v677_v19 = vld [vmem:[%s894_s1 + $0x98] sm:$0xff]   ;;  %v681_v23 = vld [vmem:[%s894_s1 + $0x90] sm:$0xff]  }
   0x9   :  { %617 = vmatpush3.bf16.msra.mxu1 %v665_v7  ;;  %v682_v24 = vld [vmem:[%s894_s1 + $0x48] sm:$0xff]   ;;  %v686_v28 = vld [vmem:[%s894_s1 + $0x40] sm:$0xff]   ;;  %v690_v36 = vld [vmem:[%s894_s1 + $0x178] sm:$0xff]  }
   0xa   :  { %618 = vmatprep.subr.bf16.mxu1 %v668_v10  ;;  %v683_v25 = vld [vmem:[%s894_s1 + $0x8] sm:$0xff]   ;;  %v687_v29 = vld [vmem:[%s894_s1] sm:$0xff]   ;;  %v18_v37 = vld [vmem:[%s895_s0 + $0x18] sm:$0xff] }
   0xb   :  { %597 = vmatpush3.bf16.msra.mxu0 %v667_v9  ;;  %v684_v26 = vld [vmem:[%s894_s1 + $0xc8] sm:$0xff]   ;;  %v688_v30 = vld [vmem:[%s894_s1 + $0xc0] sm:$0xff]   ;;  %v24_v38 = vpack.c.bf16 %v18_v37, %v18_v37  ;;  %v691_v39 = vld [vmem:[%s894_s1 + $0x138] sm:$0xff]  }
   0xc   :  { %598 = vmatprep.subr.bf16.mxu0 %v670_v12  ;;  %v685_v27 = vld [vmem:[%s894_s1 + $0x88] sm:$0xff]   ;;  %v689_v33 = vld [vmem:[%s894_s1 + $0x80] sm:$0xff]   ;;  %v17_v40 = vld [vmem:[%s895_s0 + $0x10] sm:$0xff] }
   0xd   :  { %619 = vmatpush3.bf16.msra.mxu1 %v669_v11  ;;  %v16_v31 = vld [vmem:[%s895_s0 + $0x8] sm:$0xff]  ;;  %v15_v34 = vld [vmem:[%s895_s0] sm:$0xff]  ;;  %490 = vmatprep.mubr.bf16.mxu1 %v24_v38  ;;  %v23_v41 = vpack.c.bf16 %v17_v40, %v17_v40  ;;  %v692_v42 = vld [vmem:[%s894_s1 + $0x170] sm:$0xff]  }
   0xe   :  { %620 = vmatprep.subr.bf16.mxu1 %v672_v14  ;;  %v22_v32 = vpack.c.bf16 %v16_v31, %v16_v31  ;;  %v21_v35 = vpack.c.bf16 %v15_v34, %v15_v34  ;;  %v693_v43 = vld [vmem:[%s894_s1 + $0x130] sm:$0xff]   ;;  %v694_v44 = vld [vmem:[%s894_s1 + $0x168] sm:$0xff]   ;;  %v696_v46 = vld [vmem:[%s894_s1 + $0x160] sm:$0xff]  }
   0xf   :  { %599 = vmatpush3.bf16.msra.mxu0 %v671_v13  ;;  %v695_v45 = vld [vmem:[%s894_s1 + $0x128] sm:$0xff]   ;;  %v697_v47 = vld [vmem:[%s894_s1 + $0x120] sm:$0xff]   ;;  %v698_v48 = vld [vmem:[%s894_s1 + $0x158] sm:$0xff]  }
  0x10   :  { %600 = vmatprep.subr.bf16.mxu0 %v674_v16  ;;  %450 = vmatprep.mubr.bf16.mxu0 %v22_v32  ;;  %v699_v49 = vld [vmem:[%s894_s1 + $0x118] sm:$0xff]   ;;  %v700_v50 = vld [vmem:[%s894_s1 + $0x150] sm:$0xff]   ;;  %v20_v51 = vld [vmem:[%s895_s0 + $0x28] sm:$0xff] }
  0x11   :  { %621 = vmatpush3.bf16.msra.mxu1 %v673_v15  ;;  %v26_v52 = vpack.c.bf16 %v20_v51, %v20_v51  ;;  %v701_v53 = vld [vmem:[%s894_s1 + $0x110] sm:$0xff]   ;;  %v702_v54 = vld [vmem:[%s894_s1 + $0x148] sm:$0xff]   ;;  %v704_v56 = vld [vmem:[%s894_s1 + $0x140] sm:$0xff]  }
  0x12   :  { %622 = vmatprep.subr.bf16.mxu1 %v676_v18  ;;  %v703_v55 = vld [vmem:[%s894_s1 + $0x108] sm:$0xff]   ;;  %v705_v57 = vld [vmem:[%s894_s1 + $0x100] sm:$0xff]  }
  0x13   :  { %601 = vmatpush3.bf16.msra.mxu0 %v675_v17  ;;  %v19_v58 = vld [vmem:[%s895_s0 + $0x20] sm:$0xff] }
  0x14   :  { %602 = vmatprep.subr.bf16.mxu0 %v678_v20  ;;  %v25_v59 = vpack.c.bf16 %v19_v58, %v19_v58  ;;  %v543_v5 = vld [vmem:[%s896_s2] ss:$0 sm:$0xff] }
  0x15   :  { %623 = vmatpush3.bf16.msra.mxu1 %v677_v19 }
  0x16   :  { %624 = vmatprep.subr.bf16.mxu1 %v680_v22 }
  0x17   :  { %603 = vmatpush3.bf16.msra.mxu0 %v679_v21 }
  0x18   :  { %604 = vmatprep.subr.bf16.mxu0 %v682_v24 }
  0x19   :  { %625 = vmatpush3.bf16.msra.mxu1 %v681_v23 }
  0x1a   :  { %626 = vmatprep.subr.bf16.mxu1 %v684_v26 }
  0x1b   :  { %605 = vmatpush3.bf16.msra.mxu0 %v683_v25 }
  0x1c   :  { %606 = vmatprep.subr.bf16.mxu0 %v686_v28 }
  0x1d   :  { %627 = vmatpush3.bf16.msra.mxu1 %v685_v27 }
  0x1e   :  { %628 = vmatprep.subr.bf16.mxu1 %v688_v30 }
  0x1f   :  { %607 = vmatpush3.bf16.msra.mxu0 %v687_v29 }
  0x20   :  { %636 = vmatprep.subr.bf16.mxu0 %v690_v36 }
  0x21   :  { %629 = vmatpush3.bf16.msra.mxu1 %v689_v33 }
  0x22   :  { %451 = vmatmul.mubr.bf16.vlgmr.msra.gmra.mxu0 %v21_v35 }
  0x23   :  { %637 = vmatpush3.bf16.msra.mxu0 %v691_v39  ;;  %530 = vmatprep.mubr.bf16.mxu0 %v26_v52 }
  0x24   :  { %491 = vmatmul.mubr.bf16.vlgmr.msra.gmra.mxu1 %v23_v41  ;;  %638 = vmatprep.subr.bf16.mxu0 %v692_v42 }
  0x27   :  { %639 = vmatpush3.bf16.msra.mxu0 %v693_v43 }
  0x28   :  { %640 = vmatprep.subr.bf16.mxu0 %v694_v44 }
  0x2b   :  { %641 = vmatpush3.bf16.msra.mxu0 %v695_v45 }
  0x2c   :  { %642 = vmatprep.subr.bf16.mxu0 %v696_v46 }
  0x2f   :  { %643 = vmatpush3.bf16.msra.mxu0 %v697_v47 }
  0x30   :  { %644 = vmatprep.subr.bf16.mxu0 %v698_v48 }
  0x33   :  { %645 = vmatpush3.bf16.msra.mxu0 %v699_v49 }
  0x34   :  { %646 = vmatprep.subr.bf16.mxu0 %v700_v50 }
  0x37   :  { %647 = vmatpush3.bf16.msra.mxu0 %v701_v53 }
  0x38   :  { %648 = vmatprep.subr.bf16.mxu0 %v702_v54 }
  0x3b   :  { %649 = vmatpush3.bf16.msra.mxu0 %v703_v55 }
  0x3c   :  { %650 = vmatprep.subr.bf16.mxu0 %v704_v56 }
  0x3f   :  { %651 = vmatpush3.bf16.msra.mxu0 %v705_v57 }
  0x42   :  { %531 = vmatmul.mubr.bf16.vlgmr.msra.gmra.mxu0 %v25_v59 }
  0xe2   :  { %v608_v60 = vpop.f32.mrf.mxu0 }
  0xe4   :  { %v609_v61 = vpop.f32.mrf.mxu0  ;;  %v630_v62 = vpop.f32.mrf.mxu1 }
  0xe5   :  { %v610_v4 = vadd.f32 %v609_v61, %v608_v60 }
  0xe6   :  { %v611_v63 = vpop.f32.mrf.mxu0  ;;  %v631_v0 = vpop.f32.mrf.mxu1 }
  0xe7   :  { %v453_v6 = vadd.f32 %v610_v4, %v543_v5  ;;  %v632_v7 = vadd.f32 %v631_v0, %v630_v62 }
  0xe8   :  { %v612_v1 = vpop.f32.mrf.mxu0  ;;  %v633_v2 = vpop.f32.mrf.mxu1 }
  0xe9   :  { %v493_v10 = vadd.f32 %v632_v7, %v453_v6 }
  0xea   :  { %v634_v3 = vpop.f32.mrf.mxu1 }
 0x102   :  { %v652_v8 = vpop.f32.mrf.mxu0 }
 0x104   :  { %v653_v9 = vpop.f32.mrf.mxu0 }
 0x105   :  { %v654_v11 = vadd.f32 %v653_v9, %v652_v8 }
 0x106   :  { %v655_v12 = vpop.f32.mrf.mxu0 }
 0x107   :  { %v533_v13 = vadd.f32 %v654_v11, %v493_v10 }
 0x108   :  { %v656_v14 = vpop.f32.mrf.mxu0 }
 0x109   :  { %538 = vst [vmem:[%s897_s3] sm:$0xff] %v533_v13 }

// kernel: vit_encoder_decoder_forward.4
= control target key start
LH: loop header
LB: loop body
LE: loop exit
PB: predicated region body
PF: predicated region fallthrough
CT: control target
= control target key end

     0   :  { %s3736_s0 = inlined_call_operand.vmem [shape: f32[2,5,128], index: 0, kind: input, shape index: {}]   ;;  %s3737_s1 = inlined_call_operand.vmem [shape: f32[2,1,128], index: 1, kind: input, shape index: {}]   ;;  %s3738_s2 = inlined_call_operand.vmem [shape: f32[2,1,128], index: 2, kind: input, shape index: {}]   ;;  %s3739_s3 = inlined_call_operand.vmem [shape: bf16[2,128,384], index: 3, kind: input, shape index: {}]   ;;  %s3740_s4 = inlined_call_operand.vmem [shape: f32[2,1,384], index: 4, kind: input, shape index: {}]   ;;  %s3741_s5 = inlined_call_operand.vmem [shape: bf16[2,128,128], index: 5, kind: input, shape index: {}]   ;;  %s3742_s6 = inlined_call_operand.vmem [shape: f32[2,1,128], index: 6, kind: input, shape index: {}]   ;;  %s3743_s7 = inlined_call_operand.vmem [shape: f32[2,1,128], index: 7, kind: input, shape index: {}]   ;;  %s3744_s8 = inlined_call_operand.vmem [shape: f32[2,1,128], index: 8, kind: input, shape index: {}]   ;;  %s3745_s9 = inlined_call_operand.vmem [shape: bf16[2,128,512], index: 9, kind: input, shape index: {}]   ;;  %s3746_s10 = inlined_call_operand.vmem [shape: f32[2,1,512], index: 10, kind: input, shape index: {}]   ;;  %s3747_s11 = inlined_call_operand.vmem [shape: bf16[2,512,128], index: 11, kind: input, shape index: {}]   ;;  %s3748_s12 = inlined_call_operand.vmem [shape: f32[2,1,128], index: 12, kind: input, shape index: {}]   ;;  %s3749_s13 = inlined_call_operand.vmem [shape: f32[1,128], index: 13, kind: input, shape index: {}]   ;;  %s3750_s14 = inlined_call_operand.hbm [shape: f32[1,128], index: 14, kind: input, shape index: {}]   ;;  %s3751_s15 = inlined_call_operand.vmem [shape: f32[2,5,128], index: 15, kind: output, shape index: {}]  }
   0x1   :  { %3756 = sst [smem:[#allocation12_spill]] %s3736_s0 }
   0x2   :  { %3757 = sst [smem:[#allocation13_spill]] %s3738_s2 }
   0x3   :  { %3758 = sst [smem:[#allocation14_spill]] %s3739_s3 }
   0x4   :  { %3759 = sst [smem:[#allocation15_spill]] %s3740_s4 }
   0x5   :  { %3760 = sst [smem:[#allocation16_spill]] %s3741_s5 }
   0x6   :  { %3761 = sst [smem:[#allocation17_spill]] %s3749_s13 }
   0x7   :  { %3762 = sst [smem:[#allocation18_spill]] %s3750_s14 }
   0x8   :  { %3763 = sst [smem:[#allocation19_spill]] %s3751_s15 }
   0x9   :  { %20 = vsyncpa [#allocation4], 0  ;;  %s3292_s18 = smov 0   ;;  %s3294_s19 = smov 0  }
   0xa   :  { %s3296_s20 = smov 0   ;;  %s3298_s21 = smov 0  }
   0xb   :  { %s3300_s22 = smov 0  }
   0xc LB: > { %3764 = sst [smem:[#allocation6_spill]] %s3185_s18  ;;  %s2612_s23 = sadd.s32 4294967295, %s3201_s22   ;;  %s3201_s22 = sphi %s3300_s22, %s26_s22   ;;  %s3197_s21 = sphi %s3298_s21, %s3792_s21   ;;  %s3193_s20 = sphi %s3296_s20, %s3791_s20   ;;  %s3189_s19 = sphi %s3294_s19, %s3790_s19   ;;  %s3185_s18 = sphi %s3292_s18, %s3789_s18  }
   0xd   : > { %3765 = sst [smem:[#allocation7_spill]] %s3193_s20  ;;  %s35_s24 = sadd.s32 1, %s3193_s20 }
   0xe   : > { %3766 = sst [smem:[#allocation8_spill]] %s3197_s21  ;;  %p36_p0 = scmp.ge.s32.totalorder %s35_s24, 2 }
   0xf   : > { %3767 = sst [smem:[#allocation9_spill]] %s3201_s22  ;;  %s38_s25 = sadd.s32 1, %s3197_s21 }
  0x10   : > { %p2614_p1 = scmp.ge.s32.totalorder %s3201_s22, 1  ;;  %p449_p2 = scmp.lt.s32.totalorder %s3201_s22, 5 }
  0x11   : > { %s3794_s24 = smov (%p36_p0, %s35_s24), 0  ;;  %s3796_s25 = smov (!%p36_p0, %s38_s25), %s3197_s21 }
  0x12   : > { %3768 = sst [smem:[#allocation10_spill]] %s3794_s24  ;;  %p3325_p3 = pnand %p2614_p1, %p449_p2 }
  0x13   : > { %p40_p4 = scmp.ge.s32.totalorder %s3796_s25, 2  ;;  %p3329_p5 = scmp.eq.s32.totalorder %s2612_s23, 0 }
  0x14   : > { %p2920_p6 = pneg %p3325_p3  ;;  %s3203_s28 = smov [#allocation3]  }
  0x15   : > { %s3798_s25 = smov (%p40_p4, %s3796_s25), 0  ;;  %s465_s29 = sshll.u32 %s3203_s28, 4  ;;  %s466_s29 = int_to_ptr.vmem [resolvable:$true] %s465_s29 }
  0x16   : > { %3771 = sst [smem:[#allocation11_spill]] %s3798_s25  ;;  %p2921_p7 = pnand %p3329_p5, %p2920_p6 }
  0x17   : > { %s3144_s30 = scalar_lea.vmem %s466_s29, 16  ;;  %s3151_s16 = scalar_lea.vmem %s466_s29, 32 }
  0x18   : > { %p3135_p8 = pneg %p2921_p7  ;;  %p3145_p9 = scmp.ne.s32.totalorder %s466_s29, %s3144_s30 }
  0x19   : > { %p3152_p12 = scmp.lt.s32.totalorder %s466_s29, %s466_s29  ;;  %p3153_p13 = scmp.lt.s32.totalorder %s3151_s16, %s3144_s30 }
  0x1a   : > { %p3147_p10 = pnand %p3145_p9, %p3135_p8 }
  0x1b   : > { %p3154_p0 = por %p3153_p13, %p3152_p12 }
  0x1c   : > { %p3148_p11 = pneg %p3147_p10 }
  0x1e   : > { %p3155_p1 = pnand %p3154_p0, %p3148_p11 }
  0x20   : > { %3158 = shalt.err (!%p3155_p1)
}
  0x21   : > { %s3772_s14 = sld [smem:[#allocation18_spill]] }
  0x23   : > { %567 = sbr.rel (%p3325_p3) target bundleno = 2906 (0xb5a), region = 80 }
  0x27   : > { %2923 = dma.hbm_to_vmem [thread:$0]  (!%p2921_p7), %s3772_s14, 16, %s466_s29, [#allocation4]  }
  0x28   : > { %3180 = dma.done.wait (%p3329_p5), [#allocation4], 16  }
  0x29   : > { %3182 = vsyncadd (%p3329_p5), [#allocation4], 4294967280  ;;  %p659_p2 = scmp.lt.s32.totalorder %s3189_s19, 1  ;;  %p663_p4 = scmp.lt.s32.totalorder %s3185_s18, 1 }
  0x2a   : > { %s3773_s0 = sld [smem:[#allocation12_spill]] }
  0x2b   : > { %s3800_s19 = smov (!%p659_p2, %s3189_s19), 1  ;;  %s3775_s3 = sld [smem:[#allocation14_spill]] }
  0x2c   : > { %s3352_s28 = scalar_select %p663_p4, %s3185_s18, 1 }
  0x2d   : > { %s2619_s26 = sshll.u32 %s3800_s19, 3  ;;  %s3776_s5 = sld [smem:[#allocation16_spill]] }
  0x2e   : > { %s2914_s21 = smul.u32 192, %s3352_s28  ;;  %s2745_s22 = sshll.u32 %s3352_s28, 6 }
  0x2f   : > { %s2915_s20 = smul.u32 3, %s3352_s28  ;;  %s3777_s4 = sld [smem:[#allocation15_spill]] }
  0x30   : > { %s662_s30 = scalar_lea.vmem %s3773_s0, %s2619_s26  ;;  %s2746_s15 = sshll.u32 %s3352_s28, 8 }
  0x31   : > { %s3371_s19 = scalar_lea.vmem %s3775_s3, %s2914_s21  ;;  %s3400_s16 = scalar_lea.vmem %s3745_s9, %s2746_s15 }
  0x32   : > { %s3410_s0 = scalar_lea.vmem %s3747_s11, %s2746_s15  ;;  %s708_s21 = scalar_lea.vmem %s3748_s12, %s3352_s28 }
  0x33   : > { %s3376_s29 = scalar_lea.vmem %s3776_s5, %s2745_s22  ;;  %s2625_s22 = sshll.u32 %s3352_s28, 2 }
  0x34   : > { %s3405_s14 = scalar_lea.vmem %s3746_s10, %s2625_s22  ;;  %s3779_s27 = sld [smem:[#allocation6_spill]] }
  0x35   : > { %s3381_s23 = scalar_lea.vmem %s3777_s4, %s2915_s20  ;;  %s3778_s4 = sld [smem:[#allocation19_spill]] }
  0x3a   : > { %p2629_p3 = scmp.ne.s32.totalorder %s3779_s27, 0 }
  0x3b   : > { %s3419_s5 = scalar_lea.vmem %s3778_s4, %s2619_s26 }
  0x3c   : > { %717 = sbr.rel (%p2629_p3) target bundleno = 67 (0x43), region = 88 }
  0x41   : > { %v718_v0 = vld [vmem:[%s662_s30] sm:$0x1f] }
  0x42   : > { %719 = vst [vmem:[#allocation2] sm:$0x1f] %v718_v0 }
  0x43 PF: > { %vm723_vm0 = vcmask 1044480   ;;  %v2975_v3 = vld [vmem:[%s3371_s19 + $0xac] ss:$12 sps:$4 sm:$0xff]   ;;  %v2977_v4 = vld [vmem:[%s3371_s19 + $0xa8] ss:$12 sps:$4 sm:$0xff]   ;;  %v3204_v5 = vmov 0.0   ;;  %s3780_s24 = scalar_lea.vmem %s3737_s1, %s3352_s28  ;;  %v787_v44 = vlaneseq  ;;  %s3783_s17 = scalar_lea.vmem %s3742_s6, %s3352_s28 }
  0x44   : > { %2826 = vmatprep.subr.bf16.mxu1 %v3204_v5  ;;  %v2978_v6 = vld [vmem:[%s3371_s19 + $0xb0] ss:$12 sps:$4 sm:$0xff]   ;;  %v2979_v7 = vld [vmem:[%s3371_s19 + $0x94] ss:$12 sps:$4 sm:$0xff]   ;;  %930 = vmatprep.subr.bf16.mxu0 %v2975_v3  ;;  %v2982_v9 = vld [vmem:[%s3371_s19 + $0x98] ss:$12 sps:$4 sm:$0xff]   ;;  %s3784_s18 = scalar_lea.vmem %s3743_s7, %s3352_s28  ;;  %s3785_s3 = scalar_lea.vmem %s3744_s8, %s3352_s28 }
  0x45   : > { %v2981_v8 = vld [vmem:[%s3371_s19 + $0x90] ss:$12 sps:$4 sm:$0xff]   ;;  %931 = vmatpush1.bf16.msra.mxu0 %v2977_v4  ;;  %2827 = vmatpush3.bf16.msra.mxu1 %v2978_v6  ;;  %v2985_v16 = vld [vmem:[%s3371_s19 + $0x78] ss:$12 sps:$4 sm:$0xff]   ;;  %v2986_v17 = vld [vmem:[%s3371_s19 + $0x80] ss:$12 sps:$4 sm:$0xff]  }
  0x46   : > { %932 = vmatprep.subr.bf16.mxu0 %v2979_v7  ;;  %2828 = vmatprep.subr.bf16.mxu1 %v3204_v5  ;;  %v2983_v15 = vld [vmem:[%s3371_s19 + $0x7c] ss:$12 sps:$4 sm:$0xff]   ;;  %v2987_v18 = vld [vmem:[%s3371_s19 + $0x64] ss:$12 sps:$4 sm:$0xff]   ;;  %v2989_v19 = vld [vmem:[%s3371_s19 + $0x60] ss:$12 sps:$4 sm:$0xff]  }
  0x47   : > { %v2990_v20 = vld [vmem:[%s3371_s19 + $0x68] ss:$12 sps:$4 sm:$0xff]   ;;  %v2991_v21 = vld [vmem:[%s3371_s19 + $0x4c] ss:$12 sps:$4 sm:$0xff]   ;;  %v2994_v23 = vld [vmem:[%s3371_s19 + $0x50] ss:$12 sps:$4 sm:$0xff]  }
  0x48   : > { %v2993_v22 = vld [vmem:[%s3371_s19 + $0x48] ss:$12 sps:$4 sm:$0xff]   ;;  %v3205_v25 = vmov 0   ;;  %vm3206_vm1 = vmmov 0   ;;  %v2997_v26 = vld [vmem:[%s3371_s19 + $0x30] ss:$12 sps:$4 sm:$0xff]  }
  0x49   : > { %v3422_v1 = vld [vmem:[#allocation2] sm:$0x1f]  ;;  %933 = vmatpush1.bf16.msra.mxu0 %v2981_v8  ;;  %2829 = vmatpush3.bf16.msra.mxu1 %v2982_v9  ;;  %v2999_v28 = vld [vmem:[%s3371_s19 + $0x1c] ss:$12 sps:$4 sm:$0xff]   ;;  %v3479_v45 = vshrl.u32 %v787_v44, 7  ;;  %vm1014_vm2 = vcmask 261120  }
  0x4a   : > { %v724_v2 = vsel %vm723_vm0, %v3422_v1, 0.0  ;;  %2830 = vmatprep.subr.bf16.mxu1 %v3204_v5  ;;  %934 = vmatprep.subr.bf16.mxu0 %v2983_v15  ;;  %v2995_v24 = vld [vmem:[%s3371_s19 + $0x34] ss:$12 sps:$4 sm:$0xff]   ;;  %v2998_v27 = vld [vmem:[%s3371_s19 + $0x38] ss:$12 sps:$4 sm:$0xff]   ;;  %vm1077_vm3 = vcmask 1041408  }
  0x4b   : > { %725 = vadd.xlane.f32.xlu0 %v724_v2  ;;  %962 = vmatprep.mubr.bf16.mxu0 %v3205_v25  ;;  %v3001_v29 = vld [vmem:[%s3371_s19 + $0x18] ss:$12 sps:$4 sm:$0xff]   ;;  %v3002_v30 = vld [vmem:[%s3371_s19 + $0x20] ss:$12 sps:$4 sm:$0xff]   ;;  %v3006_v33 = vld [vmem:[%s3371_s19 + $0x8] ss:$12 sps:$4 sm:$0xff]  }
  0x4c   : > { %2842 = vmatprep.mubr.msk.bf16.mxu1 %vm3206_vm1, %v3204_v5  ;;  %v3003_v31 = vld [vmem:[%s3371_s19 + $0x4] ss:$12 sps:$4 sm:$0xff]   ;;  %v3005_v32 = vld [vmem:[%s3371_s19] ss:$12 sps:$4 sm:$0xff]   ;;  %s3781_s19 = sld [smem:[#allocation13_spill]]  ;;  %v789_v46 = vsub.s32 0, %v3479_v45 }
  0x4d   : > { %935 = vmatpush1.bf16.msra.mxu0 %v2985_v16  ;;  %2831 = vmatpush3.bf16.msra.mxu1 %v2986_v17  ;;  %v2630_v38 = vld [vmem:[%s3780_s24] ss:$0 sm:$0xff]  ;;  %v793_v48 = vsub.s32 1, %v3479_v45  ;;  %v797_v50 = vsub.s32 2, %v3479_v45  ;;  %vm1078_vm4 = vcmask 1042432   ;;  %v3208_v4 = vmov 65535  }
  0x4e   : > { %2832 = vmatprep.subr.bf16.mxu1 %v3204_v5  ;;  %936 = vmatprep.subr.bf16.mxu0 %v2987_v18  ;;  %v785_v47 = vld [vmem:[%s3381_s23] sm:$0x7]  ;;  %s3207_s23 = smov 96   ;;  %v1079_v6 = vsel %vm1077_vm3, 4294967295, %v3208_v4  ;;  %s3209_s15 = smov 32   ;;  %vm1062_vm5 = vcmask 36864  }
  0x4f   : > { %v790_v49 = vrot.slane %v785_v47, %v789_v46  ;;  %v794_v51 = vrot.slane %v785_v47, %v793_v48  ;;  %v798_v55 = vrot.slane %v785_v47, %v797_v50  ;;  %v3497_v8 = vsel %vm1078_vm4, %v1079_v6, 0  ;;  %s3210_s22 = smov 64   ;;  %s3786_s4 = sld [smem:[#allocation6_spill]] }
  0x50   : > { %vm1073_vm6 = vcmask 39936   ;;  %vm1475_vm7 = vcmask 523264   ;;  %vm1477_vm8 = vcmask 785408  }
  0x51   : > { %937 = vmatpush1.bf16.msra.mxu0 %v2989_v19  ;;  %2833 = vmatpush3.bf16.msra.mxu1 %v2990_v20 }
  0x52   : > { %938 = vmatprep.subr.bf16.mxu0 %v2991_v21  ;;  %2834 = vmatprep.subr.bf16.mxu1 %v3204_v5  ;;  %s3782_s13 = scalar_lea.vmem %s3781_s19, %s3352_s28 }
  0x53   : > { %v2631_v40 = vld [vmem:[%s3782_s13] ss:$0 sm:$0xff] }
  0x55   : > { %939 = vmatpush1.bf16.msra.mxu0 %v2993_v22  ;;  %2835 = vmatpush3.bf16.msra.mxu1 %v2994_v23  ;;  %p2740_p5 = scmp.ne.s32.totalorder %s3786_s4, 1 }
  0x56   : > { %940 = vmatprep.subr.bf16.mxu0 %v2995_v24  ;;  %2836 = vmatprep.subr.bf16.mxu1 %v3204_v5  ;;  %s3787_s24 = sld [smem:[#allocation17_spill]] (!%p2740_p5) }
  0x59   : > { %941 = vmatpush1.bf16.msra.mxu0 %v2997_v26  ;;  %2837 = vmatpush3.bf16.msra.mxu1 %v2998_v27 }
  0x5a   : > { %942 = vmatprep.subr.bf16.mxu0 %v2999_v28  ;;  %2838 = vmatprep.subr.bf16.mxu1 %v3204_v5 }
  0x5d   : > { %943 = vmatpush1.bf16.msra.mxu0 %v3001_v29  ;;  %2839 = vmatpush3.bf16.msra.mxu1 %v3002_v30 }
  0x5e   : > { %944 = vmatprep.subr.bf16.mxu0 %v3003_v31  ;;  %2840 = vmatprep.subr.bf16.mxu1 %v3204_v5 }
  0x61   : > { %945 = vmatpush1.bf16.msra.mxu0 %v3005_v32  ;;  %2841 = vmatpush3.bf16.msra.mxu1 %v3006_v33 }
  0x62   : > { %2846 = vmatprep.subr.bf16.mxu1 %v3204_v5  ;;  %2870 = vmatprep.subr.bf16.mxu0 %v3204_v5 }
  0xd4   : > { %v726_v10 = vpop.xlane.xlu0 %725 }
  0xd5   : > { %v728_v11 = vmul.f32 0.0078125, %v726_v10 }
  0xd7   : > { %v729_v12 = vsub.f32 %v3422_v1, %v728_v11 }
  0xd9   : > { %v730_v13 = vmul.f32 %v729_v12, %v729_v12 }
  0xdb   : > { %v731_v14 = vsel %vm723_vm0, %v730_v13, 0.0 }
  0xdc   : > { %732 = vadd.xlane.f32.xlu0 %v731_v14 }
 0x165   : > { %v733_v34 = vpop.xlane.xlu0 %732 }
 0x166   : > { %v734_v35 = vmul.f32 0.0078125, %v733_v34 }
 0x168   : > { %v735_v36 = vadd.f32 1e-05, %v734_v35 }
 0x16a   : > { %3095 = vrsqrt.f32 %v735_v36 }
 0x177   : > { %v3096_v37 = vpop.eup %3095 }
 0x178   : > { %v737_v39 = vmul.f32 %v3096_v37, %v729_v12 }
 0x17a   : > { %v744_v41 = vmul.f32 %v2630_v38, %v737_v39 }
 0x17c   : > { %v751_v42 = vadd.f32 %v2631_v40, %v744_v41 }
 0x17e   : > { %v752_v43 = vpack.c.bf16 %v751_v42, %v751_v42 }
 0x180   : > { %963 = vmatmul.mubr.bf16.vlgmr.msra.gmra.mxu0 %v752_v43  ;;  %2843 = vmatmul.mubr.bf16.vlgmr.msra.gmra.mxu1 %v752_v43 }
 0x181   : > { %2848 = vmatprep.mubr.msk.bf16.mxu1 %vm3206_vm1, %v3204_v5  ;;  %2872 = vmatprep.mubr.msk.bf16.mxu0 %vm3206_vm1, %v3204_v5 }
 0x240   : > { %v964_v52 = vpop.f32.mrf.mxu0  ;;  %v1005_v53 = vpop.f32.mrf.mxu1 }
 0x241   : > { %v965_v54 = vadd.f32 %v964_v52, %v790_v49  ;;  %v1006_v63 = vadd.f32 %v1005_v53, %v798_v55 }
 0x242   : > { %v966_v56 = vpop.f32.mrf.mxu0  ;;  %v2844_v57 = vpop.f32.mrf.mxu1 }
 0x243   : > { %v1011_v58 = vpack.c.bf16 %v965_v54, %v965_v54  ;;  %v967_v59 = vadd.f32 %v966_v56, %v794_v51  ;;  %v3495_v7 = vpack.c.bf16 %v1006_v63, %v1006_v63 }
 0x244   : > { %v968_v60 = vpop.f32.mrf.mxu0  ;;  %v1008_v61 = vpop.f32.mrf.mxu1 }
 0x245   : > { %v1012_v62 = vpack.c.bf16 %v967_v59, %v967_v59  ;;  %1127 = vrot.lane.b32.xlu0 %v1011_v58, %s3207_s23  ;;  %v1082_v9 = vand.u32 %v3497_v8, %v3495_v7 }
 0x246   : > { %v969_v0 = vpop.f32.mrf.mxu0  ;;  %v2845_v2 = vpop.f32.mrf.mxu1 }
 0x247   : > { %v1019_v3 = vsel %vm1014_vm2, %v1012_v62, 0 }
 0x248   : > { %2847 = vmatpush3.bf16.xpose.msra.mxu1 %v1019_v3 }
 0x249   : > { %1351 = vrot.lane.b32.xlu0 %v1011_v58, %s3209_s15  ;;  %2852 = vmatprep.subr.bf16.mxu1 %v3204_v5 }
 0x24f   : > { %2849 = vmatmul.mubr.msk.bf16.vlgmr.msra.gmra.mxu1 %vm1014_vm2, %v1011_v58 }
 0x250   : > { %2853 = vmatpush3.bf16.msra.mxu1 %v1082_v9  ;;  %2854 = vmatprep.mubr.msk.bf16.mxu1 %vm3206_vm1, %v3204_v5 }
 0x251   : > { %2858 = vmatprep.subr.bf16.mxu1 %v3204_v5 }
 0x2b7   : > { %v1128_v27 = vpop.permute.xlu0 %1127 }
 0x2bb   : > { %v1352_v30 = vpop.permute.xlu0 %1351 }
 0x30f   : > { %v1055_v10 = vpop.f32.mrf.mxu1 }
 0x310   : > { %v1061_v11 = vmul.f32 0.17677669, %v1055_v10 }
 0x311   : > { %v2850_v12 = vpop.f32.mrf.mxu1 }
 0x312   : > { %v1063_v13 = vsel %vm1062_vm5, %v1061_v11, -inf }
 0x313   : > { %1064 = vmax.xlane.f32.xlu1 %v1063_v13  ;;  %v1058_v14 = vpop.f32.mrf.mxu1 }
 0x315   : > { %v2851_v15 = vpop.f32.mrf.mxu1 }
 0x324   : > { %1130 = vrot.lane.b32.xlu1 %v1012_v62, %s3207_s23 }
 0x328   : > { %1242 = vrot.lane.b32.xlu1 %v1012_v62, %s3210_s22 }
 0x32c   : > { %1240 = vrot.lane.b32.xlu1 %v1011_v58, %s3210_s22 }
 0x330   : > { %1353 = vrot.lane.b32.xlu1 %v1012_v62, %s3209_s15 }
 0x39c   : > { %v1065_v16 = vpop.xlane.xlu1 %1064 }
 0x39d   : > { %v1066_v17 = vsub.f32 %v1061_v11, %v1065_v16 }
 0x39f   : > { %v1067_v18 = vmul.f32 1.442695, %v1066_v17 }
 0x3a0   : > { %v1131_v19 = vpop.permute.xlu1 %1130 }
 0x3a1   : > { %3097 = vpow2.f32 %v1067_v18  ;;  %v1136_v29 = vsel %vm1014_vm2, %v1131_v19, 0 }
 0x3a4   : > { %v1243_v20 = vpop.permute.xlu1 %1242 }
 0x3a5   : > { %v1248_v21 = vsel %vm1014_vm2, %v1243_v20, 0 }
 0x3a6   : > { %2871 = vmatpush3.bf16.xpose.msra.mxu0 %v1248_v21  ;;  %v3007_v21 = vld [vmem:[%s3376_s29 + $0x38] sm:$0xff]  }
 0x3a7   : > { %2882 = vmatprep.subr.bf16.mxu0 %v3204_v5 }
 0x3a8   : > { %v1241_v22 = vpop.permute.xlu1 %1240 }
 0x3ac   : > { %v1354_v23 = vpop.permute.xlu1 %1353 }
 0x3ad   : > { %v1359_v24 = vsel %vm1014_vm2, %v1354_v23, 0  ;;  %2873 = vmatmul.mubr.msk.bf16.vlgmr.msra.gmra.mxu0 %vm1014_vm2, %v1241_v22  ;;  %v3008_v22 = vld [vmem:[%s3376_s29 + $0x30] sm:$0xff]  }
 0x3ae   : > { %v3514_v26 = vpop.eup %3097  ;;  %2883 = vmatpush3.bf16.xpose.msra.mxu0 %v1359_v24  ;;  %2884 = vmatprep.mubr.msk.bf16.mxu0 %vm3206_vm1, %v3204_v5  ;;  %v3010_v24 = vld [vmem:[%s3376_s29 + $0x20] sm:$0xff]  }
 0x3af   : > { %v1072_v28 = vpack.c.bf16 %v3514_v26, %v3514_v26  ;;  %2894 = vmatprep.subr.bf16.mxu0 %v3204_v5  ;;  %v1069_v13 = vsel %vm1062_vm5, %v3514_v26, 0.0  ;;  %v3011_v26 = vld [vmem:[%s3376_s29 + $0x18] sm:$0xff]  }
 0x3b1   : > { %2855 = vmatmul.mubr.msk.bf16.vlgmr.msra.gmra.mxu1 %vm1073_vm6, %v1072_v28  ;;  %v3012_v28 = vld [vmem:[%s3376_s29 + $0x10] sm:$0xff]  }
 0x3b2   : > { %2859 = vmatpush3.bf16.xpose.msra.mxu1 %v1136_v29  ;;  %2860 = vmatprep.mubr.msk.bf16.mxu1 %vm3206_vm1, %v3204_v5  ;;  %v3013_v29 = vld [vmem:[%s3376_s29 + $0x8] sm:$0xff]  }
 0x3b3   : > { %2864 = vmatprep.subr.bf16.mxu1 %v3204_v5 }
 0x3b5   : > { %2885 = vmatmul.mubr.msk.bf16.vlgmr.msra.gmra.mxu0 %vm1014_vm2, %v1352_v30 }
 0x3b6   : > { %2910 = vmatprep.mubr.msk.bf16.mxu0 %vm3206_vm1, %v3204_v5  ;;  %2895 = vmatpush3.bf16.msra.mxu0 %v3007_v21  ;;  %v3029_v21 = vld [vmem:[%s3400_s16 + $0xa4] ss:$16 sps:$4 sm:$0xff]  }
 0x3b7   : > { %2896 = vmatprep.subr.bf16.mxu0 %v3204_v5 }
 0x3b9   : > { %2861 = vmatmul.mubr.msk.bf16.vlgmr.msra.gmra.mxu1 %vm1014_vm2, %v1128_v27 }
 0x3ba   : > { %2866 = vmatprep.mubr.msk.bf16.mxu1 %vm3206_vm1, %v3204_v5  ;;  %2897 = vmatpush3.bf16.msra.mxu0 %v3008_v22  ;;  %v3032_v22 = vld [vmem:[%s3400_s16 + $0xac] ss:$16 sps:$4 sm:$0xff]  }
 0x3bb   : > { %2898 = vmatprep.subr.bf16.mxu0 %v3204_v5 }
 0x46d   : > { %v1284_v31 = vpop.f32.mrf.mxu0 }
 0x46e   : > { %v1290_v32 = vmul.f32 0.17677669, %v1284_v31 }
 0x46f   : > { %v2874_v33 = vpop.f32.mrf.mxu0 }
 0x470   : > { %v1291_v34 = vsel %vm1062_vm5, %v1290_v32, -inf }
 0x471   : > { %1292 = vmax.xlane.f32.xlu0 %v1291_v34  ;;  %v3533_v35 = vpop.f32.mrf.mxu1  ;;  %v1287_v36 = vpop.f32.mrf.mxu0 }
 0x473   : > { %v2856_v37 = vpop.f32.mrf.mxu1  ;;  %v2875_v38 = vpop.f32.mrf.mxu0 }
 0x474   : > { %v3014_v37 = vld [vmem:[%s3376_s29] sm:$0xff]  }
 0x475   : > { %v1121_v39 = vpop.f32.mrf.mxu1  ;;  %v1395_v40 = vpop.f32.mrf.mxu0 }
 0x476   : > { %v1401_v41 = vmul.f32 0.17677669, %v1395_v40 }
 0x477   : > { %v2857_v42 = vpop.f32.mrf.mxu1  ;;  %v2886_v43 = vpop.f32.mrf.mxu0 }
 0x478   : > { %v1402_v44 = vsel %vm1062_vm5, %v1401_v41, -inf }
 0x479   : > { %1403 = vmax.xlane.f32.xlu0 %v1402_v44  ;;  %v1172_v47 = vpop.f32.mrf.mxu1  ;;  %v1398_v49 = vpop.f32.mrf.mxu0 }
 0x47a   : > { %v1178_v51 = vmul.f32 0.17677669, %v1172_v47 }
 0x47b   : > { %v2862_v52 = vpop.f32.mrf.mxu1  ;;  %v2887_v53 = vpop.f32.mrf.mxu0 }
 0x47c   : > { %v1179_v54 = vsel %vm1062_vm5, %v1178_v51, -inf }
 0x47d   : > { %1180 = vmax.xlane.f32.xlu1 %v1179_v54  ;;  %v1175_v55 = vpop.f32.mrf.mxu1 }
 0x47f   : > { %v2863_v56 = vpop.f32.mrf.mxu1 }
 0x48e   : > { %1301 = vrot.lane.b32.xlu1 %v3495_v7, %s3210_s22 }
 0x48f   : > { %1190 = vrot.lane.b32.xlu0 %v3495_v7, %s3207_s23 }
 0x492   : > { %1412 = vrot.lane.b32.xlu1 %v3495_v7, %s3209_s15 }
 0x4fa   : > { %v1293_v57 = vpop.xlane.xlu0 %1292 }
 0x4fb   : > { %v1294_v58 = vsub.f32 %v1290_v32, %v1293_v57 }
 0x4fd   : > { %v1295_v59 = vmul.f32 1.442695, %v1294_v58 }
 0x4ff   : > { %3099 = vpow2.f32 %v1295_v59 }
 0x502   : > { %v1404_v60 = vpop.xlane.xlu0 %1403 }
 0x503   : > { %v1405_v61 = vsub.f32 %v1401_v41, %v1404_v60 }
 0x505   : > { %v1406_v62 = vmul.f32 1.442695, %v1405_v61 }
 0x506   : > { %v1191_v63 = vpop.permute.xlu0 %1190  ;;  %v1181_v0 = vpop.xlane.xlu1 %1180 }
 0x507   : > { %3101 = vpow2.f32 %v1406_v62  ;;  %v1196_v2 = vand.u32 %v1191_v63, %v3497_v8  ;;  %v1182_v3 = vsub.f32 %v1178_v51, %v1181_v0 }
 0x509   : > { %v1183_v4 = vmul.f32 1.442695, %v1182_v3  ;;  %2865 = vmatpush3.bf16.msra.mxu1 %v1196_v2 }
 0x50a   : > { %2876 = vmatprep.subr.bf16.mxu1 %v3204_v5  ;;  %v1302_v11 = vpop.permute.xlu1 %1301 }
 0x50b   : > { %3103 = vpow2.f32 %v1183_v4  ;;  %v1307_v16 = vand.u32 %v1302_v11, %v3497_v8  ;;  %v3018_v11 = vld [vmem:[%s3400_s16 + $0xe8] ss:$16 sps:$4 sm:$0xff]  }
 0x50c   : > { %v3100_v6 = vpop.eup %3099 }
 0x50d   : > { %v1297_v7 = vsel %vm1062_vm5, %v3100_v6, 0.0  ;;  %v1300_v18 = vpack.c.bf16 %v3100_v6, %v3100_v6 }
 0x50e   : > { %1298 = vadd.xlane.f32.xlu0 %v1297_v7  ;;  %v1413_v17 = vpop.permute.xlu1 %1412 }
 0x50f   : > { %v1418_v19 = vand.u32 %v1413_v17, %v3497_v8  ;;  %v3009_v8 = vld [vmem:[%s3376_s29 + $0x28] sm:$0xff]  }
 0x510   : > { %2899 = vmatpush3.bf16.msra.mxu0 %v3009_v8  ;;  %v3027_v8 = vld [vmem:[%s3400_s16 + $0xa0] ss:$16 sps:$4 sm:$0xff]  }
 0x511   : > { %2900 = vmatprep.subr.bf16.mxu0 %v3204_v5 }
 0x514   : > { %v3102_v9 = vpop.eup %3101  ;;  %2901 = vmatpush3.bf16.msra.mxu0 %v3010_v24  ;;  %v3033_v24 = vld [vmem:[%s3400_s16 + $0x80] ss:$16 sps:$4 sm:$0xff]  }
 0x515   : > { %v1408_v10 = vsel %vm1062_vm5, %v3102_v9, 0.0  ;;  %v1411_v20 = vpack.c.bf16 %v3102_v9, %v3102_v9  ;;  %2902 = vmatprep.subr.bf16.mxu0 %v3204_v5  ;;  %v3015_v9 = vld [vmem:[%s3400_s16 + $0xe0] ss:$16 sps:$4 sm:$0xff]  }
 0x516   : > { %1409 = vadd.xlane.f32.xlu0 %v1408_v10  ;;  %v3017_v10 = vld [vmem:[%s3400_s16 + $0xe4] ss:$16 sps:$4 sm:$0xff]  }
 0x518   : > { %v3104_v12 = vpop.eup %3103  ;;  %2903 = vmatpush3.bf16.msra.mxu0 %v3011_v26  ;;  %v3035_v26 = vld [vmem:[%s3400_s16 + $0x84] ss:$16 sps:$4 sm:$0xff]  }
 0x519   : > { %v1185_v14 = vsel %vm1062_vm5, %v3104_v12, 0.0  ;;  %v1188_v15 = vpack.c.bf16 %v3104_v12, %v3104_v12  ;;  %2904 = vmatprep.subr.bf16.mxu0 %v3204_v5  ;;  %v3020_v12 = vld [vmem:[%s3400_s16 + $0xec] ss:$16 sps:$4 sm:$0xff]  }
 0x51a   : > { %1070 = vadd.xlane.f32.xlu0 %v1069_v13  ;;  %1186 = vadd.xlane.f32.xlu1 %v1185_v14  ;;  %v3023_v13 = vld [vmem:[%s3400_s16 + $0xc4] ss:$16 sps:$4 sm:$0xff]   ;;  %v3026_v14 = vld [vmem:[%s3400_s16 + $0xcc] ss:$16 sps:$4 sm:$0xff]  }
 0x51b   : > { %2867 = vmatmul.mubr.msk.bf16.vlgmr.msra.gmra.mxu1 %vm1073_vm6, %v1188_v15  ;;  %v3024_v15 = vld [vmem:[%s3400_s16 + $0xc8] ss:$16 sps:$4 sm:$0xff]  }
 0x51c   : > { %2877 = vmatpush3.bf16.msra.mxu1 %v1307_v16  ;;  %2878 = vmatprep.mubr.msk.bf16.mxu1 %vm3206_vm1, %v3204_v5 }
 0x51d   : > { %2888 = vmatprep.subr.bf16.mxu1 %v3204_v5  ;;  %2905 = vmatpush3.bf16.msra.mxu0 %v3012_v28  ;;  %v3038_v28 = vld [vmem:[%s3400_s16 + $0x8c] ss:$16 sps:$4 sm:$0xff]  }
 0x51e   : > { %2906 = vmatprep.subr.bf16.mxu0 %v3204_v5 }
 0x521   : > { %2907 = vmatpush3.bf16.msra.mxu0 %v3013_v29  ;;  %v3041_v29 = vld [vmem:[%s3400_s16 + $0x64] ss:$16 sps:$4 sm:$0xff]  }
 0x522   : > { %2908 = vmatprep.subr.bf16.mxu0 %v3204_v5 }
 0x523   : > { %2879 = vmatmul.mubr.msk.bf16.vlgmr.msra.gmra.mxu1 %vm1073_vm6, %v1300_v18 }
 0x524   : > { %2889 = vmatpush3.bf16.msra.mxu1 %v1418_v19  ;;  %2890 = vmatprep.mubr.msk.bf16.mxu1 %vm3206_vm1, %v3204_v5 }
 0x525   : > { %2909 = vmatpush3.bf16.msra.mxu0 %v3014_v37  ;;  %1836 = vmatprep.subr.bf16.mxu1 %v3017_v10  ;;  %v3048_v37 = vld [vmem:[%s3400_s16 + $0x48] ss:$16 sps:$4 sm:$0xff]   ;;  %v3076_v10 = vld [vmem:[%s3410_s0 + $0xe0] sm:$0xff]  }
 0x526   : > { %1877 = vmatprep.subr.bf16.mxu0 %v3020_v12  ;;  %v3078_v12 = vld [vmem:[%s3410_s0 + $0xa0] sm:$0xff]  }
 0x52b   : > { %2891 = vmatmul.mubr.msk.bf16.vlgmr.msra.gmra.mxu1 %vm1073_vm6, %v1411_v20 }
 0x52c   : > { %1868 = vmatprep.mubr.bf16.mxu1 %v3205_v25  ;;  %1837 = vmatpush1.bf16.msra.mxu1 %v3015_v9  ;;  %v3075_v9 = vld [vmem:[%s3410_s0 + $0x60] sm:$0xff]  }
 0x52d   : > { %1838 = vmatprep.subr.bf16.mxu1 %v3023_v13  ;;  %v3079_v13 = vld [vmem:[%s3410_s0 + $0x58] sm:$0xff]  }
 0x597   : > { %v1299_v27 = vpop.xlane.xlu0 %1298 }
 0x59f   : > { %v1410_v31 = vpop.xlane.xlu0 %1409 }
 0x5a3   : > { %v1187_v23 = vpop.xlane.xlu1 %1186  ;;  %v1071_v5 = vpop.xlane.xlu0 %1070 }
 0x5a4   : > { %3105 = vrcp.f32 %v1187_v23  ;;  %v3030_v23 = vld [vmem:[%s3400_s16 + $0xa8] ss:$16 sps:$4 sm:$0xff]  }
 0x5a5   : > { %3107 = vrcp.f32 %v1299_v27  ;;  %v3036_v27 = vld [vmem:[%s3400_s16 + $0x88] ss:$16 sps:$4 sm:$0xff]  }
 0x5a6   : > { %3109 = vrcp.f32 %v1410_v31  ;;  %v3039_v31 = vld [vmem:[%s3400_s16 + $0x60] ss:$16 sps:$4 sm:$0xff]  }
 0x5a7   : > { %3111 = vrcp.f32 %v1071_v5 }
 0x5b1   : > { %v3106_v30 = vpop.eup %3105 }
 0x5b2   : > { %v3108_v39 = vpop.eup %3107 }
 0x5b3   : > { %v3110_v47 = vpop.eup %3109 }
 0x5b4   : > { %v3112_v55 = vpop.eup %3111 }
 0x5b5   : > { %v1125_v57 = vmul.f32 %v3112_v55, %v3533_v35  ;;  %v2664_v35 = vld [vmem:[%s3783_s17] ss:$0 sm:$0xff] }
 0x5b6   : > { %v2674_v55 = vld [vmem:[%s3785_s3] ss:$0 sm:$0xff] }
 0x5db   : > { %v1232_v32 = vpop.f32.mrf.mxu1 }
 0x5dc   : > { %v1239_v33 = vmul.f32 %v3106_v30, %v1232_v32  ;;  %v3044_v30 = vld [vmem:[%s3400_s16 + $0x6c] ss:$16 sps:$4 sm:$0xff]   ;;  %v3042_v32 = vld [vmem:[%s3400_s16 + $0x68] ss:$16 sps:$4 sm:$0xff]  }
 0x5dd   : > { %v2868_v34 = vpop.f32.mrf.mxu1 }
 0x5de   : > { %1463 = vrot.lane.b32.xlu1 %v1239_v33, %s3209_s15  ;;  %v3047_v33 = vld [vmem:[%s3400_s16 + $0x44] ss:$16 sps:$4 sm:$0xff]   ;;  %v3050_v34 = vld [vmem:[%s3400_s16 + $0x4c] ss:$16 sps:$4 sm:$0xff]  }
 0x5df   : > { %v1235_v36 = vpop.f32.mrf.mxu1 }
 0x5e0   : > { %v3045_v36 = vld [vmem:[%s3400_s16 + $0x40] ss:$16 sps:$4 sm:$0xff]  }
 0x5e1   : > { %v2869_v38 = vpop.f32.mrf.mxu1 }
 0x5e2   : > { %v3053_v38 = vld [vmem:[%s3400_s16 + $0x24] ss:$16 sps:$4 sm:$0xff]  }
 0x5e3   : > { %v1343_v40 = vpop.f32.mrf.mxu1 }
 0x5e4   : > { %v1350_v41 = vmul.f32 %v3108_v39, %v1343_v40  ;;  %v3056_v39 = vld [vmem:[%s3400_s16 + $0x2c] ss:$16 sps:$4 sm:$0xff]   ;;  %v3051_v40 = vld [vmem:[%s3400_s16 + $0x20] ss:$16 sps:$4 sm:$0xff]  }
 0x5e5   : > { %v2880_v42 = vpop.f32.mrf.mxu1 }
 0x5e6   : > { %1467 = vrot.lane.b32.xlu0 %v1350_v41, %s3210_s22  ;;  %v3054_v41 = vld [vmem:[%s3400_s16 + $0x28] ss:$16 sps:$4 sm:$0xff]   ;;  %v3059_v42 = vld [vmem:[%s3400_s16 + $0x4] ss:$16 sps:$4 sm:$0xff]  }
 0x5e7   : > { %v1346_v43 = vpop.f32.mrf.mxu1 }
 0x5e8   : > { %v3062_v43 = vld [vmem:[%s3400_s16 + $0xc] ss:$16 sps:$4 sm:$0xff]  }
 0x5e9   : > { %v2881_v44 = vpop.f32.mrf.mxu1 }
 0x5ea   : > { %v3057_v44 = vld [vmem:[%s3400_s16] ss:$16 sps:$4 sm:$0xff]  }
 0x5eb   : > { %v1454_v49 = vpop.f32.mrf.mxu1 }
 0x5ec   : > { %v1461_v51 = vmul.f32 %v3110_v47, %v1454_v49  ;;  %v3060_v47 = vld [vmem:[%s3400_s16 + $0x8] ss:$16 sps:$4 sm:$0xff]  }
 0x5ed   : > { %v2892_v52 = vpop.f32.mrf.mxu1 }
 0x5ee   : > { %1471 = vrot.lane.b32.xlu1 %v1461_v51, %s3207_s23 }
 0x5ef   : > { %v1457_v53 = vpop.f32.mrf.mxu1 }
 0x5f1   : > { %v2893_v54 = vpop.f32.mrf.mxu1 }
 0x5f2   : > { %v2673_v54 = vld [vmem:[%s3784_s18] ss:$0 sm:$0xff] }
 0x650   : > { %v1464_v56 = vpop.permute.xlu1 %1463 }
 0x651   : > { %v1474_v59 = vsel %vm1014_vm2, %v1125_v57, %v1464_v56 }
 0x658   : > { %v1468_v58 = vpop.permute.xlu0 %1467 }
 0x659   : > { %v1476_v60 = vsel %vm1475_vm7, %v1474_v59, %v1468_v58  ;;  %v3063_v59 = vld [vmem:[%s3410_s0 + $0x78] sm:$0xff]  }
 0x660   : > { %v1472_v61 = vpop.permute.xlu1 %1471 }
 0x661   : > { %v1478_v62 = vsel %vm1477_vm8, %v1476_v60, %v1472_v61  ;;  %v3064_v60 = vld [vmem:[%s3410_s0 + $0xf8] sm:$0xff]  }
 0x662   : > { %v1479_v63 = vpack.c.bf16 %v1478_v62, %v1478_v62  ;;  %v3065_v61 = vld [vmem:[%s3410_s0 + $0x38] sm:$0xff]  }
 0x663   : > { %v3066_v62 = vld [vmem:[%s3410_s0 + $0xb8] sm:$0xff]  }
 0x664   : > { %2911 = vmatmul.mubr.bf16.vlgmr.msra.gmra.mxu0 %v1479_v63  ;;  %v3067_v63 = vld [vmem:[%s3410_s0 + $0x70] sm:$0xff]  }
 0x665   : > { %1909 = vmatprep.mubr.bf16.mxu0 %v3205_v25  ;;  %1878 = vmatpush1.bf16.msra.mxu0 %v3018_v11  ;;  %v3077_v11 = vld [vmem:[%s3410_s0 + $0x20] sm:$0xff]  }
 0x666   : > { %1879 = vmatprep.subr.bf16.mxu0 %v3026_v14  ;;  %v3080_v14 = vld [vmem:[%s3410_s0 + $0xd8] sm:$0xff]  }
 0x669   : > { %1880 = vmatpush1.bf16.msra.mxu0 %v3024_v15  ;;  %v3082_v15 = vld [vmem:[%s3410_s0 + $0x98] sm:$0xff]  }
 0x66a   : > { %1881 = vmatprep.subr.bf16.mxu0 %v3032_v22  ;;  %v3089_v22 = vld [vmem:[%s3410_s0 + $0x8] sm:$0xff]  }
 0x66d   : > { %1882 = vmatpush1.bf16.msra.mxu0 %v3030_v23  ;;  %v3091_v23 = vld [vmem:[%s3410_s0 + $0x40] sm:$0xff]  }
 0x66e   : > { %1883 = vmatprep.subr.bf16.mxu0 %v3038_v28  ;;  %v1654_v28 = vld [vmem:[%s3405_s14] sm:$0xf] }
 0x671   : > { %1884 = vmatpush1.bf16.msra.mxu0 %v3036_v27  ;;  %v3094_v27 = vld [vmem:[%s3410_s0 + $0x80] sm:$0xff]  }
 0x672   : > { %1885 = vmatprep.subr.bf16.mxu0 %v3044_v30  ;;  %v1659_v30 = vrot.slane %v1654_v28, %v789_v46 }
 0x675   : > { %1886 = vmatpush1.bf16.msra.mxu0 %v3042_v32 }
 0x676   : > { %1887 = vmatprep.subr.bf16.mxu0 %v3050_v34  ;;  %v1663_v34 = vrot.slane %v1654_v28, %v793_v48 }
 0x679   : > { %1888 = vmatpush1.bf16.msra.mxu0 %v3048_v37 }
 0x67a   : > { %1889 = vmatprep.subr.bf16.mxu0 %v3056_v39 }
 0x67d   : > { %1890 = vmatpush1.bf16.msra.mxu0 %v3054_v41 }
 0x67e   : > { %1891 = vmatprep.subr.bf16.mxu0 %v3062_v43 }
 0x681   : > { %1892 = vmatpush1.bf16.msra.mxu0 %v3060_v47 }
 0x682   : > { %2804 = vmatprep.subr.bf16.mxu0 %v3064_v60 }
 0x724   : > { %v1585_v0 = vpop.f32.mrf.mxu0 }
 0x725   : > { %v1586_v2 = vadd.f32 %v2664_v35, %v1585_v0  ;;  %v3068_v35 = vld [vmem:[%s3410_s0 + $0xf0] sm:$0xff]  }
 0x726   : > { %v2912_v3 = vpop.f32.mrf.mxu0  ;;  %v3069_v0 = vld [vmem:[%s3410_s0 + $0x30] sm:$0xff]  }
 0x727   : > { %v3588_v4 = vadd.f32 %v1586_v2, %v3422_v1  ;;  %v3021_v1 = vld [vmem:[%s3400_s16 + $0xc0] ss:$16 sps:$4 sm:$0xff]   ;;  %v3071_v3 = vld [vmem:[%s3410_s0 + $0x68] sm:$0xff]  }
 0x728   : > { %v1588_v6 = vpop.f32.mrf.mxu0  ;;  %1839 = vmatpush1.bf16.msra.mxu1 %v3021_v1  ;;  %v3070_v2 = vld [vmem:[%s3410_s0 + $0xb0] sm:$0xff]   ;;  %v3081_v1 = vld [vmem:[%s3410_s0 + $0x18] sm:$0xff]  }
 0x729   : > { %v1594_v7 = vsel %vm723_vm0, %v3588_v4, 0.0  ;;  %1840 = vmatprep.subr.bf16.mxu1 %v3029_v21  ;;  %v3072_v6 = vld [vmem:[%s3410_s0 + $0xe8] sm:$0xff]  }
 0x72a   : > { %1595 = vadd.xlane.f32.xlu1 %v1594_v7  ;;  %v2913_v25 = vpop.f32.mrf.mxu0  ;;  %v3073_v7 = vld [vmem:[%s3410_s0 + $0x28] sm:$0xff]  }
 0x72b   : > { %v3074_v25 = vld [vmem:[%s3410_s0 + $0xa8] sm:$0xff]  }
 0x72c   : > { %1841 = vmatpush1.bf16.msra.mxu1 %v3027_v8  ;;  %v3088_v21 = vld [vmem:[%s3410_s0 + $0xc8] sm:$0xff]  }
 0x72d   : > { %1842 = vmatprep.subr.bf16.mxu1 %v3035_v26  ;;  %v3090_v8 = vld [vmem:[%s3410_s0 + $0x88] sm:$0xff]   ;;  %v3093_v26 = vld [vmem:[%s3410_s0] sm:$0xff]  }
 0x730   : > { %1843 = vmatpush1.bf16.msra.mxu1 %v3033_v24  ;;  %v3092_v24 = vld [vmem:[%s3410_s0 + $0xc0] sm:$0xff]  }
 0x731   : > { %1844 = vmatprep.subr.bf16.mxu1 %v3041_v29  ;;  %v1670_v29 = vsub.s32 3, %v3479_v45 }
 0x734   : > { %1845 = vmatpush1.bf16.msra.mxu1 %v3039_v31  ;;  %v1667_v31 = vrot.slane %v1654_v28, %v797_v50 }
 0x735   : > { %1846 = vmatprep.subr.bf16.mxu1 %v3047_v33 }
 0x738   : > { %1847 = vmatpush1.bf16.msra.mxu1 %v3045_v36  ;;  %v1671_v36 = vrot.slane %v1654_v28, %v1670_v29 }
 0x739   : > { %1848 = vmatprep.subr.bf16.mxu1 %v3053_v38 }
 0x73c   : > { %1849 = vmatpush1.bf16.msra.mxu1 %v3051_v40 }
 0x73d   : > { %1850 = vmatprep.subr.bf16.mxu1 %v3059_v42 }
 0x740   : > { %1851 = vmatpush1.bf16.msra.mxu1 %v3057_v44 }
 0x741   : > { %2782 = vmatprep.subr.bf16.mxu1 %v3063_v59 }
 0x7b3   : > { %v1596_v16 = vpop.xlane.xlu1 %1595 }
 0x7b4   : > { %v1597_v17 = vmul.f32 0.0078125, %v1596_v16  ;;  %v3083_v16 = vld [vmem:[%s3410_s0 + $0x50] sm:$0xff]  }
 0x7b6   : > { %v1598_v18 = vsub.f32 %v3588_v4, %v1597_v17  ;;  %v3084_v17 = vld [vmem:[%s3410_s0 + $0xd0] sm:$0xff]  }
 0x7b8   : > { %v1599_v19 = vmul.f32 %v1598_v18, %v1598_v18 }
 0x7ba   : > { %v1600_v20 = vsel %vm723_vm0, %v1599_v19, 0.0  ;;  %v3086_v19 = vld [vmem:[%s3410_s0 + $0x90] sm:$0xff]  }
 0x7bb   : > { %1601 = vadd.xlane.f32.xlu0 %v1600_v20  ;;  %v3087_v20 = vld [vmem:[%s3410_s0 + $0x48] sm:$0xff]  }
 0x844   : > { %v1602_v49 = vpop.xlane.xlu0 %1601 }
 0x845   : > { %v1603_v51 = vmul.f32 0.0078125, %v1602_v49 }
 0x847   : > { %v1604_v52 = vadd.f32 1e-05, %v1603_v51 }
 0x849   : > { %3113 = vrsqrt.f32 %v1604_v52 }
 0x856   : > { %v3114_v53 = vpop.eup %3113 }
 0x857   : > { %v1606_v5 = vmul.f32 %v3114_v53, %v1598_v18  ;;  %v3085_v18 = vld [vmem:[%s3410_s0 + $0x10] sm:$0xff]  }
 0x859   : > { %v1613_v56 = vmul.f32 %v2673_v54, %v1606_v5 }
 0x85b   : > { %v1620_v57 = vadd.f32 %v2674_v55, %v1613_v56 }
 0x85d   : > { %v1621_v58 = vpack.c.bf16 %v1620_v57, %v1620_v57 }
 0x85f   : > { %1869 = vmatmul.mubr.bf16.vlgmr.msra.gmra.mxu1 %v1621_v58  ;;  %1910 = vmatmul.mubr.bf16.vlgmr.msra.gmra.mxu0 %v1621_v58 }
 0x860   : > { %2783 = vmatpush3.bf16.msra.mxu1 %v3065_v61  ;;  %2805 = vmatpush3.bf16.msra.mxu0 %v3066_v62 }
 0x861   : > { %2784 = vmatprep.subr.bf16.mxu1 %v3067_v63  ;;  %2806 = vmatprep.subr.bf16.mxu0 %v3068_v35 }
 0x864   : > { %2785 = vmatpush3.bf16.msra.mxu1 %v3069_v0  ;;  %2807 = vmatpush3.bf16.msra.mxu0 %v3070_v2 }
 0x865   : > { %2786 = vmatprep.subr.bf16.mxu1 %v3071_v3  ;;  %2808 = vmatprep.subr.bf16.mxu0 %v3072_v6 }
 0x868   : > { %2787 = vmatpush3.bf16.msra.mxu1 %v3073_v7  ;;  %2809 = vmatpush3.bf16.msra.mxu0 %v3074_v25 }
 0x869   : > { %2788 = vmatprep.subr.bf16.mxu1 %v3075_v9  ;;  %2810 = vmatprep.subr.bf16.mxu0 %v3076_v10 }
 0x86c   : > { %2789 = vmatpush3.bf16.msra.mxu1 %v3077_v11  ;;  %2811 = vmatpush3.bf16.msra.mxu0 %v3078_v12 }
 0x86d   : > { %2790 = vmatprep.subr.bf16.mxu1 %v3079_v13  ;;  %2812 = vmatprep.subr.bf16.mxu0 %v3080_v14 }
 0x870   : > { %2791 = vmatpush3.bf16.msra.mxu1 %v3081_v1  ;;  %2813 = vmatpush3.bf16.msra.mxu0 %v3082_v15 }
 0x871   : > { %2792 = vmatprep.subr.bf16.mxu1 %v3083_v16  ;;  %2814 = vmatprep.subr.bf16.mxu0 %v3084_v17 }
 0x874   : > { %2793 = vmatpush3.bf16.msra.mxu1 %v3085_v18  ;;  %2815 = vmatpush3.bf16.msra.mxu0 %v3086_v19 }
 0x875   : > { %2794 = vmatprep.subr.bf16.mxu1 %v3087_v20  ;;  %2816 = vmatprep.subr.bf16.mxu0 %v3088_v21 }
 0x878   : > { %2795 = vmatpush3.bf16.msra.mxu1 %v3089_v22  ;;  %2817 = vmatpush3.bf16.msra.mxu0 %v3090_v8 }
 0x879   : > { %2796 = vmatprep.subr.bf16.mxu1 %v3091_v23  ;;  %2818 = vmatprep.subr.bf16.mxu0 %v3092_v24 }
 0x87c   : > { %2797 = vmatpush3.bf16.msra.mxu1 %v3093_v26  ;;  %2819 = vmatpush3.bf16.msra.mxu0 %v3094_v27 }
 0x91f   : > { %v1870_v32 = vpop.f32.mrf.mxu1  ;;  %v1911_v33 = vpop.f32.mrf.mxu0 }
 0x920   : > { %v3676_v37 = vadd.f32 %v1870_v32, %v1659_v30  ;;  %v3678_v38 = vadd.f32 %v1911_v33, %v1667_v31 }
 0x921   : > { %v1872_v39 = vpop.f32.mrf.mxu1  ;;  %v1913_v40 = vpop.f32.mrf.mxu0 }
 0x922   : > { %v3681_v41 = vmul.f32 0.70710677, %v3676_v37  ;;  %v3684_v46 = vmul.f32 0.70710677, %v3678_v38  ;;  %v3686_v42 = vadd.f32 %v1872_v39, %v1663_v34  ;;  %v3688_v50 = vadd.f32 %v1913_v40, %v1671_v36 }
 0x923   : > { %v1874_v43 = vpop.f32.mrf.mxu1  ;;  %v1915_v45 = vpop.f32.mrf.mxu0 }
 0x924   : > { %v1934_v48 = vand.u32 2147483647, %v3681_v41  ;;  %v1936_v44 = vand.u32 2147483647, %v3684_v46  ;;  %v3693_v47 = vmul.f32 0.70710677, %v3686_v42 }
 0x925   : > { %v1875_v49 = vpop.f32.mrf.mxu1  ;;  %v1916_v51 = vpop.f32.mrf.mxu0  ;;  %v3697_v5 = vmul.f32 0.70710677, %v3688_v50  ;;  %vm1926_vm9 = vcmp.ge.f32.partialorder %v3681_v41, 0.0  ;;  %vm1928_vm10 = vcmp.ge.f32.partialorder %v3684_v46, 0.0 }
 0x926   : > { %v1938_v52 = vmul.f32 0.3275911, %v1934_v48  ;;  %v1940_v53 = vmul.f32 0.3275911, %v1936_v44  ;;  %v1935_v54 = vand.u32 2147483647, %v3693_v47 }
 0x927   : > { %v1937_v59 = vand.u32 2147483647, %v3697_v5  ;;  %v1990_v62 = vsub.f32 0.0, %v1934_v48  ;;  %v1992_v63 = vsub.f32 0.0, %v1936_v44  ;;  %vm1927_vm11 = vcmp.ge.f32.partialorder %v3693_v47, 0.0 }
 0x928   : > { %v1942_v55 = vadd.f32 1.0, %v1938_v52  ;;  %v1944_v56 = vadd.f32 1.0, %v1940_v53  ;;  %v1939_v57 = vmul.f32 0.3275911, %v1935_v54  ;;  %v1991_v0 = vsub.f32 0.0, %v1935_v54 }
 0x929   : > { %v1941_v60 = vmul.f32 0.3275911, %v1937_v59  ;;  %v1994_v35 = vmul.f32 %v1990_v62, %v1934_v48  ;;  %v1996_v2 = vmul.f32 %v1992_v63, %v1936_v44  ;;  %v1993_v6 = vsub.f32 0.0, %v1937_v59 }
 0x92a   : > { %3115 = vrcp.f32 %v1942_v55  ;;  %v1943_v58 = vadd.f32 1.0, %v1939_v57  ;;  %v1995_v10 = vmul.f32 %v1991_v0, %v1935_v54  ;;  %v3211_v63 = vmov -1.0  }
 0x92b   : > { %3117 = vrcp.f32 %v1944_v56  ;;  %v1945_v61 = vadd.f32 1.0, %v1941_v60  ;;  %v1998_v9 = vmul.f32 1.442695, %v1994_v35  ;;  %v2002_v12 = vmul.f32 1.442695, %v1996_v2 }
 0x92c   : > { %3119 = vrcp.f32 %v1943_v58  ;;  %v1997_v15 = vmul.f32 %v1993_v6, %v1937_v59  ;;  %v2000_v18 = vmul.f32 1.442695, %v1995_v10  ;;  %v1930_v35 = vsel %vm1926_vm9, 1.0, %v3211_v63 }
 0x92d   : > { %3121 = vrcp.f32 %v1945_v61  ;;  %vm1929_vm12 = vcmp.ge.f32.partialorder %v3697_v5, 0.0 }
 0x92e   : > { %3123 = vpow2.f32 %v1998_v9  ;;  %v2004_v24 = vmul.f32 1.442695, %v1997_v15 }
 0x92f   : > { %3125 = vpow2.f32 %v2002_v12  ;;  %v1931_v12 = vsel %vm1927_vm11, 1.0, %v3211_v63 }
 0x930   : > { %3127 = vpow2.f32 %v2000_v18 }
 0x931   : > { %3129 = vpow2.f32 %v2004_v24 }
 0x937   : > { %v3116_v3 = vpop.eup %3115 }
 0x938   : > { %v3118_v7 = vpop.eup %3117  ;;  %v1954_v25 = vmul.f32 1.0614054, %v3116_v3 }
 0x939   : > { %v1956_v11 = vmul.f32 1.0614054, %v3118_v7  ;;  %v3120_v14 = vpop.eup %3119 }
 0x93a   : > { %v1958_v13 = vadd.f32 -1.4531521, %v1954_v25  ;;  %v1955_v17 = vmul.f32 1.0614054, %v3120_v14  ;;  %v3122_v20 = vpop.eup %3121 }
 0x93b   : > { %v1960_v1 = vadd.f32 -1.4531521, %v1956_v11  ;;  %v1957_v23 = vmul.f32 1.0614054, %v3122_v20  ;;  %v3124_v52 = vpop.eup %3123 }
 0x93c   : > { %v1962_v16 = vmul.f32 %v3116_v3, %v1958_v13  ;;  %v1959_v22 = vadd.f32 -1.4531521, %v1955_v17  ;;  %v3126_v55 = vpop.eup %3125  ;;  %v1933_v17 = vsel %vm1929_vm12, 1.0, %v3211_v63 }
 0x93d   : > { %v1964_v19 = vmul.f32 %v3118_v7, %v1960_v1  ;;  %v1961_v29 = vadd.f32 -1.4531521, %v1957_v23  ;;  %v3128_v62 = vpop.eup %3127 }
 0x93e   : > { %v1966_v21 = vadd.f32 1.4214138, %v1962_v16  ;;  %v1963_v27 = vmul.f32 %v3120_v14, %v1959_v22  ;;  %v3130_v41 = vpop.eup %3129  ;;  %v1919_v16 = vmul.f32 0.5, %v3686_v42  ;;  %v1921_v22 = vmul.f32 0.5, %v3688_v50 }
 0x93f   : > { %v1968_v8 = vadd.f32 1.4214138, %v1964_v19  ;;  %v1965_v33 = vmul.f32 %v3122_v20, %v1961_v29 }
 0x940   : > { %v1970_v26 = vmul.f32 %v3116_v3, %v1966_v21  ;;  %v1967_v31 = vadd.f32 1.4214138, %v1963_v27 }
 0x941   : > { %v1972_v28 = vmul.f32 %v3118_v7, %v1968_v8  ;;  %v1969_v40 = vadd.f32 1.4214138, %v1965_v33 }
 0x942   : > { %v1974_v30 = vadd.f32 -0.28449672, %v1970_v26  ;;  %v1971_v36 = vmul.f32 %v3120_v14, %v1967_v31 }
 0x943   : > { %v1976_v32 = vadd.f32 -0.28449672, %v1972_v28  ;;  %v1973_v44 = vmul.f32 %v3122_v20, %v1969_v40 }
 0x944   : > { %v1978_v34 = vmul.f32 %v3116_v3, %v1974_v30  ;;  %v1975_v45 = vadd.f32 -0.28449672, %v1971_v36 }
 0x945   : > { %v1980_v39 = vmul.f32 %v3118_v7, %v1976_v32  ;;  %v1977_v54 = vadd.f32 -0.28449672, %v1973_v44 }
 0x946   : > { %v1982_v43 = vadd.f32 0.2548296, %v1978_v34  ;;  %v1979_v51 = vmul.f32 %v3120_v14, %v1975_v45 }
 0x947   : > { %v1984_v48 = vadd.f32 0.2548296, %v1980_v39  ;;  %v1981_v59 = vmul.f32 %v3122_v20, %v1977_v54 }
 0x948   : > { %v1986_v49 = vmul.f32 %v3116_v3, %v1982_v43  ;;  %v1983_v57 = vadd.f32 0.2548296, %v1979_v51 }
 0x949   : > { %v1988_v53 = vmul.f32 %v3118_v7, %v1984_v48  ;;  %v1985_v2 = vadd.f32 0.2548296, %v1981_v59  ;;  %v1932_v7 = vsel %vm1928_vm10, 1.0, %v3211_v63 }
 0x94a   : > { %v2006_v56 = vmul.f32 %v3124_v52, %v1986_v49  ;;  %v1987_v61 = vmul.f32 %v3120_v14, %v1983_v57  ;;  %v1918_v14 = vmul.f32 0.5, %v3676_v37 }
 0x94b   : > { %v2008_v58 = vmul.f32 %v3126_v55, %v1988_v53  ;;  %v1989_v25 = vmul.f32 %v3122_v20, %v1985_v2  ;;  %v1920_v20 = vmul.f32 0.5, %v3678_v38  ;;  %v2707_v38 = vld [vmem:[%s708_s21] ss:$0 sm:$0xff] }
 0x94c   : > { %v2010_v60 = vsub.f32 1.0, %v2006_v56  ;;  %v2007_v6 = vmul.f32 %v3128_v62, %v1987_v61 }
 0x94d   : > { %v2012_v0 = vsub.f32 1.0, %v2008_v58  ;;  %v2009_v46 = vmul.f32 %v3130_v41, %v1989_v25 }
 0x94e   : > { %v2014_v3 = vmul.f32 %v2010_v60, %v1930_v35  ;;  %v2011_v10 = vsub.f32 1.0, %v2007_v6 }
 0x94f   : > { %v2016_v9 = vmul.f32 %v2012_v0, %v1932_v7  ;;  %v2013_v1 = vsub.f32 1.0, %v2009_v46 }
 0x950   : > { %v2018_v11 = vadd.f32 1.0, %v2014_v3  ;;  %v2015_v13 = vmul.f32 %v2011_v10, %v1931_v12 }
 0x951   : > { %v2020_v15 = vadd.f32 1.0, %v2016_v9  ;;  %v2017_v19 = vmul.f32 %v2013_v1, %v1933_v17 }
 0x952   : > { %v2019_v47 = vadd.f32 1.0, %v2015_v13  ;;  %v2022_v18 = vmul.f32 %v2018_v11, %v1918_v14 }
 0x953   : > { %v2021_v8 = vadd.f32 1.0, %v2017_v19  ;;  %v2024_v5 = vmul.f32 %v2020_v15, %v1920_v20 }
 0x954   : > { %v2023_v21 = vmul.f32 %v2019_v47, %v1919_v16  ;;  %v2026_v24 = vpack.c.bf16 %v2022_v18, %v2022_v18 }
 0x955   : > { %v2025_v26 = vmul.f32 %v2021_v8, %v1921_v22  ;;  %v2028_v27 = vpack.c.bf16 %v2024_v5, %v2024_v5 }
 0x956   : > { %v2027_v23 = vpack.c.bf16 %v2023_v21, %v2023_v21 }
 0x957   : > { %v2029_v37 = vpack.c.bf16 %v2025_v26, %v2025_v26 }
 0x958   : > { %2325 = vmatprep.mubr.bf16.mxu1 %v2027_v23 }
 0x959   : > { %2326 = vmatmul.mubr.bf16.vlgmr.msra.gmra.mxu1 %v2026_v24  ;;  %2365 = vmatprep.mubr.bf16.mxu0 %v2029_v37 }
 0x95a   : > { %2366 = vmatmul.mubr.bf16.vlgmr.msra.gmra.mxu0 %v2028_v27 }
 0xa19   : > { %v2798_v42 = vpop.f32.mrf.mxu1 }
 0xa1a   : > { %v2820_v29 = vpop.f32.mrf.mxu0 }
 0xa1b   : > { %v2799_v28 = vpop.f32.mrf.mxu1 }
 0xa1c   : > { %v2800_v50 = vadd.f32 %v2799_v28, %v2798_v42  ;;  %v2821_v32 = vpop.f32.mrf.mxu0 }
 0xa1d   : > { %v2801_v30 = vpop.f32.mrf.mxu1  ;;  %v2822_v33 = vadd.f32 %v2821_v32, %v2820_v29 }
 0xa1e   : > { %v2328_v31 = vadd.f32 %v2800_v50, %v2707_v38  ;;  %v2823_v36 = vpop.f32.mrf.mxu0 }
 0xa1f   : > { %v2802_v34 = vpop.f32.mrf.mxu1 }
 0xa20   : > { %v2368_v39 = vadd.f32 %v2822_v33, %v2328_v31  ;;  %v2824_v40 = vpop.f32.mrf.mxu0  ;;  %2378 = sbr.rel (%p2740_p5) target bundleno = 2906 (0xb5a), region = 92 }
 0xa22   : > { %v2373_v43 = vadd.f32 %v2368_v39, %v3588_v4 }
 0xa24   : > { %2374 = vst [vmem:[#allocation2] sm:$0x1f] %v2373_v43 }
 0xa25   : > { %v2381_v45 = vsel %vm723_vm0, %v2373_v43, 0.0  ;;  %v2741_v56 = vld [vmem:[%s3787_s24] ss:$0 sm:$0xff]  ;;  %v2742_v58 = vld [vmem:[#allocation3] ss:$0 sm:$0xff] }
 0xa26   : > { %2382 = vadd.xlane.f32.xlu0 %v2381_v45 }
 0xaaf   : > { %v2383_v48 = vpop.xlane.xlu0 %2382 }
 0xab0   : > { %v2384_v44 = vmul.f32 0.0078125, %v2383_v48 }
 0xab2   : > { %v2385_v49 = vsub.f32 %v2373_v43, %v2384_v44 }
 0xab4   : > { %v2386_v51 = vmul.f32 %v2385_v49, %v2385_v49 }
 0xab6   : > { %v2387_v52 = vsel %vm723_vm0, %v2386_v51, 0.0 }
 0xab7   : > { %2388 = vadd.xlane.f32.xlu0 %v2387_v52 }
 0xb40   : > { %v2389_v53 = vpop.xlane.xlu0 %2388 }
 0xb41   : > { %v2390_v54 = vmul.f32 0.0078125, %v2389_v53 }
 0xb43   : > { %v2391_v55 = vadd.f32 1e-05, %v2390_v54 }
 0xb45   : > { %3131 = vrsqrt.f32 %v2391_v55 }
 0xb52   : > { %v3132_v4 = vpop.eup %3131 }
 0xb53   : > { %v2393_v57 = vmul.f32 %v3132_v4, %v2385_v49 }
 0xb55   : > { %v2400_v59 = vmul.f32 %v2741_v56, %v2393_v57 }
 0xb57   : > { %v2407_v60 = vadd.f32 %v2742_v58, %v2400_v59 }
 0xb59   : > { %2408 = vst [vmem:[%s3419_s5] sm:$0x1f] %v2407_v60 }
 0xb5a PF: > { %s3788_s26 = sld [smem:[#allocation9_spill]] }
 0xb5b   : > { %s3789_s18 = sld [smem:[#allocation7_spill]] }
 0xb5c   : > { %s3790_s19 = sld [smem:[#allocation8_spill]] }
 0xb5d   : > { %s3791_s20 = sld [smem:[#allocation10_spill]] }
 0xb5e   : > { %s3792_s21 = sld [smem:[#allocation11_spill]] }
 0xb60   : > { %s26_s22 = sadd.s32 1, %s3788_s26  }
 0xb61   : > { %p23_p6 = scmp.ge.s32.totalorder %s26_s22, 6  }
 0xb63   :  { %25 = sbr.rel (!%p23_p6) target bundleno = 12 (0xc), region = 159 }
 0xb68   :  { %2428 = vsyncpa [#allocation4], 1 }
 0xb69   :  { %2430 = vsyncpa [#allocation4 + $0x1], 1 }

// kernel: vit_encoder_decoder_forward.5
= control target key start
LH: loop header
LB: loop body
LE: loop exit
PB: predicated region body
PF: predicated region fallthrough
CT: control target
= control target key end

     0   :  { %s5924_s0 = inlined_call_operand.vmem [shape: f32[2,8,128], index: 0, kind: input, shape index: {}]   ;;  %s5925_s1 = inlined_call_operand.vmem [shape: f32[2,5,128], index: 1, kind: input, shape index: {}]   ;;  %s5926_s2 = inlined_call_operand.vmem [shape: f32[2,1,128], index: 2, kind: input, shape index: {}]   ;;  %s5927_s3 = inlined_call_operand.vmem [shape: f32[2,1,128], index: 3, kind: input, shape index: {}]   ;;  %s5928_s4 = inlined_call_operand.vmem [shape: bf16[2,128,384], index: 4, kind: input, shape index: {}]   ;;  %s5929_s5 = inlined_call_operand.vmem [shape: f32[2,1,384], index: 5, kind: input, shape index: {}]   ;;  %s5930_s6 = inlined_call_operand.vmem [shape: bf16[2,128,128], index: 6, kind: input, shape index: {}]   ;;  %s5931_s7 = inlined_call_operand.vmem [shape: f32[2,1,128], index: 7, kind: input, shape index: {}]   ;;  %s5932_s8 = inlined_call_operand.vmem [shape: f32[2,1,128], index: 8, kind: input, shape index: {}]   ;;  %s5933_s9 = inlined_call_operand.vmem [shape: f32[2,1,128], index: 9, kind: input, shape index: {}]   ;;  %s5934_s10 = inlined_call_operand.vmem [shape: bf16[2,128,128], index: 10, kind: input, shape index: {}]   ;;  %s5935_s11 = inlined_call_operand.vmem [shape: f32[2,1,128], index: 11, kind: input, shape index: {}]   ;;  %s5936_s12 = inlined_call_operand.vmem [shape: bf16[2,128,256], index: 12, kind: input, shape index: {}]   ;;  %s5937_s13 = inlined_call_operand.vmem [shape: f32[2,1,256], index: 13, kind: input, shape index: {}]   ;;  %s5938_s14 = inlined_call_operand.vmem [shape: bf16[2,128,128], index: 14, kind: input, shape index: {}]   ;;  %s5939_s15 = inlined_call_operand.vmem [shape: f32[2,1,128], index: 15, kind: input, shape index: {}]   ;;  %s5940_s16 = inlined_call_operand.vmem [shape: f32[2,1,128], index: 16, kind: input, shape index: {}]   ;;  %s5941_s17 = inlined_call_operand.vmem [shape: f32[2,1,128], index: 17, kind: input, shape index: {}]   ;;  %s5942_s18 = inlined_call_operand.vmem [shape: bf16[2,128,512], index: 18, kind: input, shape index: {}]   ;;  %s5943_s19 = inlined_call_operand.vmem [shape: f32[2,1,512], index: 19, kind: input, shape index: {}]   ;;  %s5944_s20 = inlined_call_operand.vmem [shape: bf16[2,512,128], index: 20, kind: input, shape index: {}]   ;;  %s5945_s21 = inlined_call_operand.vmem [shape: f32[2,1,128], index: 21, kind: input, shape index: {}]   ;;  %s5946_s22 = inlined_call_operand.vmem [shape: f32[1,128], index: 22, kind: input, shape index: {}]   ;;  %s5947_s23 = inlined_call_operand.vmem [shape: f32[1,128], index: 23, kind: input, shape index: {}]   ;;  %s5948_s24 = inlined_call_operand.vmem [shape: bf16[128,128], index: 24, kind: input, shape index: {}]   ;;  %s5949_s25 = inlined_call_operand.vmem [shape: f32[1,128], index: 25, kind: input, shape index: {}]   ;;  %s5950_s26 = inlined_call_operand.hbm [shape: f32[2,8,128], index: 26, kind: output, shape index: {}]  }
   0x1   :  { %5969 = sst [smem:[#allocation23_spill]] %s5924_s0 }
   0x2   :  { %5970 = sst [smem:[#allocation24_spill]] %s5925_s1 }
   0x3   :  { %5971 = sst [smem:[#allocation25_spill]] %s5926_s2 }
   0x4   :  { %5972 = sst [smem:[#allocation26_spill]] %s5927_s3 }
   0x5   :  { %5973 = sst [smem:[#allocation27_spill]] %s5928_s4 }
   0x6   :  { %5974 = sst [smem:[#allocation28_spill]] %s5929_s5 }
   0x7   :  { %5975 = sst [smem:[#allocation29_spill]] %s5930_s6 }
   0x8   :  { %5976 = sst [smem:[#allocation30_spill]] %s5931_s7 }
   0x9   :  { %5977 = sst [smem:[#allocation31_spill]] %s5932_s8 }
   0xa   :  { %5978 = sst [smem:[#allocation32_spill]] %s5933_s9 }
   0xb   :  { %5979 = sst [smem:[#allocation33_spill]] %s5934_s10 }
   0xc   :  { %5980 = sst [smem:[#allocation34_spill]] %s5936_s12 }
   0xd   :  { %5981 = sst [smem:[#allocation35_spill]] %s5937_s13 }
   0xe   :  { %5982 = sst [smem:[#allocation36_spill]] %s5938_s14 }
   0xf   :  { %5983 = sst [smem:[#allocation37_spill]] %s5943_s19 }
  0x10   :  { %5984 = sst [smem:[#allocation38_spill]] %s5944_s20 }
  0x11   :  { %5985 = sst [smem:[#allocation39_spill]] %s5945_s21 }
  0x12   :  { %5986 = sst [smem:[#allocation40_spill]] %s5946_s22 }
  0x13   :  { %5987 = sst [smem:[#allocation41_spill]] %s5947_s23 }
  0x14   :  { %5988 = sst [smem:[#allocation42_spill]] %s5948_s24 }
  0x15   :  { %5989 = sst [smem:[#allocation43_spill]] %s5949_s25 }
  0x16   :  { %5990 = sst [smem:[#allocation44_spill]] %s5950_s26 }
  0x17   :  { %31 = vsyncpa [#allocation4], 0 }
  0x18   :  { %33 = vsyncpa [#allocation4 + $0x1], 0  ;;  %s5190_s27 = smov 0   ;;  %s5192_s3 = smov 0  }
  0x19   :  { %s5194_s7 = smov 0   ;;  %s5196_s28 = smov 0  }
  0x1a   :  { %s5198_s8 = smov 0   ;;  %s5200_s4 = smov 0  }
  0x1b   :  { %s5202_s29 = smov 0   ;;  %s5204_s0 = smov 0  }
  0x1c LB: > { %5991 = sst [smem:[#allocation6_spill]] %s5014_s27  ;;  %s4126_s9 = sadd.s32 4294967295, %s5042_s0   ;;  %s5042_s0 = sphi %s5204_s0, %s39_s0   ;;  %s5038_s29 = sphi %s5202_s29, %s6067_s29   ;;  %s5034_s4 = sphi %s5200_s4, %s6066_s4   ;;  %s5030_s8 = sphi %s5198_s8, %s6065_s8   ;;  %s5026_s28 = sphi %s5196_s28, %s6064_s28   ;;  %s5022_s7 = sphi %s5194_s7, %s6063_s7   ;;  %s5018_s3 = sphi %s5192_s3, %s6062_s3   ;;  %s5014_s27 = sphi %s5190_s27, %s6061_s27  }
  0x1d   : > { %5992 = sst [smem:[#allocation7_spill]] %s5018_s3  ;;  %s4127_s30 = sadd.s32 4294967294, %s5042_s0  }
  0x1e   : > { %5993 = sst [smem:[#allocation8_spill]] %s5022_s7  ;;  %s48_s2 = sadd.s32 1, %s5034_s4 }
  0x1f   : > { %5994 = sst [smem:[#allocation9_spill]] %s5026_s28  ;;  %p49_p0 = scmp.ge.s32.totalorder %s48_s2, 2 }
  0x20   : > { %5995 = sst [smem:[#allocation10_spill]] %s5030_s8  ;;  %s51_s5 = sadd.s32 1, %s5038_s29 }
  0x21   : > { %5996 = sst [smem:[#allocation11_spill]] %s5034_s4  ;;  %p724_p1 = scmp.ne.s32.totalorder %s5022_s7, %s5018_s3 }
  0x22   : > { %5997 = sst [smem:[#allocation12_spill]] %s5038_s29  ;;  %p725_p2 = scmp.eq.s32.totalorder %s4126_s9, 3 }
  0x23   : > { %5998 = sst [smem:[#allocation13_spill]] %s5042_s0  ;;  %s6069_s2 = smov (%p49_p0, %s48_s2), 0 }
  0x24   : > { %5999 = sst [smem:[#allocation14_spill]] %s6069_s2  ;;  %s6071_s5 = smov (!%p49_p0, %s51_s5), %s5038_s29 }
  0x25   : > { %p5239_p3 = por %p725_p2, %p724_p1  ;;  %p730_p4 = scmp.ne.s32.totalorder %s5018_s3, %s5014_s27 }
  0x26   : > { %p53_p5 = scmp.ge.s32.totalorder %s6071_s5, 2  ;;  %p731_p6 = scmp.eq.s32.totalorder %s4127_s30, 3 }
  0x27   : > { %s6000_s10 = scalar_select %p5239_p3, 1, 0 }
  0x28   : > { %p4130_p7 = scmp.ge.s32.totalorder %s5042_s0, 1  ;;  %p912_p8 = scmp.lt.s32.totalorder %s5042_s0, 5 }
  0x29   : > { %6001 = sst [smem:[#allocation15_spill]] %s6000_s10  ;;  %s6073_s5 = smov (%p53_p5, %s6071_s5), 0 }
  0x2a   : > { %6002 = sst [smem:[#allocation16_spill]] %s6073_s5  ;;  %p5249_p9 = por %p731_p6, %p730_p4 }
  0x2b   : > { %p913_p10 = pnand %p4130_p7, %p912_p8  ;;  %s711_s1 = ssub.s32 %s5038_s29, %s6073_s5 }
  0x2c   : > { %s6003_s6 = scalar_select %p5249_p9, 1, 0 }
  0x2d   : > { %s714_s9 = sadd.s32 1, %s5022_s7  ;;  %p712_p11 = scmp.eq.s32.totalorder %s711_s1, 0 }
  0x2e   : > { %6004 = sst [smem:[#allocation17_spill]] %s6003_s6  ;;  %916 = sbr.rel (%p913_p10) target bundleno = 4897 (0x1321), region = 124 }
  0x2f   : > { %s5257_s2 = scalar_select %p712_p11, %s5022_s7, %s714_s9  }
  0x31   : > { %6005 = sst [smem:[#allocation18_spill]] %s5257_s2 }
  0x33   : > { %s5956_s30 = sand.u32 1, %s5018_s3   ;;  %p1062_p12 = scmp.lt.s32.totalorder %s5030_s8, 1 }
  0x34   : > { %s5263_s4 = sshll.u32 %s5956_s30, 3  ;;  %p1070_p13 = scmp.lt.s32.totalorder %s5026_s28, 1 }
  0x35   : > { %s1063_s6 = scalar_select %p1062_p12, %s5030_s8, 1 }
  0x36   : > { %s5268_s27 = scalar_select %p1070_p13, %s5026_s28, 1 }
  0x37   : > { %s4132_s1 = sshll.u32 %s1063_s6, 3  ;;  %s6006_s29 = sld [smem:[#allocation23_spill]] }
  0x38   : > { %s6008_s0 = sld [smem:[#allocation24_spill]]  ;;  %s4643_s28 = smul.u32 192, %s5268_s27 }
  0x39   : > { %s4320_s5 = sshll.u32 %s5268_s27, 6  ;;  %s6012_s21 = sld [smem:[#allocation29_spill]] }
  0x3a   : > { %s6014_s3 = sld [smem:[#allocation27_spill]]  ;;  %s4322_s6 = sshll.u32 %s5268_s27, 7 }
  0x3b   : > { %s6017_s25 = sld [smem:[#allocation28_spill]]  ;;  %s4141_s9 = sshll.u32 %s5268_s27, 1 }
  0x3c   : > { %s6021_s12 = sld [smem:[#allocation34_spill]]  ;;  %s4324_s19 = sshll.u32 %s5268_s27, 8 }
  0x3d   : > { %s5273_s30 = scalar_lea.vmem %s6006_s29, %s4132_s1  ;;  %s4644_s29 = smul.u32 3, %s5268_s27 }
  0x3e   : > { %6007 = sst [smem:[#allocation19_spill]] %s5273_s30  ;;  %s5278_s26 = scalar_lea.vmem %s6008_s0, %s4132_s1 }
  0x3f   : > { %6009 = sst [smem:[#allocation20_spill]] %s5278_s26  ;;  %s5294_s7 = scalar_lea.vmem %s6012_s21, %s4320_s5 }
  0x40   : > { %6013 = sst [smem:[#allocation21_spill]] %s5294_s7  ;;  %s5299_s8 = scalar_lea.vmem %s6014_s3, %s4643_s28 }
  0x41   : > { %6015 = sst [smem:[#allocation22_spill]] %s5299_s8  ;;  %s5308_s26 = scalar_lea.vmem %s6017_s25, %s4644_s29 }
  0x42   : > { %s6020_s8 = sld [smem:[#allocation33_spill]]  ;;  %s5331_s30 = scalar_lea.vmem %s6021_s12, %s4322_s6 }
  0x43   : > { %s6022_s13 = sld [smem:[#allocation35_spill]]  ;;  %s5360_s24 = scalar_lea.vmem %s5942_s18, %s4324_s19 }
  0x44   : > { %s6023_s14 = sld [smem:[#allocation36_spill]] }
  0x45   : > { %s6024_s12 = sld [smem:[#allocation37_spill]] }
  0x46   : > { %s6025_s2 = sld [smem:[#allocation38_spill]] }
  0x47   : > { %s6026_s1 = sld [smem:[#allocation39_spill]] }
  0x48   : > { %s5321_s10 = scalar_lea.vmem %s6020_s8, %s4320_s5 }
  0x49   : > { %s5337_s21 = scalar_lea.vmem %s6022_s13, %s4141_s9  ;;  %s1061_s13 = scalar_lea.vmem [#allocation3], %s5263_s4 }
  0x4a   : > { %s5342_s28 = scalar_lea.vmem %s6023_s14, %s4320_s5  ;;  %s4146_s5 = sshll.u32 %s5268_s27, 2 }
  0x4b   : > { %s5366_s3 = scalar_lea.vmem %s6024_s12, %s4146_s5  ;;  %s6027_s14 = sld [smem:[#allocation9_spill]] }
  0x4c   : > { %s5371_s25 = scalar_lea.vmem %s6025_s2, %s4324_s19 }
  0x4d   : > { %s1146_s7 = scalar_lea.vmem %s6026_s1, %s5268_s27 }
  0x51   : > { %p4149_p0 = scmp.ne.s32.totalorder %s6027_s14, 0 }
  0x52   : > { %s6028_s9 = sld [smem:[#allocation19_spill]] (!%p4149_p0) }
  0x53   : > { %1151 = sbr.rel (%p4149_p0) target bundleno = 90 (0x5a), region = 128 }
  0x58   : > { %v1152_v0 = vld [vmem:[%s6028_s9] sm:$0xff] }
  0x59   : > { %1153 = vst [vmem:[#allocation2] sm:$0xff] %v1152_v0 }
  0x5a PF: > { %s6029_s12 = sld [smem:[#allocation22_spill]]  ;;  %v5044_v4 = vmov 0.0   ;;  %v5045_v23 = vmov 0   ;;  %vm5046_vm0 = vmmov 0   ;;  %v1219_v42 = vlaneseq  ;;  %v1217_v45 = vld [vmem:[%s5308_s26] sm:$0x7]  ;;  %s6042_s1 = scalar_lea.vmem %s5935_s11, %s5268_s27 }
  0x5b   : > { %4447 = vmatprep.subr.bf16.mxu1 %v5044_v4  ;;  %1394 = vmatprep.mubr.bf16.mxu0 %v5045_v23  ;;  %s6030_s6 = sld [smem:[#allocation25_spill]]  ;;  %vm1451_vm1 = vcmask 261120   ;;  %s5047_s26 = smov 96   ;;  %vm1514_vm2 = vcmask 1043456   ;;  %vm1500_vm4 = vcmask 64512   ;;  %vm1912_vm5 = vcmask 523264  }
  0x5c   : > { %4463 = vmatprep.mubr.msk.bf16.mxu1 %vm5046_vm0, %v5044_v4  ;;  %s6032_s0 = sld [smem:[#allocation26_spill]]  ;;  %v5435_v43 = vshrl.u32 %v1219_v42, 7  ;;  %s5048_s22 = smov 32   ;;  %vm1914_vm6 = vcmask 785408   ;;  %vm2382_vm7 = vcmask 1041408   ;;  %vm2383_vm8 = vcmask 1042432  }
  0x5d   : > { %s5049_s2 = smov 64   ;;  %s6034_s29 = sld [smem:[#allocation21_spill]]  ;;  %vm2368_vm9 = vcmask 39936  }
  0x5e   : > { %v5438_v44 = vsub.s32 0, %v5435_v43  ;;  %v5442_v46 = vsub.s32 1, %v5435_v43  ;;  %v1229_v48 = vsub.s32 2, %v5435_v43  ;;  %s6037_s23 = sld [smem:[#allocation20_spill]] }
  0x60   : > { %v5380_v1 = vld [vmem:[#allocation2] sm:$0xff]  ;;  %v4726_v2 = vld [vmem:[%s6029_s12 + $0xac] ss:$12 sps:$4 sm:$0xff]   ;;  %v4728_v3 = vld [vmem:[%s6029_s12 + $0xa8] ss:$12 sps:$4 sm:$0xff]   ;;  %v1222_v47 = vrot.slane %v1217_v45, %v5438_v44  ;;  %v1226_v49 = vrot.slane %v1217_v45, %v5442_v46  ;;  %v1230_v56 = vrot.slane %v1217_v45, %v1229_v48 }
  0x61   : > { %1158 = vadd.xlane.f32.xlu0 %v5380_v1  ;;  %v4729_v5 = vld [vmem:[%s6029_s12 + $0xb0] ss:$12 sps:$4 sm:$0xff]   ;;  %v4730_v6 = vld [vmem:[%s6029_s12 + $0x94] ss:$12 sps:$4 sm:$0xff]   ;;  %1362 = vmatprep.subr.bf16.mxu0 %v4726_v2  ;;  %v4733_v8 = vld [vmem:[%s6029_s12 + $0x98] ss:$12 sps:$4 sm:$0xff]   ;;  %s6031_s19 = scalar_lea.vmem %s6030_s6, %s5268_s27 }
  0x62   : > { %v4732_v7 = vld [vmem:[%s6029_s12 + $0x90] ss:$12 sps:$4 sm:$0xff]   ;;  %1363 = vmatpush1.bf16.msra.mxu0 %v4728_v3  ;;  %4448 = vmatpush3.bf16.msra.mxu1 %v4729_v5  ;;  %v4736_v14 = vld [vmem:[%s6029_s12 + $0x78] ss:$12 sps:$4 sm:$0xff]   ;;  %v4737_v15 = vld [vmem:[%s6029_s12 + $0x80] ss:$12 sps:$4 sm:$0xff]   ;;  %s6033_s8 = scalar_lea.vmem %s6032_s0, %s5268_s27 }
  0x63   : > { %1364 = vmatprep.subr.bf16.mxu0 %v4730_v6  ;;  %4449 = vmatprep.subr.bf16.mxu1 %v5044_v4  ;;  %v4734_v13 = vld [vmem:[%s6029_s12 + $0x7c] ss:$12 sps:$4 sm:$0xff]   ;;  %v4738_v16 = vld [vmem:[%s6029_s12 + $0x64] ss:$12 sps:$4 sm:$0xff]   ;;  %v4740_v17 = vld [vmem:[%s6029_s12 + $0x60] ss:$12 sps:$4 sm:$0xff]  }
  0x64   : > { %v4741_v18 = vld [vmem:[%s6029_s12 + $0x68] ss:$12 sps:$4 sm:$0xff]   ;;  %v4742_v19 = vld [vmem:[%s6029_s12 + $0x4c] ss:$12 sps:$4 sm:$0xff]   ;;  %v4745_v21 = vld [vmem:[%s6029_s12 + $0x50] ss:$12 sps:$4 sm:$0xff]  }
  0x65   : > { %v4744_v20 = vld [vmem:[%s6029_s12 + $0x48] ss:$12 sps:$4 sm:$0xff]   ;;  %v4748_v24 = vld [vmem:[%s6029_s12 + $0x30] ss:$12 sps:$4 sm:$0xff]   ;;  %v4749_v25 = vld [vmem:[%s6029_s12 + $0x38] ss:$12 sps:$4 sm:$0xff]  }
  0x66   : > { %1365 = vmatpush1.bf16.msra.mxu0 %v4732_v7  ;;  %4450 = vmatpush3.bf16.msra.mxu1 %v4733_v8  ;;  %v4746_v22 = vld [vmem:[%s6029_s12 + $0x34] ss:$12 sps:$4 sm:$0xff]   ;;  %v4750_v26 = vld [vmem:[%s6029_s12 + $0x1c] ss:$12 sps:$4 sm:$0xff]   ;;  %v4752_v27 = vld [vmem:[%s6029_s12 + $0x18] ss:$12 sps:$4 sm:$0xff]  }
  0x67   : > { %4451 = vmatprep.subr.bf16.mxu1 %v5044_v4  ;;  %1366 = vmatprep.subr.bf16.mxu0 %v4734_v13  ;;  %v4753_v28 = vld [vmem:[%s6029_s12 + $0x20] ss:$12 sps:$4 sm:$0xff]   ;;  %v4754_v29 = vld [vmem:[%s6029_s12 + $0x4] ss:$12 sps:$4 sm:$0xff]   ;;  %v4757_v31 = vld [vmem:[%s6029_s12 + $0x8] ss:$12 sps:$4 sm:$0xff]  }
  0x68   : > { %v4756_v30 = vld [vmem:[%s6029_s12] ss:$12 sps:$4 sm:$0xff]   ;;  %v5461_v5 = vand.u32 127, %v1219_v42  ;;  %s6035_s12 = sld [smem:[#allocation30_spill]] }
  0x69   : > { %v4150_v36 = vld [vmem:[%s6031_s19] ss:$0 sm:$0xff]  ;;  %s6038_s19 = sld [smem:[#allocation31_spill]] }
  0x6a   : > { %1367 = vmatpush1.bf16.msra.mxu0 %v4736_v14  ;;  %4452 = vmatpush3.bf16.msra.mxu1 %v4737_v15  ;;  %v4151_v38 = vld [vmem:[%s6033_s8] ss:$0 sm:$0xff]  ;;  %vm1447_vm3 = vcmp.le.s32.totalorder %v5461_v5, %v5435_v43  ;;  %s6047_s6 = sld [smem:[#allocation9_spill]] }
  0x6b   : > { %4453 = vmatprep.subr.bf16.mxu1 %v5044_v4  ;;  %1368 = vmatprep.subr.bf16.mxu0 %v4738_v16 }
  0x6e   : > { %1369 = vmatpush1.bf16.msra.mxu0 %v4740_v17  ;;  %4454 = vmatpush3.bf16.msra.mxu1 %v4741_v18  ;;  %s6036_s14 = scalar_lea.vmem %s6035_s12, %s5268_s27  ;;  %s6044_s12 = scalar_lea.vmem %s5940_s16, %s5268_s27 }
  0x6f   : > { %1370 = vmatprep.subr.bf16.mxu0 %v4742_v19  ;;  %4455 = vmatprep.subr.bf16.mxu1 %v5044_v4  ;;  %s6039_s20 = scalar_lea.vmem %s6038_s19, %s5268_s27 }
  0x70   : > { %p4304_p1 = scmp.ne.s32.totalorder %s6047_s6, 1 }
  0x71   : > { %s6048_s19 = sld [smem:[#allocation42_spill]] (!%p4304_p1) }
  0x72   : > { %1371 = vmatpush1.bf16.msra.mxu0 %v4744_v20  ;;  %4456 = vmatpush3.bf16.msra.mxu1 %v4745_v21 }
  0x73   : > { %1372 = vmatprep.subr.bf16.mxu0 %v4746_v22  ;;  %4457 = vmatprep.subr.bf16.mxu1 %v5044_v4 }
  0x76   : > { %1373 = vmatpush1.bf16.msra.mxu0 %v4748_v24  ;;  %4458 = vmatpush3.bf16.msra.mxu1 %v4749_v25 }
  0x77   : > { %1374 = vmatprep.subr.bf16.mxu0 %v4750_v26  ;;  %4459 = vmatprep.subr.bf16.mxu1 %v5044_v4 }
  0x7a   : > { %1375 = vmatpush1.bf16.msra.mxu0 %v4752_v27  ;;  %4460 = vmatpush3.bf16.msra.mxu1 %v4753_v28 }
  0x7b   : > { %1376 = vmatprep.subr.bf16.mxu0 %v4754_v29  ;;  %4461 = vmatprep.subr.bf16.mxu1 %v5044_v4 }
  0x7e   : > { %1377 = vmatpush1.bf16.msra.mxu0 %v4756_v30  ;;  %4462 = vmatpush3.bf16.msra.mxu1 %v4757_v31 }
  0x7f   : > { %4467 = vmatprep.subr.bf16.mxu1 %v5044_v4  ;;  %4491 = vmatprep.subr.bf16.mxu0 %v5044_v4 }
  0xea   : > { %v1159_v9 = vpop.xlane.xlu0 %1158 }
  0xeb   : > { %v1161_v10 = vmul.f32 0.0078125, %v1159_v9 }
  0xed   : > { %v1162_v11 = vsub.f32 %v5380_v1, %v1161_v10 }
  0xef   : > { %v1163_v12 = vmul.f32 %v1162_v11, %v1162_v11 }
  0xf1   : > { %1164 = vadd.xlane.f32.xlu0 %v1163_v12 }
 0x17a   : > { %v1165_v32 = vpop.xlane.xlu0 %1164 }
 0x17b   : > { %v1166_v33 = vmul.f32 0.0078125, %v1165_v32 }
 0x17d   : > { %v1167_v34 = vadd.f32 1e-05, %v1166_v33 }
 0x17f   : > { %4886 = vrsqrt.f32 %v1167_v34 }
 0x18c   : > { %v4887_v35 = vpop.eup %4886 }
 0x18d   : > { %v1169_v37 = vmul.f32 %v4887_v35, %v1162_v11 }
 0x18f   : > { %v1176_v39 = vmul.f32 %v4150_v36, %v1169_v37 }
 0x191   : > { %v1183_v40 = vadd.f32 %v4151_v38, %v1176_v39 }
 0x193   : > { %v1184_v41 = vpack.c.bf16 %v1183_v40, %v1183_v40 }
 0x195   : > { %1395 = vmatmul.mubr.bf16.vlgmr.msra.gmra.mxu0 %v1184_v41  ;;  %4464 = vmatmul.mubr.bf16.vlgmr.msra.gmra.mxu1 %v1184_v41 }
 0x196   : > { %4469 = vmatprep.mubr.msk.bf16.mxu1 %vm5046_vm0, %v5044_v4  ;;  %4493 = vmatprep.mubr.msk.bf16.mxu0 %vm5046_vm0, %v5044_v4 }
 0x255   : > { %v1396_v50 = vpop.f32.mrf.mxu0  ;;  %v1437_v51 = vpop.f32.mrf.mxu1 }
 0x256   : > { %v1397_v52 = vadd.f32 %v1396_v50, %v1222_v47  ;;  %v1438_v63 = vadd.f32 %v1437_v51, %v1230_v56 }
 0x257   : > { %v1398_v53 = vpop.f32.mrf.mxu0  ;;  %v4465_v54 = vpop.f32.mrf.mxu1 }
 0x258   : > { %v1448_v55 = vpack.c.bf16 %v1397_v52, %v1397_v52  ;;  %v1399_v57 = vadd.f32 %v1398_v53, %v1226_v49  ;;  %v5453_v2 = vpack.c.bf16 %v1438_v63, %v1438_v63 }
 0x259   : > { %v1400_v58 = vpop.f32.mrf.mxu0  ;;  %v1440_v59 = vpop.f32.mrf.mxu1 }
 0x25a   : > { %v1449_v60 = vpack.c.bf16 %v1399_v57, %v1399_v57  ;;  %1561 = vrot.lane.b32.xlu0 %v1448_v55, %s5047_s26  ;;  %v1516_v3 = vsel %vm1514_vm2, %v5453_v2, 0 }
 0x25b   : > { %v1401_v61 = vpop.f32.mrf.mxu0  ;;  %v4466_v62 = vpop.f32.mrf.mxu1 }
 0x25c   : > { %v1456_v0 = vsel %vm1451_vm1, %v1449_v60, 0 }
 0x25d   : > { %4468 = vmatpush3.bf16.xpose.msra.mxu1 %v1456_v0 }
 0x25e   : > { %1787 = vrot.lane.b32.xlu0 %v1448_v55, %s5048_s22  ;;  %4473 = vmatprep.subr.bf16.mxu1 %v5044_v4 }
 0x264   : > { %4470 = vmatmul.mubr.msk.bf16.vlgmr.msra.gmra.mxu1 %vm1451_vm1, %v1448_v55 }
 0x265   : > { %4474 = vmatpush3.bf16.msra.mxu1 %v1516_v3  ;;  %4475 = vmatprep.mubr.msk.bf16.mxu1 %vm5046_vm0, %v5044_v4 }
 0x266   : > { %4479 = vmatprep.subr.bf16.mxu1 %v5044_v4 }
 0x2cc   : > { %v1562_v24 = vpop.permute.xlu0 %1561 }
 0x2d0   : > { %v1788_v27 = vpop.permute.xlu0 %1787 }
 0x324   : > { %v1492_v6 = vpop.f32.mrf.mxu1 }
 0x325   : > { %v1498_v7 = vmul.f32 0.17677669, %v1492_v6 }
 0x326   : > { %v4471_v8 = vpop.f32.mrf.mxu1 }
 0x327   : > { %v1499_v9 = vsel %vm1447_vm3, %v1498_v7, -3.4028235e+38 }
 0x328   : > { %v1495_v10 = vpop.f32.mrf.mxu1  ;;  %v1501_v11 = vsel %vm1500_vm4, %v1499_v9, -inf }
 0x329   : > { %1502 = vmax.xlane.f32.xlu1 %v1501_v11 }
 0x32a   : > { %v4472_v12 = vpop.f32.mrf.mxu1 }
 0x33a   : > { %1564 = vrot.lane.b32.xlu1 %v1449_v60, %s5047_s26 }
 0x33e   : > { %1677 = vrot.lane.b32.xlu1 %v1449_v60, %s5049_s2 }
 0x342   : > { %1675 = vrot.lane.b32.xlu1 %v1448_v55, %s5049_s2 }
 0x346   : > { %1789 = vrot.lane.b32.xlu1 %v1449_v60, %s5048_s22 }
 0x3b2   : > { %v1503_v13 = vpop.xlane.xlu1 %1502 }
 0x3b3   : > { %v1504_v14 = vsub.f32 %v1499_v9, %v1503_v13 }
 0x3b5   : > { %v1505_v15 = vmul.f32 1.442695, %v1504_v14 }
 0x3b6   : > { %v1565_v16 = vpop.permute.xlu1 %1564 }
 0x3b7   : > { %4888 = vpow2.f32 %v1505_v15  ;;  %v1570_v26 = vsel %vm1451_vm1, %v1565_v16, 0 }
 0x3ba   : > { %v1678_v17 = vpop.permute.xlu1 %1677 }
 0x3bb   : > { %v1683_v18 = vsel %vm1451_vm1, %v1678_v17, 0 }
 0x3bc   : > { %4492 = vmatpush3.bf16.xpose.msra.mxu0 %v1683_v18 }
 0x3bd   : > { %4503 = vmatprep.subr.bf16.mxu0 %v5044_v4 }
 0x3be   : > { %v1676_v19 = vpop.permute.xlu1 %1675 }
 0x3c2   : > { %v1790_v20 = vpop.permute.xlu1 %1789 }
 0x3c3   : > { %v1795_v21 = vsel %vm1451_vm1, %v1790_v20, 0  ;;  %4494 = vmatmul.mubr.msk.bf16.vlgmr.msra.gmra.mxu0 %vm1451_vm1, %v1676_v19  ;;  %v4758_v20 = vld [vmem:[%s6034_s29 + $0x38] sm:$0xff]  }
 0x3c4   : > { %v5477_v22 = vpop.eup %4888  ;;  %4504 = vmatpush3.bf16.xpose.msra.mxu0 %v1795_v21  ;;  %4505 = vmatprep.mubr.msk.bf16.mxu0 %vm5046_vm0, %v5044_v4  ;;  %v4759_v21 = vld [vmem:[%s6034_s29 + $0x30] sm:$0xff]  }
 0x3c5   : > { %v1510_v25 = vpack.c.bf16 %v5477_v22, %v5477_v22  ;;  %4515 = vmatprep.subr.bf16.mxu0 %v5044_v4  ;;  %v1507_v12 = vsel %vm1500_vm4, %v5477_v22, 0.0  ;;  %v4760_v22 = vld [vmem:[%s6034_s29 + $0x28] sm:$0xff]  }
 0x3c7   : > { %4476 = vmatmul.mubr.msk.bf16.vlgmr.msra.gmra.mxu1 %vm1500_vm4, %v1510_v25  ;;  %v4761_v25 = vld [vmem:[%s6034_s29 + $0x20] sm:$0xff]  }
 0x3c8   : > { %4480 = vmatpush3.bf16.xpose.msra.mxu1 %v1570_v26  ;;  %4481 = vmatprep.mubr.msk.bf16.mxu1 %vm5046_vm0, %v5044_v4  ;;  %v4762_v26 = vld [vmem:[%s6034_s29 + $0x18] sm:$0xff]  }
 0x3c9   : > { %4485 = vmatprep.subr.bf16.mxu1 %v5044_v4 }
 0x3cb   : > { %4506 = vmatmul.mubr.msk.bf16.vlgmr.msra.gmra.mxu0 %vm1451_vm1, %v1788_v27 }
 0x3cc   : > { %4531 = vmatprep.mubr.msk.bf16.mxu0 %vm5046_vm0, %v5044_v4  ;;  %4516 = vmatpush3.bf16.msra.mxu0 %v4758_v20 }
 0x3cd   : > { %4517 = vmatprep.subr.bf16.mxu0 %v5044_v4 }
 0x3cf   : > { %4482 = vmatmul.mubr.msk.bf16.vlgmr.msra.gmra.mxu1 %vm1451_vm1, %v1562_v24 }
 0x3d0   : > { %4487 = vmatprep.mubr.msk.bf16.mxu1 %vm5046_vm0, %v5044_v4  ;;  %4518 = vmatpush3.bf16.msra.mxu0 %v4759_v21 }
 0x3d1   : > { %4519 = vmatprep.subr.bf16.mxu0 %v5044_v4 }
 0x3d4   : > { %4520 = vmatpush3.bf16.msra.mxu0 %v4760_v22 }
 0x3d5   : > { %4521 = vmatprep.subr.bf16.mxu0 %v5044_v4 }
 0x3d8   : > { %4522 = vmatpush3.bf16.msra.mxu0 %v4761_v25  ;;  %v4785_v25 = vld [vmem:[%s5331_s30 + $0x24] ss:$8 sps:$4 sm:$0xff]  }
 0x3d9   : > { %4523 = vmatprep.subr.bf16.mxu0 %v5044_v4 }
 0x3dc   : > { %4524 = vmatpush3.bf16.msra.mxu0 %v4762_v26  ;;  %v4783_v26 = vld [vmem:[%s5331_s30 + $0x20] ss:$8 sps:$4 sm:$0xff]  }
 0x3dd   : > { %4525 = vmatprep.subr.bf16.mxu0 %v5044_v4 }
 0x483   : > { %v1719_v28 = vpop.f32.mrf.mxu0 }
 0x484   : > { %v1725_v29 = vmul.f32 0.17677669, %v1719_v28  ;;  %v4763_v28 = vld [vmem:[%s6034_s29 + $0x10] sm:$0xff]  }
 0x485   : > { %v4495_v30 = vpop.f32.mrf.mxu0  ;;  %4526 = vmatpush3.bf16.msra.mxu0 %v4763_v28  ;;  %v4789_v28 = vld [vmem:[%s5331_s30 + $0x14] ss:$8 sps:$4 sm:$0xff]  }
 0x486   : > { %v1726_v31 = vsel %vm1447_vm3, %v1725_v29, -3.4028235e+38  ;;  %v4764_v29 = vld [vmem:[%s6034_s29 + $0x8] sm:$0xff]   ;;  %4527 = vmatprep.subr.bf16.mxu0 %v5044_v4 }
 0x487   : > { %v5498_v32 = vpop.f32.mrf.mxu1  ;;  %v1722_v33 = vpop.f32.mrf.mxu0  ;;  %v1727_v34 = vsel %vm1500_vm4, %v1726_v31, -inf }
 0x488   : > { %1728 = vmax.xlane.f32.xlu0 %v1727_v34 }
 0x489   : > { %v4477_v35 = vpop.f32.mrf.mxu1  ;;  %v4496_v36 = vpop.f32.mrf.mxu0  ;;  %4528 = vmatpush3.bf16.msra.mxu0 %v4764_v29  ;;  %v4787_v29 = vld [vmem:[%s5331_s30 + $0x10] ss:$8 sps:$4 sm:$0xff]  }
 0x48a   : > { %4529 = vmatprep.subr.bf16.mxu0 %v5044_v4 }
 0x48b   : > { %v1555_v37 = vpop.f32.mrf.mxu1  ;;  %v1831_v38 = vpop.f32.mrf.mxu0 }
 0x48c   : > { %v1837_v39 = vmul.f32 0.17677669, %v1831_v38  ;;  %v4765_v37 = vld [vmem:[%s6034_s29] sm:$0xff]  }
 0x48d   : > { %v4478_v40 = vpop.f32.mrf.mxu1  ;;  %v4507_v41 = vpop.f32.mrf.mxu0  ;;  %4530 = vmatpush3.bf16.msra.mxu0 %v4765_v37  ;;  %v4795_v37 = vld [vmem:[%s5321_s10 + $0x10] sm:$0xff]  }
 0x48e   : > { %v1838_v42 = vsel %vm1447_vm3, %v1837_v39, -3.4028235e+38 }
 0x48f   : > { %v1606_v45 = vpop.f32.mrf.mxu1  ;;  %v1834_v47 = vpop.f32.mrf.mxu0  ;;  %v1839_v49 = vsel %vm1500_vm4, %v1838_v42, -inf }
 0x490   : > { %v1612_v50 = vmul.f32 0.17677669, %v1606_v45  ;;  %1840 = vmax.xlane.f32.xlu0 %v1839_v49 }
 0x491   : > { %v4483_v51 = vpop.f32.mrf.mxu1  ;;  %v4508_v52 = vpop.f32.mrf.mxu0 }
 0x492   : > { %v1613_v53 = vsel %vm1447_vm3, %v1612_v50, -3.4028235e+38 }
 0x493   : > { %v1609_v54 = vpop.f32.mrf.mxu1  ;;  %v1614_v55 = vsel %vm1500_vm4, %v1613_v53, -inf }
 0x494   : > { %1615 = vmax.xlane.f32.xlu1 %v1614_v55 }
 0x495   : > { %v4484_v56 = vpop.f32.mrf.mxu1 }
 0x4a5   : > { %1737 = vrot.lane.b32.xlu1 %v5453_v2, %s5049_s2 }
 0x4a6   : > { %1625 = vrot.lane.b32.xlu0 %v5453_v2, %s5047_s26 }
 0x4a9   : > { %1849 = vrot.lane.b32.xlu1 %v5453_v2, %s5048_s22 }
 0x511   : > { %v1729_v57 = vpop.xlane.xlu0 %1728 }
 0x512   : > { %v1730_v58 = vsub.f32 %v1726_v31, %v1729_v57 }
 0x514   : > { %v1731_v59 = vmul.f32 1.442695, %v1730_v58 }
 0x516   : > { %4890 = vpow2.f32 %v1731_v59 }
 0x519   : > { %v1841_v60 = vpop.xlane.xlu0 %1840 }
 0x51a   : > { %v1842_v61 = vsub.f32 %v1838_v42, %v1841_v60 }
 0x51c   : > { %v1843_v62 = vmul.f32 1.442695, %v1842_v61 }
 0x51d   : > { %v1626_v63 = vpop.permute.xlu0 %1625  ;;  %v1616_v0 = vpop.xlane.xlu1 %1615 }
 0x51e   : > { %4892 = vpow2.f32 %v1843_v62  ;;  %v1631_v3 = vsel %vm1514_vm2, %v1626_v63, 0  ;;  %v1617_v5 = vsub.f32 %v1613_v53, %v1616_v0 }
 0x51f   : > { %4486 = vmatpush3.bf16.msra.mxu1 %v1631_v3 }
 0x520   : > { %v1618_v6 = vmul.f32 1.442695, %v1617_v5  ;;  %4497 = vmatprep.subr.bf16.mxu1 %v5044_v4 }
 0x521   : > { %v1738_v11 = vpop.permute.xlu1 %1737 }
 0x522   : > { %4894 = vpow2.f32 %v1618_v6  ;;  %v1743_v15 = vsel %vm1514_vm2, %v1738_v11, 0  ;;  %v4771_v11 = vld [vmem:[%s5331_s30 + $0x64] ss:$8 sps:$4 sm:$0xff]  }
 0x523   : > { %v4891_v7 = vpop.eup %4890 }
 0x524   : > { %v1733_v2 = vsel %vm1500_vm4, %v4891_v7, 0.0  ;;  %v1736_v17 = vpack.c.bf16 %v4891_v7, %v4891_v7 }
 0x525   : > { %1734 = vadd.xlane.f32.xlu0 %v1733_v2  ;;  %v1850_v16 = vpop.permute.xlu1 %1849 }
 0x526   : > { %v1855_v18 = vsel %vm1514_vm2, %v1850_v16, 0  ;;  %v4777_v16 = vld [vmem:[%s5331_s30 + $0x44] ss:$8 sps:$4 sm:$0xff]  }
 0x52b   : > { %v4893_v8 = vpop.eup %4892 }
 0x52c   : > { %v1845_v9 = vsel %vm1500_vm4, %v4893_v8, 0.0  ;;  %v1848_v19 = vpack.c.bf16 %v4893_v8, %v4893_v8 }
 0x52d   : > { %1846 = vadd.xlane.f32.xlu0 %v1845_v9  ;;  %v4766_v9 = vld [vmem:[%s5331_s30 + $0x70] ss:$8 sps:$4 sm:$0xff]  }
 0x52f   : > { %v4895_v10 = vpop.eup %4894 }
 0x530   : > { %v1620_v13 = vsel %vm1500_vm4, %v4895_v10, 0.0  ;;  %v1623_v14 = vpack.c.bf16 %v4895_v10, %v4895_v10  ;;  %v4768_v10 = vld [vmem:[%s5331_s30 + $0x74] ss:$8 sps:$4 sm:$0xff]  }
 0x531   : > { %1508 = vadd.xlane.f32.xlu0 %v1507_v12  ;;  %1621 = vadd.xlane.f32.xlu1 %v1620_v13  ;;  %v4778_v12 = vld [vmem:[%s5321_s10 + $0x38] sm:$0xff]   ;;  %v4769_v13 = vld [vmem:[%s5331_s30 + $0x60] ss:$8 sps:$4 sm:$0xff]  }
 0x532   : > { %4488 = vmatmul.mubr.msk.bf16.vlgmr.msra.gmra.mxu1 %vm1500_vm4, %v1623_v14  ;;  %2277 = vmatprep.subr.bf16.mxu0 %v4768_v10  ;;  %v4774_v14 = vld [vmem:[%s5331_s30 + $0x54] ss:$8 sps:$4 sm:$0xff]  }
 0x533   : > { %4498 = vmatpush3.bf16.msra.mxu1 %v1743_v15  ;;  %4499 = vmatprep.mubr.msk.bf16.mxu1 %vm5046_vm0, %v5044_v4  ;;  %v4772_v15 = vld [vmem:[%s5331_s30 + $0x50] ss:$8 sps:$4 sm:$0xff]  }
 0x534   : > { %4509 = vmatprep.subr.bf16.mxu1 %v5044_v4 }
 0x53a   : > { %4500 = vmatmul.mubr.msk.bf16.vlgmr.msra.gmra.mxu1 %vm1500_vm4, %v1736_v17  ;;  %v4775_v17 = vld [vmem:[%s5331_s30 + $0x40] ss:$8 sps:$4 sm:$0xff]  }
 0x53b   : > { %4510 = vmatpush3.bf16.msra.mxu1 %v1855_v18  ;;  %4511 = vmatprep.mubr.msk.bf16.mxu1 %vm5046_vm0, %v5044_v4  ;;  %v4781_v18 = vld [vmem:[%s5331_s30 + $0x34] ss:$8 sps:$4 sm:$0xff]  }
 0x53c   : > { %4535 = vmatprep.subr.bf16.mxu1 %v5044_v4 }
 0x542   : > { %4512 = vmatmul.mubr.msk.bf16.vlgmr.msra.gmra.mxu1 %vm1500_vm4, %v1848_v19  ;;  %v4779_v19 = vld [vmem:[%s5331_s30 + $0x30] ss:$8 sps:$4 sm:$0xff]  }
 0x543   : > { %4551 = vmatprep.mubr.msk.bf16.mxu1 %vm5046_vm0, %v5044_v4  ;;  %4536 = vmatpush3.bf16.msra.mxu1 %v4778_v12 }
 0x544   : > { %4537 = vmatprep.subr.bf16.mxu1 %v5044_v4 }
 0x5ae   : > { %v1735_v27 = vpop.xlane.xlu0 %1734 }
 0x5b6   : > { %v1847_v31 = vpop.xlane.xlu0 %1846 }
 0x5ba   : > { %v1622_v24 = vpop.xlane.xlu1 %1621  ;;  %v1509_v55 = vpop.xlane.xlu0 %1508 }
 0x5bb   : > { %4896 = vrcp.f32 %v1622_v24 }
 0x5bc   : > { %4898 = vrcp.f32 %v1735_v27  ;;  %v4786_v27 = vld [vmem:[%s5321_s10 + $0x28] sm:$0xff]  }
 0x5bd   : > { %4900 = vrcp.f32 %v1847_v31  ;;  %v4793_v31 = vld [vmem:[%s5331_s30 + $0x4] ss:$8 sps:$4 sm:$0xff]  }
 0x5be   : > { %4902 = vrcp.f32 %v1509_v55 }
 0x5c8   : > { %v4897_v30 = vpop.eup %4896 }
 0x5c9   : > { %v4899_v39 = vpop.eup %4898 }
 0x5ca   : > { %v4901_v49 = vpop.eup %4900 }
 0x5cb   : > { %v4903_v56 = vpop.eup %4902 }
 0x5cc   : > { %v1559_v58 = vmul.f32 %v4903_v56, %v5498_v32  ;;  %v4184_v32 = vld [vmem:[%s6036_s14] ss:$0 sm:$0xff] }
 0x5f2   : > { %v1667_v33 = vpop.f32.mrf.mxu1 }
 0x5f3   : > { %v1674_v34 = vmul.f32 %v4897_v30, %v1667_v33  ;;  %v4790_v30 = vld [vmem:[%s5321_s10 + $0x20] sm:$0xff]  }
 0x5f4   : > { %v4489_v35 = vpop.f32.mrf.mxu1  ;;  %v4791_v33 = vld [vmem:[%s5331_s30] ss:$8 sps:$4 sm:$0xff]   ;;  %s6050_s30 = sld [smem:[#allocation41_spill]] (!%p4304_p1) }
 0x5f5   : > { %1900 = vrot.lane.b32.xlu1 %v1674_v34, %s5048_s22  ;;  %v1155_v34 = vld [vmem:[%s6037_s23] sm:$0x1f]  ;;  %v4794_v35 = vld [vmem:[%s5321_s10 + $0x18] sm:$0xff]   ;;  %s6045_s23 = scalar_lea.vmem %s5941_s17, %s5268_s27 }
 0x5f6   : > { %v1670_v36 = vpop.f32.mrf.mxu1 }
 0x5f7   : > { %v2168_v36 = vpack.c.bf16 %v1155_v34, %v1155_v34 }
 0x5f8   : > { %v4490_v38 = vpop.f32.mrf.mxu1 }
 0x5f9   : > { %v4796_v38 = vld [vmem:[%s5321_s10 + $0x8] sm:$0xff]  }
 0x5fa   : > { %v1779_v40 = vpop.f32.mrf.mxu1 }
 0x5fb   : > { %v1786_v41 = vmul.f32 %v4899_v39, %v1779_v40  ;;  %v4797_v39 = vld [vmem:[%s5321_s10] sm:$0xff]  }
 0x5fc   : > { %v4501_v42 = vpop.f32.mrf.mxu1 }
 0x5fd   : > { %1904 = vrot.lane.b32.xlu0 %v1786_v41, %s5049_s2 }
 0x5fe   : > { %v1782_v45 = vpop.f32.mrf.mxu1 }
 0x600   : > { %v4502_v47 = vpop.f32.mrf.mxu1 }
 0x601   : > { %v4193_v47 = vld [vmem:[%s6039_s20] ss:$0 sm:$0xff] }
 0x602   : > { %v1891_v50 = vpop.f32.mrf.mxu1 }
 0x603   : > { %v1898_v51 = vmul.f32 %v4901_v49, %v1891_v50 }
 0x604   : > { %v4513_v52 = vpop.f32.mrf.mxu1 }
 0x605   : > { %1908 = vrot.lane.b32.xlu1 %v1898_v51, %s5047_s26 }
 0x606   : > { %v1894_v53 = vpop.f32.mrf.mxu1 }
 0x608   : > { %v4514_v54 = vpop.f32.mrf.mxu1 }
 0x609   : > { %v2185_v54 = vld [vmem:[%s5337_s21] sm:$0x3] }
 0x60a   : > { %v2190_v55 = vrot.slane %v2185_v54, %v5438_v44  ;;  %v2194_v56 = vrot.slane %v2185_v54, %v5442_v46 }
 0x667   : > { %v1901_v57 = vpop.permute.xlu1 %1900 }
 0x668   : > { %v1911_v60 = vsel %vm1451_vm1, %v1559_v58, %v1901_v57 }
 0x66f   : > { %v1905_v59 = vpop.permute.xlu0 %1904 }
 0x670   : > { %v1913_v61 = vsel %vm1912_vm5, %v1911_v60, %v1905_v59 }
 0x677   : > { %v1909_v62 = vpop.permute.xlu1 %1908 }
 0x678   : > { %v1915_v63 = vsel %vm1914_vm6, %v1913_v61, %v1909_v62 }
 0x679   : > { %v1916_v0 = vpack.c.bf16 %v1915_v63, %v1915_v63 }
 0x67b   : > { %4532 = vmatmul.mubr.bf16.vlgmr.msra.gmra.mxu0 %v1916_v0 }
 0x67c   : > { %2309 = vmatprep.mubr.bf16.mxu0 %v5045_v23  ;;  %2278 = vmatpush1.bf16.msra.mxu0 %v4766_v9 }
 0x67d   : > { %2279 = vmatprep.subr.bf16.mxu0 %v4771_v11 }
 0x680   : > { %2280 = vmatpush1.bf16.msra.mxu0 %v4769_v13 }
 0x681   : > { %2281 = vmatprep.subr.bf16.mxu0 %v4774_v14 }
 0x684   : > { %2282 = vmatpush1.bf16.msra.mxu0 %v4772_v15 }
 0x685   : > { %2283 = vmatprep.subr.bf16.mxu0 %v4777_v16 }
 0x688   : > { %2284 = vmatpush1.bf16.msra.mxu0 %v4775_v17 }
 0x689   : > { %2285 = vmatprep.subr.bf16.mxu0 %v4781_v18 }
 0x68c   : > { %2286 = vmatpush1.bf16.msra.mxu0 %v4779_v19 }
 0x68d   : > { %2287 = vmatprep.subr.bf16.mxu0 %v4785_v25 }
 0x690   : > { %2288 = vmatpush1.bf16.msra.mxu0 %v4783_v26 }
 0x691   : > { %2289 = vmatprep.subr.bf16.mxu0 %v4789_v28 }
 0x694   : > { %2290 = vmatpush1.bf16.msra.mxu0 %v4787_v29 }
 0x695   : > { %2291 = vmatprep.subr.bf16.mxu0 %v4793_v31 }
 0x698   : > { %2292 = vmatpush1.bf16.msra.mxu0 %v4791_v33 }
 0x699   : > { %4579 = vmatprep.subr.bf16.mxu0 %v5044_v4 }
 0x69b   : > { %2310 = vmatmul.mubr.bf16.vlgmr.msra.gmra.mxu0 %v2168_v36 }
 0x69c   : > { %4581 = vmatprep.mubr.msk.bf16.mxu0 %vm5046_vm0, %v5044_v4 }
 0x73b   : > { %v2022_v3 = vpop.f32.mrf.mxu0 }
 0x73c   : > { %v2023_v5 = vadd.f32 %v4184_v32, %v2022_v3 }
 0x73d   : > { %v4533_v6 = vpop.f32.mrf.mxu0 }
 0x73e   : > { %v5564_v7 = vadd.f32 %v2023_v5, %v5380_v1  ;;  %v4782_v1 = vld [vmem:[%s5321_s10 + $0x30] sm:$0xff]   ;;  %s6040_s10 = sld [smem:[#allocation32_spill]]  ;;  %v4195_v6 = vld [vmem:[%s6042_s1] ss:$0 sm:$0xff] }
 0x73f   : > { %v2025_v2 = vpop.f32.mrf.mxu0  ;;  %4538 = vmatpush3.bf16.msra.mxu1 %v4782_v1 }
 0x740   : > { %2031 = vadd.xlane.f32.xlu1 %v5564_v7  ;;  %4539 = vmatprep.subr.bf16.mxu1 %v5044_v4  ;;  %v5050_v2 = vmov 65535  }
 0x741   : > { %v4534_v8 = vpop.f32.mrf.mxu0 }
 0x742   : > { %v2384_v8 = vsel %vm2382_vm7, 4294967295, %v5050_v2 }
 0x743   : > { %4540 = vmatpush3.bf16.msra.mxu1 %v4786_v27  ;;  %v5632_v12 = vsel %vm2383_vm8, %v2384_v8, 0 }
 0x744   : > { %4541 = vmatprep.subr.bf16.mxu1 %v5044_v4  ;;  %s6041_s8 = scalar_lea.vmem %s6040_s10, %s5268_s27 }
 0x745   : > { %v4194_v50 = vld [vmem:[%s6041_s8] ss:$0 sm:$0xff] }
 0x747   : > { %4542 = vmatpush3.bf16.msra.mxu1 %v4790_v30 }
 0x748   : > { %4543 = vmatprep.subr.bf16.mxu1 %v5044_v4 }
 0x74b   : > { %4544 = vmatpush3.bf16.msra.mxu1 %v4794_v35 }
 0x74c   : > { %4545 = vmatprep.subr.bf16.mxu1 %v5044_v4 }
 0x74f   : > { %4546 = vmatpush3.bf16.msra.mxu1 %v4795_v37 }
 0x750   : > { %4547 = vmatprep.subr.bf16.mxu1 %v5044_v4 }
 0x753   : > { %4548 = vmatpush3.bf16.msra.mxu1 %v4796_v38 }
 0x754   : > { %4549 = vmatprep.subr.bf16.mxu1 %v5044_v4 }
 0x757   : > { %4550 = vmatpush3.bf16.msra.mxu1 %v4797_v39 }
 0x758   : > { %4555 = vmatprep.subr.bf16.mxu1 %v5044_v4 }
 0x75b   : > { %v2311_v57 = vpop.f32.mrf.mxu0 }
 0x75c   : > { %v2312_v58 = vadd.f32 %v2311_v57, %v2190_v55 }
 0x75d   : > { %v2313_v59 = vpop.f32.mrf.mxu0 }
 0x75e   : > { %v2319_v60 = vpack.c.bf16 %v2312_v58, %v2312_v58  ;;  %v2314_v61 = vadd.f32 %v2313_v59, %v2194_v56 }
 0x75f   : > { %v2315_v62 = vpop.f32.mrf.mxu0 }
 0x760   : > { %2435 = vrot.lane.b32.xlu1 %v2319_v60, %s5047_s26  ;;  %v2325_v63 = vsel %vm1451_vm1, %v2319_v60, 0  ;;  %v5630_v9 = vpack.c.bf16 %v2314_v61, %v2314_v61 }
 0x761   : > { %v2316_v0 = vpop.f32.mrf.mxu0 }
 0x762   : > { %v2387_v15 = vand.u32 %v5632_v12, %v5630_v9 }
 0x764   : > { %2547 = vrot.lane.b32.xlu1 %v2319_v60, %s5049_s2 }
 0x7c9   : > { %v2032_v20 = vpop.xlane.xlu1 %2031 }
 0x7ca   : > { %v2033_v21 = vmul.f32 0.0078125, %v2032_v20 }
 0x7cc   : > { %v2034_v22 = vsub.f32 %v5564_v7, %v2033_v21 }
 0x7ce   : > { %v2035_v24 = vmul.f32 %v2034_v22, %v2034_v22 }
 0x7d0   : > { %2036 = vadd.xlane.f32.xlu0 %v2035_v24 }
 0x7d2   : > { %v2436_v32 = vpop.permute.xlu1 %2435 }
 0x7d6   : > { %v2548_v3 = vpop.permute.xlu1 %2547 }
 0x7d7   : > { %v2553_v5 = vsel %vm1451_vm1, %v2548_v3, 0 }
 0x7d8   : > { %4580 = vmatpush3.bf16.xpose.msra.mxu0 %v2553_v5 }
 0x7d9   : > { %4591 = vmatprep.subr.bf16.mxu0 %v5044_v4 }
 0x859   : > { %v2037_v40 = vpop.xlane.xlu0 %2036 }
 0x85a   : > { %v2038_v41 = vmul.f32 0.0078125, %v2037_v40 }
 0x85c   : > { %v2039_v42 = vadd.f32 1e-05, %v2038_v41  ;;  %v2441_v41 = vsel %vm1451_vm1, %v2436_v32, 0 }
 0x85e   : > { %4904 = vrsqrt.f32 %v2039_v42 }
 0x86b   : > { %v4905_v45 = vpop.eup %4904 }
 0x86c   : > { %v2041_v49 = vmul.f32 %v4905_v45, %v2034_v22 }
 0x86e   : > { %v2048_v51 = vmul.f32 %v4193_v47, %v2041_v49 }
 0x870   : > { %v2055_v52 = vadd.f32 %v4194_v50, %v2048_v51 }
 0x872   : > { %v2056_v53 = vpack.c.bf16 %v2055_v52, %v2055_v52 }
 0x874   : > { %4552 = vmatmul.mubr.bf16.vlgmr.msra.gmra.mxu1 %v2056_v53 }
 0x875   : > { %4557 = vmatprep.mubr.msk.bf16.mxu1 %vm5046_vm0, %v5044_v4  ;;  %4556 = vmatpush3.bf16.xpose.msra.mxu1 %v2325_v63 }
 0x876   : > { %4561 = vmatprep.subr.bf16.mxu1 %v5044_v4 }
 0x934   : > { %v2162_v10 = vpop.f32.mrf.mxu1 }
 0x935   : > { %v2163_v11 = vadd.f32 %v4195_v6, %v2162_v10 }
 0x936   : > { %v4553_v13 = vpop.f32.mrf.mxu1 }
 0x937   : > { %v2318_v14 = vpack.c.bf16 %v2163_v11, %v2163_v11 }
 0x938   : > { %v2165_v1 = vpop.f32.mrf.mxu1 }
 0x939   : > { %2545 = vrot.lane.b32.xlu1 %v2318_v14, %s5049_s2  ;;  %4558 = vmatmul.mubr.msk.bf16.vlgmr.msra.gmra.mxu1 %vm1451_vm1, %v2318_v14 }
 0x93a   : > { %4562 = vmatpush3.bf16.msra.mxu1 %v2387_v15  ;;  %v4554_v16 = vpop.f32.mrf.mxu1  ;;  %4563 = vmatprep.mubr.msk.bf16.mxu1 %vm5046_vm0, %v5044_v4 }
 0x93b   : > { %4567 = vmatprep.subr.bf16.mxu1 %v5044_v4 }
 0x93d   : > { %2658 = vrot.lane.b32.xlu1 %v2319_v60, %s5048_s22 }
 0x9ab   : > { %v2546_v17 = vpop.permute.xlu1 %2545 }
 0x9ac   : > { %4582 = vmatmul.mubr.msk.bf16.vlgmr.msra.gmra.mxu0 %vm1451_vm1, %v2546_v17 }
 0x9ad   : > { %4593 = vmatprep.mubr.msk.bf16.mxu0 %vm5046_vm0, %v5044_v4 }
 0x9af   : > { %v2659_v18 = vpop.permute.xlu1 %2658 }
 0x9b0   : > { %v2664_v19 = vsel %vm1451_vm1, %v2659_v18, 0 }
 0x9b1   : > { %4592 = vmatpush3.bf16.xpose.msra.mxu0 %v2664_v19 }
 0x9b2   : > { %4603 = vmatprep.subr.bf16.mxu0 %v5044_v4 }
 0x9f9   : > { %v2361_v20 = vpop.f32.mrf.mxu1 }
 0x9fa   : > { %v2367_v21 = vmul.f32 0.17677669, %v2361_v20 }
 0x9fb   : > { %v4559_v22 = vpop.f32.mrf.mxu1 }
 0x9fc   : > { %v2369_v24 = vsel %vm2368_vm9, %v2367_v21, -inf }
 0x9fd   : > { %2370 = vmax.xlane.f32.xlu0 %v2369_v24  ;;  %v2364_v25 = vpop.f32.mrf.mxu1 }
 0x9ff   : > { %v4560_v26 = vpop.f32.mrf.mxu1 }
 0xa00   : > { %v4798_v26 = vld [vmem:[%s5342_s28 + $0x38] sm:$0xff]  }
 0xa13   : > { %2432 = vrot.lane.b32.xlu0 %v2318_v14, %s5047_s26 }
 0xa17   : > { %2656 = vrot.lane.b32.xlu0 %v2318_v14, %s5048_s22 }
 0xa6c   : > { %v2589_v27 = vpop.f32.mrf.mxu0 }
 0xa6d   : > { %v2595_v28 = vmul.f32 0.17677669, %v2589_v27  ;;  %v4799_v27 = vld [vmem:[%s5342_s28 + $0x30] sm:$0xff]  }
 0xa6e   : > { %v4583_v29 = vpop.f32.mrf.mxu0 }
 0xa6f   : > { %v2596_v30 = vsel %vm2368_vm9, %v2595_v28, -inf  ;;  %v4801_v29 = vld [vmem:[%s5342_s28 + $0x20] sm:$0xff]  }
 0xa70   : > { %v2592_v31 = vpop.f32.mrf.mxu0  ;;  %2597 = vmax.xlane.f32.xlu0 %v2596_v30  ;;  %v4802_v30 = vld [vmem:[%s5342_s28 + $0x18] sm:$0xff]  }
 0xa72   : > { %v4584_v33 = vpop.f32.mrf.mxu0 }
 0xa73   : > { %v4803_v33 = vld [vmem:[%s5342_s28 + $0x10] sm:$0xff]  }
 0xa86   : > { %v2371_v34 = vpop.xlane.xlu0 %2370 }
 0xa87   : > { %v2372_v35 = vsub.f32 %v2367_v21, %v2371_v34  ;;  %v4804_v34 = vld [vmem:[%s5342_s28 + $0x8] sm:$0xff]  }
 0xa89   : > { %v2373_v36 = vmul.f32 1.442695, %v2372_v35 }
 0xa8a   : > { %v2433_v37 = vpop.permute.xlu0 %2432 }
 0xa8b   : > { %4906 = vpow2.f32 %v2373_v36 }
 0xa8e   : > { %v2657_v38 = vpop.permute.xlu0 %2656 }
 0xa8f   : > { %4594 = vmatmul.mubr.msk.bf16.vlgmr.msra.gmra.mxu0 %vm1451_vm1, %v2657_v38 }
 0xa90   : > { %4619 = vmatprep.mubr.msk.bf16.mxu0 %vm5046_vm0, %v5044_v4  ;;  %4604 = vmatpush3.bf16.msra.mxu0 %v4798_v26  ;;  %v4818_v26 = vld [vmem:[%s5360_s24 + $0xa0] ss:$16 sps:$4 sm:$0xff]  }
 0xa91   : > { %4605 = vmatprep.subr.bf16.mxu0 %v5044_v4 }
 0xa94   : > { %4606 = vmatpush3.bf16.msra.mxu0 %v4799_v27  ;;  %v4821_v27 = vld [vmem:[%s5360_s24 + $0xa8] ss:$16 sps:$4 sm:$0xff]  }
 0xa95   : > { %4607 = vmatprep.subr.bf16.mxu0 %v5044_v4 }
 0xa98   : > { %v4907_v39 = vpop.eup %4906 }
 0xa99   : > { %v2378_v40 = vpack.c.bf16 %v4907_v39, %v4907_v39  ;;  %v2375_v15 = vsel %vm2368_vm9, %v4907_v39, 0.0 }
 0xa9b   : > { %4564 = vmatmul.mubr.msk.bf16.vlgmr.msra.gmra.mxu1 %vm2368_vm9, %v2378_v40 }
 0xa9c   : > { %4568 = vmatpush3.bf16.xpose.msra.mxu1 %v2441_v41  ;;  %4569 = vmatprep.mubr.msk.bf16.mxu1 %vm5046_vm0, %v5044_v4  ;;  %v4805_v41 = vld [vmem:[%s5342_s28] sm:$0xff]  }
 0xa9d   : > { %4573 = vmatprep.subr.bf16.mxu1 %v5044_v4 }
 0xaa3   : > { %4570 = vmatmul.mubr.msk.bf16.vlgmr.msra.gmra.mxu1 %vm1451_vm1, %v2433_v37 }
 0xaa4   : > { %4575 = vmatprep.mubr.msk.bf16.mxu1 %vm5046_vm0, %v5044_v4 }
 0xaf9   : > { %v2598_v62 = vpop.xlane.xlu0 %2597 }
 0xafa   : > { %v2599_v63 = vsub.f32 %v2595_v28, %v2598_v62 }
 0xafc   : > { %v2600_v0 = vmul.f32 1.442695, %v2599_v63 }
 0xafe   : > { %4908 = vpow2.f32 %v2600_v0 }
 0xb0b   : > { %v4909_v32 = vpop.eup %4908 }
 0xb0c   : > { %v2602_v3 = vsel %vm2368_vm9, %v4909_v32, 0.0  ;;  %v2605_v22 = vpack.c.bf16 %v4909_v32, %v4909_v32 }
 0xb4f   : > { %v2700_v42 = vpop.f32.mrf.mxu0 }
 0xb50   : > { %v2706_v45 = vmul.f32 0.17677669, %v2700_v42 }
 0xb51   : > { %v4595_v47 = vpop.f32.mrf.mxu0 }
 0xb52   : > { %v2707_v49 = vsel %vm2368_vm9, %v2706_v45, -inf }
 0xb53   : > { %2708 = vmax.xlane.f32.xlu0 %v2707_v49  ;;  %v2703_v50 = vpop.f32.mrf.mxu0 }
 0xb55   : > { %v4596_v51 = vpop.f32.mrf.mxu0 }
 0xb5b   : > { %v5663_v52 = vpop.f32.mrf.mxu1 }
 0xb5d   : > { %v4565_v53 = vpop.f32.mrf.mxu1 }
 0xb5f   : > { %v2426_v54 = vpop.f32.mrf.mxu1 }
 0xb61   : > { %v4566_v55 = vpop.f32.mrf.mxu1 }
 0xb63   : > { %v2477_v56 = vpop.f32.mrf.mxu1 }
 0xb64   : > { %v2483_v57 = vmul.f32 0.17677669, %v2477_v56 }
 0xb65   : > { %v4571_v58 = vpop.f32.mrf.mxu1 }
 0xb66   : > { %v2484_v59 = vsel %vm2368_vm9, %v2483_v57, -inf }
 0xb67   : > { %2485 = vmax.xlane.f32.xlu1 %v2484_v59  ;;  %v2480_v60 = vpop.f32.mrf.mxu1 }
 0xb69   : > { %2495 = vrot.lane.b32.xlu0 %v5630_v9, %s5047_s26  ;;  %v4572_v61 = vpop.f32.mrf.mxu1 }
 0xb78   : > { %2606 = vrot.lane.b32.xlu1 %v5630_v9, %s5049_s2 }
 0xb7c   : > { %2717 = vrot.lane.b32.xlu1 %v5630_v9, %s5048_s22 }
 0xb88   : > { %2603 = vadd.xlane.f32.xlu0 %v2602_v3 }
 0xbdc   : > { %v2709_v5 = vpop.xlane.xlu0 %2708 }
 0xbdd   : > { %v2710_v6 = vsub.f32 %v2706_v45, %v2709_v5 }
 0xbdf   : > { %v2711_v2 = vmul.f32 1.442695, %v2710_v6 }
 0xbe0   : > { %v2496_v8 = vpop.permute.xlu0 %2495 }
 0xbe1   : > { %4910 = vpow2.f32 %v2711_v2  ;;  %v2501_v10 = vand.u32 %v2496_v8, %v5632_v12 }
 0xbe3   : > { %4574 = vmatpush3.bf16.msra.mxu1 %v2501_v10 }
 0xbe4   : > { %4585 = vmatprep.subr.bf16.mxu1 %v5044_v4 }
 0xbee   : > { %v4911_v11 = vpop.eup %4910 }
 0xbef   : > { %v2713_v13 = vsel %vm2368_vm9, %v4911_v11, 0.0  ;;  %v2716_v25 = vpack.c.bf16 %v4911_v11, %v4911_v11 }
 0xbf0   : > { %2714 = vadd.xlane.f32.xlu0 %v2713_v13  ;;  %v2486_v14 = vpop.xlane.xlu1 %2485 }
 0xbf1   : > { %v2487_v9 = vsub.f32 %v2483_v57, %v2486_v14 }
 0xbf3   : > { %v2488_v1 = vmul.f32 1.442695, %v2487_v9  ;;  %v4806_v9 = vld [vmem:[%s5360_s24 + $0xe0] ss:$16 sps:$4 sm:$0xff]  }
 0xbf4   : > { %2376 = vadd.xlane.f32.xlu0 %v2375_v15  ;;  %v2607_v16 = vpop.permute.xlu1 %2606  ;;  %v4811_v15 = vld [vmem:[%s5360_s24 + $0xec] ss:$16 sps:$4 sm:$0xff]  }
 0xbf5   : > { %4912 = vpow2.f32 %v2488_v1  ;;  %v2612_v20 = vand.u32 %v2607_v16, %v5632_v12  ;;  %v4808_v1 = vld [vmem:[%s5360_s24 + $0xe4] ss:$16 sps:$4 sm:$0xff]  }
 0xbf6   : > { %v4814_v16 = vld [vmem:[%s5360_s24 + $0xc4] ss:$16 sps:$4 sm:$0xff]  }
 0xbf8   : > { %v2718_v21 = vpop.permute.xlu1 %2717 }
 0xbf9   : > { %v2723_v24 = vand.u32 %v2718_v21, %v5632_v12  ;;  %v4800_v12 = vld [vmem:[%s5342_s28 + $0x28] sm:$0xff]  }
 0xbfa   : > { %4608 = vmatpush3.bf16.msra.mxu0 %v4800_v12  ;;  %v4824_v12 = vld [vmem:[%s5360_s24 + $0x80] ss:$16 sps:$4 sm:$0xff]  }
 0xbfb   : > { %4609 = vmatprep.subr.bf16.mxu0 %v5044_v4 }
 0xbfe   : > { %4610 = vmatpush3.bf16.msra.mxu0 %v4801_v29  ;;  %v4827_v29 = vld [vmem:[%s5360_s24 + $0x88] ss:$16 sps:$4 sm:$0xff]  }
 0xbff   : > { %4611 = vmatprep.subr.bf16.mxu0 %v5044_v4 }
 0xc02   : > { %v4913_v17 = vpop.eup %4912  ;;  %4612 = vmatpush3.bf16.msra.mxu0 %v4802_v30  ;;  %v4829_v30 = vld [vmem:[%s5360_s24 + $0x8c] ss:$16 sps:$4 sm:$0xff]  }
 0xc03   : > { %v2490_v18 = vsel %vm2368_vm9, %v4913_v17, 0.0  ;;  %v2493_v19 = vpack.c.bf16 %v4913_v17, %v4913_v17  ;;  %4613 = vmatprep.subr.bf16.mxu0 %v5044_v4  ;;  %v4817_v17 = vld [vmem:[%s5360_s24 + $0xcc] ss:$16 sps:$4 sm:$0xff]  }
 0xc04   : > { %2491 = vadd.xlane.f32.xlu1 %v2490_v18  ;;  %v4815_v18 = vld [vmem:[%s5360_s24 + $0xc8] ss:$16 sps:$4 sm:$0xff]  }
 0xc05   : > { %4576 = vmatmul.mubr.msk.bf16.vlgmr.msra.gmra.mxu1 %vm2368_vm9, %v2493_v19 }
 0xc06   : > { %4586 = vmatpush3.bf16.msra.mxu1 %v2612_v20  ;;  %4587 = vmatprep.mubr.msk.bf16.mxu1 %vm5046_vm0, %v5044_v4 }
 0xc07   : > { %4597 = vmatprep.subr.bf16.mxu1 %v5044_v4  ;;  %4614 = vmatpush3.bf16.msra.mxu0 %v4803_v33  ;;  %v4835_v33 = vld [vmem:[%s5360_s24 + $0x6c] ss:$16 sps:$4 sm:$0xff]  }
 0xc08   : > { %4615 = vmatprep.subr.bf16.mxu0 %v5044_v4 }
 0xc0b   : > { %4616 = vmatpush3.bf16.msra.mxu0 %v4804_v34  ;;  %v4830_v34 = vld [vmem:[%s5360_s24 + $0x60] ss:$16 sps:$4 sm:$0xff]  }
 0xc0c   : > { %4617 = vmatprep.subr.bf16.mxu0 %v5044_v4 }
 0xc0d   : > { %4588 = vmatmul.mubr.msk.bf16.vlgmr.msra.gmra.mxu1 %vm2368_vm9, %v2605_v22 }
 0xc0e   : > { %4598 = vmatpush3.bf16.msra.mxu1 %v2723_v24  ;;  %4599 = vmatprep.mubr.msk.bf16.mxu1 %vm5046_vm0, %v5044_v4  ;;  %v4820_v24 = vld [vmem:[%s5360_s24 + $0xa4] ss:$16 sps:$4 sm:$0xff]  }
 0xc0f   : > { %4618 = vmatpush3.bf16.msra.mxu0 %v4805_v41  ;;  %3137 = vmatprep.subr.bf16.mxu1 %v4808_v1  ;;  %v4847_v41 = vld [vmem:[%s5360_s24 + $0x2c] ss:$16 sps:$4 sm:$0xff]   ;;  %v4868_v1 = vld [vmem:[%s5371_s25 + $0x20] sm:$0xff]  }
 0xc10   : > { %3178 = vmatprep.subr.bf16.mxu0 %v4811_v15  ;;  %v4870_v15 = vld [vmem:[%s5371_s25 + $0x58] sm:$0xff]  }
 0xc11   : > { %v2604_v31 = vpop.xlane.xlu0 %2603 }
 0xc15   : > { %4600 = vmatmul.mubr.msk.bf16.vlgmr.msra.gmra.mxu1 %vm2368_vm9, %v2716_v25  ;;  %v4823_v25 = vld [vmem:[%s5360_s24 + $0xac] ss:$16 sps:$4 sm:$0xff]  }
 0xc16   : > { %3169 = vmatprep.mubr.bf16.mxu1 %v5045_v23  ;;  %3138 = vmatpush1.bf16.msra.mxu1 %v4806_v9  ;;  %v4867_v9 = vld [vmem:[%s5371_s25 + $0xe0] sm:$0xff]  }
 0xc17   : > { %3139 = vmatprep.subr.bf16.mxu1 %v4814_v16  ;;  %v4871_v16 = vld [vmem:[%s5371_s25 + $0xd8] sm:$0xff]  }
 0xc79   : > { %v2715_v36 = vpop.xlane.xlu0 %2714 }
 0xc7d   : > { %v2377_v59 = vpop.xlane.xlu0 %2376 }
 0xc8d   : > { %v2492_v28 = vpop.xlane.xlu1 %2491 }
 0xc8e   : > { %4914 = vrcp.f32 %v2492_v28  ;;  %v4826_v28 = vld [vmem:[%s5360_s24 + $0x84] ss:$16 sps:$4 sm:$0xff]  }
 0xc8f   : > { %4916 = vrcp.f32 %v2604_v31  ;;  %v4832_v31 = vld [vmem:[%s5360_s24 + $0x64] ss:$16 sps:$4 sm:$0xff]  }
 0xc90   : > { %4918 = vrcp.f32 %v2715_v36  ;;  %v4838_v36 = vld [vmem:[%s5360_s24 + $0x44] ss:$16 sps:$4 sm:$0xff]  }
 0xc91   : > { %4920 = vrcp.f32 %v2377_v59 }
 0xc9b   : > { %v4915_v35 = vpop.eup %4914 }
 0xc9c   : > { %v4917_v45 = vpop.eup %4916 }
 0xc9d   : > { %v4919_v54 = vpop.eup %4918 }
 0xc9e   : > { %v4921_v60 = vpop.eup %4920 }
 0xc9f   : > { %v2430_v62 = vmul.f32 %v4921_v60, %v5663_v52 }
 0xcc5   : > { %v2537_v37 = vpop.f32.mrf.mxu1 }
 0xcc6   : > { %v2544_v38 = vmul.f32 %v4915_v35, %v2537_v37  ;;  %v4833_v35 = vld [vmem:[%s5360_s24 + $0x68] ss:$16 sps:$4 sm:$0xff]   ;;  %v4841_v37 = vld [vmem:[%s5360_s24 + $0x4c] ss:$16 sps:$4 sm:$0xff]  }
 0xcc7   : > { %v4577_v39 = vpop.f32.mrf.mxu1 }
 0xcc8   : > { %2768 = vrot.lane.b32.xlu1 %v2544_v38, %s5048_s22  ;;  %s6043_s22 = scalar_lea.vmem %s5939_s15, %s5268_s27  ;;  %v4836_v38 = vld [vmem:[%s5360_s24 + $0x40] ss:$16 sps:$4 sm:$0xff]   ;;  %v4839_v39 = vld [vmem:[%s5360_s24 + $0x48] ss:$16 sps:$4 sm:$0xff]  }
 0xcc9   : > { %v2540_v40 = vpop.f32.mrf.mxu1  ;;  %v4228_v52 = vld [vmem:[%s6043_s22] ss:$0 sm:$0xff] }
 0xcca   : > { %v4844_v40 = vld [vmem:[%s5360_s24 + $0x24] ss:$16 sps:$4 sm:$0xff]  }
 0xccb   : > { %v4578_v42 = vpop.f32.mrf.mxu1 }
 0xccc   : > { %v4842_v42 = vld [vmem:[%s5360_s24 + $0x20] ss:$16 sps:$4 sm:$0xff]  }
 0xccd   : > { %v2648_v47 = vpop.f32.mrf.mxu1 }
 0xcce   : > { %v2655_v49 = vmul.f32 %v4917_v45, %v2648_v47  ;;  %v4845_v45 = vld [vmem:[%s5360_s24 + $0x28] ss:$16 sps:$4 sm:$0xff]   ;;  %v4850_v47 = vld [vmem:[%s5360_s24 + $0x4] ss:$16 sps:$4 sm:$0xff]  }
 0xccf   : > { %v4589_v50 = vpop.f32.mrf.mxu1 }
 0xcd0   : > { %2772 = vrot.lane.b32.xlu0 %v2655_v49, %s5049_s2  ;;  %v4853_v49 = vld [vmem:[%s5360_s24 + $0xc] ss:$16 sps:$4 sm:$0xff]   ;;  %v4848_v50 = vld [vmem:[%s5360_s24] ss:$16 sps:$4 sm:$0xff]  }
 0xcd1   : > { %v2651_v51 = vpop.f32.mrf.mxu1 }
 0xcd2   : > { %v4851_v51 = vld [vmem:[%s5360_s24 + $0x8] ss:$16 sps:$4 sm:$0xff]  }
 0xcd3   : > { %v4590_v53 = vpop.f32.mrf.mxu1 }
 0xcd5   : > { %v2759_v55 = vpop.f32.mrf.mxu1 }
 0xcd6   : > { %v2766_v56 = vmul.f32 %v4919_v54, %v2759_v55 }
 0xcd7   : > { %v4601_v57 = vpop.f32.mrf.mxu1 }
 0xcd8   : > { %2776 = vrot.lane.b32.xlu1 %v2766_v56, %s5047_s26  ;;  %v4237_v57 = vld [vmem:[%s6044_s12] ss:$0 sm:$0xff] }
 0xcd9   : > { %v2762_v58 = vpop.f32.mrf.mxu1 }
 0xcdb   : > { %v4602_v4 = vpop.f32.mrf.mxu1 }
 0xcdc   : > { %v4238_v4 = vld [vmem:[%s6045_s23] ss:$0 sm:$0xff]  ;;  %s6049_s23 = sld [smem:[#allocation40_spill]] (!%p4304_p1) }
 0xd3a   : > { %v2769_v61 = vpop.permute.xlu1 %2768 }
 0xd3b   : > { %v2779_v0 = vsel %vm1451_vm1, %v2430_v62, %v2769_v61  ;;  %v4854_v62 = vld [vmem:[%s5371_s25 + $0x78] sm:$0xff]  }
 0xd42   : > { %v2773_v63 = vpop.permute.xlu0 %2772 }
 0xd43   : > { %v2780_v32 = vsel %vm1912_vm5, %v2779_v0, %v2773_v63  ;;  %v4855_v63 = vld [vmem:[%s5371_s25 + $0xf8] sm:$0xff]  }
 0xd44   : > { %v4856_v0 = vld [vmem:[%s5371_s25 + $0x38] sm:$0xff]  }
 0xd4a   : > { %v2777_v3 = vpop.permute.xlu1 %2776 }
 0xd4b   : > { %v2781_v5 = vsel %vm1914_vm6, %v2780_v32, %v2777_v3  ;;  %v4857_v32 = vld [vmem:[%s5371_s25 + $0xb8] sm:$0xff]   ;;  %v4858_v3 = vld [vmem:[%s5371_s25 + $0x70] sm:$0xff]  }
 0xd4c   : > { %v2782_v6 = vpack.c.bf16 %v2781_v5, %v2781_v5  ;;  %v4859_v5 = vld [vmem:[%s5371_s25 + $0xf0] sm:$0xff]  }
 0xd4e   : > { %4620 = vmatmul.mubr.bf16.vlgmr.msra.gmra.mxu0 %v2782_v6  ;;  %v4860_v6 = vld [vmem:[%s5371_s25 + $0x30] sm:$0xff]  }
 0xd4f   : > { %3210 = vmatprep.mubr.bf16.mxu0 %v5045_v23  ;;  %v4809_v23 = vld [vmem:[%s5360_s24 + $0xe8] ss:$16 sps:$4 sm:$0xff]  }
 0xd50   : > { %3179 = vmatpush1.bf16.msra.mxu0 %v4809_v23  ;;  %v4869_v23 = vld [vmem:[%s5371_s25 + $0xa0] sm:$0xff]  }
 0xd51   : > { %3180 = vmatprep.subr.bf16.mxu0 %v4817_v17  ;;  %v4872_v17 = vld [vmem:[%s5371_s25 + $0x18] sm:$0xff]  }
 0xd54   : > { %3181 = vmatpush1.bf16.msra.mxu0 %v4815_v18  ;;  %v4874_v18 = vld [vmem:[%s5371_s25 + $0x50] sm:$0xff]  }
 0xd55   : > { %3182 = vmatprep.subr.bf16.mxu0 %v4823_v25  ;;  %v4880_v25 = vld [vmem:[%s5371_s25 + $0x8] sm:$0xff]  }
 0xd58   : > { %3183 = vmatpush1.bf16.msra.mxu0 %v4821_v27  ;;  %v4882_v27 = vld [vmem:[%s5371_s25 + $0x40] sm:$0xff]  }
 0xd59   : > { %3184 = vmatprep.subr.bf16.mxu0 %v4829_v30  ;;  %v2955_v30 = vld [vmem:[%s5366_s3] sm:$0xf] }
 0xd5c   : > { %3185 = vmatpush1.bf16.msra.mxu0 %v4827_v29  ;;  %v4885_v29 = vld [vmem:[%s5371_s25 + $0x80] sm:$0xff]  }
 0xd5d   : > { %3186 = vmatprep.subr.bf16.mxu0 %v4835_v33  ;;  %v2960_v33 = vrot.slane %v2955_v30, %v5438_v44 }
 0xd60   : > { %3187 = vmatpush1.bf16.msra.mxu0 %v4833_v35 }
 0xd61   : > { %3188 = vmatprep.subr.bf16.mxu0 %v4841_v37  ;;  %v2964_v37 = vrot.slane %v2955_v30, %v5442_v46 }
 0xd64   : > { %3189 = vmatpush1.bf16.msra.mxu0 %v4839_v39 }
 0xd65   : > { %3190 = vmatprep.subr.bf16.mxu0 %v4847_v41 }
 0xd68   : > { %3191 = vmatpush1.bf16.msra.mxu0 %v4845_v45 }
 0xd69   : > { %3192 = vmatprep.subr.bf16.mxu0 %v4853_v49 }
 0xd6c   : > { %3193 = vmatpush1.bf16.msra.mxu0 %v4851_v51 }
 0xd6d   : > { %4416 = vmatprep.subr.bf16.mxu0 %v4855_v63 }
 0xe0e   : > { %v2888_v2 = vpop.f32.mrf.mxu0 }
 0xe0f   : > { %v2889_v8 = vadd.f32 %v4228_v52, %v2888_v2  ;;  %v4861_v52 = vld [vmem:[%s5371_s25 + $0xb0] sm:$0xff]   ;;  %v4862_v2 = vld [vmem:[%s5371_s25 + $0x68] sm:$0xff]  }
 0xe10   : > { %v4621_v10 = vpop.f32.mrf.mxu0 }
 0xe11   : > { %v5718_v11 = vadd.f32 %v2889_v8, %v5564_v7  ;;  %v4812_v7 = vld [vmem:[%s5360_s24 + $0xc0] ss:$16 sps:$4 sm:$0xff]   ;;  %v4863_v8 = vld [vmem:[%s5371_s25 + $0xe8] sm:$0xff]  }
 0xe12   : > { %v2891_v13 = vpop.f32.mrf.mxu0  ;;  %3140 = vmatpush1.bf16.msra.mxu1 %v4812_v7  ;;  %v4864_v10 = vld [vmem:[%s5371_s25 + $0x28] sm:$0xff]   ;;  %v4873_v7 = vld [vmem:[%s5371_s25 + $0x98] sm:$0xff]  }
 0xe13   : > { %2897 = vadd.xlane.f32.xlu1 %v5718_v11  ;;  %3141 = vmatprep.subr.bf16.mxu1 %v4820_v24  ;;  %v4865_v13 = vld [vmem:[%s5371_s25 + $0xa8] sm:$0xff]  }
 0xe14   : > { %v4622_v14 = vpop.f32.mrf.mxu0  ;;  %v4879_v24 = vld [vmem:[%s5371_s25 + $0xc8] sm:$0xff]  }
 0xe15   : > { %v4866_v14 = vld [vmem:[%s5371_s25 + $0x60] sm:$0xff]  }
 0xe16   : > { %3142 = vmatpush1.bf16.msra.mxu1 %v4818_v26  ;;  %v4881_v26 = vld [vmem:[%s5371_s25 + $0x88] sm:$0xff]  }
 0xe17   : > { %3143 = vmatprep.subr.bf16.mxu1 %v4826_v28  ;;  %v4884_v28 = vld [vmem:[%s5371_s25] sm:$0xff]  }
 0xe1a   : > { %3144 = vmatpush1.bf16.msra.mxu1 %v4824_v12  ;;  %v4883_v12 = vld [vmem:[%s5371_s25 + $0xc0] sm:$0xff]  }
 0xe1b   : > { %3145 = vmatprep.subr.bf16.mxu1 %v4832_v31  ;;  %v2971_v31 = vsub.s32 3, %v5435_v43 }
 0xe1e   : > { %3146 = vmatpush1.bf16.msra.mxu1 %v4830_v34  ;;  %v2968_v34 = vrot.slane %v2955_v30, %v1229_v48 }
 0xe1f   : > { %3147 = vmatprep.subr.bf16.mxu1 %v4838_v36 }
 0xe22   : > { %3148 = vmatpush1.bf16.msra.mxu1 %v4836_v38  ;;  %v2972_v38 = vrot.slane %v2955_v30, %v2971_v31 }
 0xe23   : > { %3149 = vmatprep.subr.bf16.mxu1 %v4844_v40 }
 0xe26   : > { %3150 = vmatpush1.bf16.msra.mxu1 %v4842_v42 }
 0xe27   : > { %3151 = vmatprep.subr.bf16.mxu1 %v4850_v47 }
 0xe2a   : > { %3152 = vmatpush1.bf16.msra.mxu1 %v4848_v50 }
 0xe2b   : > { %4394 = vmatprep.subr.bf16.mxu1 %v4854_v62 }
 0xe9c   : > { %v2898_v19 = vpop.xlane.xlu1 %2897 }
 0xe9d   : > { %v2899_v20 = vmul.f32 0.0078125, %v2898_v19  ;;  %v4875_v19 = vld [vmem:[%s5371_s25 + $0xd0] sm:$0xff]  }
 0xe9f   : > { %v2900_v21 = vsub.f32 %v5718_v11, %v2899_v20  ;;  %v4876_v20 = vld [vmem:[%s5371_s25 + $0x10] sm:$0xff]  }
 0xea1   : > { %v2901_v22 = vmul.f32 %v2900_v21, %v2900_v21 }
 0xea3   : > { %2902 = vadd.xlane.f32.xlu0 %v2901_v22  ;;  %v4878_v22 = vld [vmem:[%s5371_s25 + $0x48] sm:$0xff]  }
 0xf2c   : > { %v2903_v53 = vpop.xlane.xlu0 %2902 }
 0xf2d   : > { %v2904_v54 = vmul.f32 0.0078125, %v2903_v53 }
 0xf2f   : > { %v2905_v55 = vadd.f32 1e-05, %v2904_v54 }
 0xf31   : > { %4922 = vrsqrt.f32 %v2905_v55 }
 0xf3e   : > { %v4923_v56 = vpop.eup %4922 }
 0xf3f   : > { %v2907_v58 = vmul.f32 %v4923_v56, %v2900_v21  ;;  %v4877_v21 = vld [vmem:[%s5371_s25 + $0x90] sm:$0xff]  }
 0xf41   : > { %v2914_v59 = vmul.f32 %v4237_v57, %v2907_v58 }
 0xf43   : > { %v2921_v60 = vadd.f32 %v4238_v4, %v2914_v59 }
 0xf45   : > { %v2922_v61 = vpack.c.bf16 %v2921_v60, %v2921_v60 }
 0xf47   : > { %3170 = vmatmul.mubr.bf16.vlgmr.msra.gmra.mxu1 %v2922_v61  ;;  %3211 = vmatmul.mubr.bf16.vlgmr.msra.gmra.mxu0 %v2922_v61 }
 0xf48   : > { %4395 = vmatpush3.bf16.msra.mxu1 %v4856_v0  ;;  %4417 = vmatpush3.bf16.msra.mxu0 %v4857_v32 }
 0xf49   : > { %4396 = vmatprep.subr.bf16.mxu1 %v4858_v3  ;;  %4418 = vmatprep.subr.bf16.mxu0 %v4859_v5 }
 0xf4c   : > { %4397 = vmatpush3.bf16.msra.mxu1 %v4860_v6  ;;  %4419 = vmatpush3.bf16.msra.mxu0 %v4861_v52 }
 0xf4d   : > { %4398 = vmatprep.subr.bf16.mxu1 %v4862_v2  ;;  %4420 = vmatprep.subr.bf16.mxu0 %v4863_v8 }
 0xf50   : > { %4399 = vmatpush3.bf16.msra.mxu1 %v4864_v10  ;;  %4421 = vmatpush3.bf16.msra.mxu0 %v4865_v13 }
 0xf51   : > { %4400 = vmatprep.subr.bf16.mxu1 %v4866_v14  ;;  %4422 = vmatprep.subr.bf16.mxu0 %v4867_v9 }
 0xf54   : > { %4401 = vmatpush3.bf16.msra.mxu1 %v4868_v1  ;;  %4423 = vmatpush3.bf16.msra.mxu0 %v4869_v23 }
 0xf55   : > { %4402 = vmatprep.subr.bf16.mxu1 %v4870_v15  ;;  %4424 = vmatprep.subr.bf16.mxu0 %v4871_v16 }
 0xf58   : > { %4403 = vmatpush3.bf16.msra.mxu1 %v4872_v17  ;;  %4425 = vmatpush3.bf16.msra.mxu0 %v4873_v7 }
 0xf59   : > { %4404 = vmatprep.subr.bf16.mxu1 %v4874_v18  ;;  %4426 = vmatprep.subr.bf16.mxu0 %v4875_v19 }
 0xf5c   : > { %4405 = vmatpush3.bf16.msra.mxu1 %v4876_v20  ;;  %4427 = vmatpush3.bf16.msra.mxu0 %v4877_v21 }
 0xf5d   : > { %4406 = vmatprep.subr.bf16.mxu1 %v4878_v22  ;;  %4428 = vmatprep.subr.bf16.mxu0 %v4879_v24 }
 0xf60   : > { %4407 = vmatpush3.bf16.msra.mxu1 %v4880_v25  ;;  %4429 = vmatpush3.bf16.msra.mxu0 %v4881_v26 }
 0xf61   : > { %4408 = vmatprep.subr.bf16.mxu1 %v4882_v27  ;;  %4430 = vmatprep.subr.bf16.mxu0 %v4883_v12 }
 0xf64   : > { %4409 = vmatpush3.bf16.msra.mxu1 %v4884_v28  ;;  %4431 = vmatpush3.bf16.msra.mxu0 %v4885_v29 }
0x1007   : > { %v3171_v35 = vpop.f32.mrf.mxu1  ;;  %v3212_v36 = vpop.f32.mrf.mxu0 }
0x1008   : > { %v5802_v39 = vadd.f32 %v3171_v35, %v2960_v33  ;;  %v5804_v40 = vadd.f32 %v3212_v36, %v2968_v34 }
0x1009   : > { %v3173_v41 = vpop.f32.mrf.mxu1  ;;  %v3214_v42 = vpop.f32.mrf.mxu0 }
0x100a   : > { %v5807_v45 = vmul.f32 0.70710677, %v5802_v39  ;;  %v5810_v47 = vmul.f32 0.70710677, %v5804_v40  ;;  %v5812_v44 = vadd.f32 %v3173_v41, %v2964_v37  ;;  %v5814_v43 = vadd.f32 %v3214_v42, %v2972_v38 }
0x100b   : > { %v3175_v48 = vpop.f32.mrf.mxu1  ;;  %v3216_v49 = vpop.f32.mrf.mxu0 }
0x100c   : > { %v3235_v46 = vand.u32 2147483647, %v5807_v45  ;;  %v3237_v50 = vand.u32 2147483647, %v5810_v47  ;;  %v5819_v51 = vmul.f32 0.70710677, %v5812_v44 }
0x100d   : > { %v3176_v53 = vpop.f32.mrf.mxu1  ;;  %v3217_v54 = vpop.f32.mrf.mxu0  ;;  %v5823_v58 = vmul.f32 0.70710677, %v5814_v43  ;;  %vm3227_vm10 = vcmp.ge.f32.partialorder %v5807_v45, 0.0  ;;  %vm3229_vm11 = vcmp.ge.f32.partialorder %v5810_v47, 0.0 }
0x100e   : > { %v3239_v55 = vmul.f32 0.3275911, %v3235_v46  ;;  %v3241_v56 = vmul.f32 0.3275911, %v3237_v50  ;;  %v3236_v57 = vand.u32 2147483647, %v5819_v51 }
0x100f   : > { %v3238_v62 = vand.u32 2147483647, %v5823_v58  ;;  %v3291_v32 = vsub.f32 0.0, %v3235_v46  ;;  %v3293_v3 = vsub.f32 0.0, %v3237_v50  ;;  %vm3228_vm12 = vcmp.ge.f32.partialorder %v5819_v51, 0.0 }
0x1010   : > { %v3243_v4 = vadd.f32 1.0, %v3239_v55  ;;  %v3245_v59 = vadd.f32 1.0, %v3241_v56  ;;  %v3240_v60 = vmul.f32 0.3275911, %v3236_v57  ;;  %v3292_v6 = vsub.f32 0.0, %v3236_v57 }
0x1011   : > { %v3242_v63 = vmul.f32 0.3275911, %v3238_v62  ;;  %v3295_v5 = vmul.f32 %v3291_v32, %v3235_v46  ;;  %v3297_v52 = vmul.f32 %v3293_v3, %v3237_v50  ;;  %v3294_v8 = vsub.f32 0.0, %v3238_v62 }
0x1012   : > { %4924 = vrcp.f32 %v3243_v4  ;;  %v3244_v61 = vadd.f32 1.0, %v3240_v60  ;;  %v3296_v9 = vmul.f32 %v3292_v6, %v3236_v57  ;;  %v5051_v3 = vmov -1.0  }
0x1013   : > { %4926 = vrcp.f32 %v3245_v59  ;;  %v3246_v0 = vadd.f32 1.0, %v3242_v63  ;;  %v3299_v14 = vmul.f32 1.442695, %v3295_v5  ;;  %v3303_v23 = vmul.f32 1.442695, %v3297_v52 }
0x1014   : > { %4928 = vrcp.f32 %v3244_v61  ;;  %v3298_v7 = vmul.f32 %v3294_v8, %v3238_v62  ;;  %v3301_v20 = vmul.f32 1.442695, %v3296_v9  ;;  %v3231_v5 = vsel %vm3227_vm10, 1.0, %v5051_v3 }
0x1015   : > { %4930 = vrcp.f32 %v3246_v0  ;;  %vm3230_vm13 = vcmp.ge.f32.partialorder %v5823_v58, 0.0 }
0x1016   : > { %4932 = vpow2.f32 %v3299_v14  ;;  %v3305_v12 = vmul.f32 1.442695, %v3298_v7 }
0x1017   : > { %4934 = vpow2.f32 %v3303_v23  ;;  %v3232_v23 = vsel %vm3228_vm12, 1.0, %v5051_v3 }
0x1018   : > { %4936 = vpow2.f32 %v3301_v20 }
0x1019   : > { %4938 = vpow2.f32 %v3305_v12 }
0x101f   : > { %v4925_v2 = vpop.eup %4924 }
0x1020   : > { %v4927_v10 = vpop.eup %4926  ;;  %v3255_v13 = vmul.f32 1.0614054, %v4925_v2 }
0x1021   : > { %v3257_v1 = vmul.f32 1.0614054, %v4927_v10  ;;  %v4929_v16 = vpop.eup %4928 }
0x1022   : > { %v3259_v15 = vadd.f32 -1.4531521, %v3255_v13  ;;  %v3256_v19 = vmul.f32 1.0614054, %v4929_v16  ;;  %v4931_v22 = vpop.eup %4930 }
0x1023   : > { %v3261_v17 = vadd.f32 -1.4531521, %v3257_v1  ;;  %v3258_v27 = vmul.f32 1.0614054, %v4931_v22  ;;  %v4933_v55 = vpop.eup %4932 }
0x1024   : > { %v3263_v18 = vmul.f32 %v4925_v2, %v3259_v15  ;;  %v3260_v25 = vadd.f32 -1.4531521, %v3256_v19  ;;  %v4935_v4 = vpop.eup %4934  ;;  %v3234_v19 = vsel %vm3230_vm13, 1.0, %v5051_v3 }
0x1025   : > { %v3265_v21 = vmul.f32 %v4927_v10, %v3261_v17  ;;  %v3262_v31 = vadd.f32 -1.4531521, %v3258_v27  ;;  %v4937_v32 = vpop.eup %4936 }
0x1026   : > { %v3267_v24 = vadd.f32 1.4214138, %v3263_v18  ;;  %v3264_v29 = vmul.f32 %v4929_v16, %v3260_v25  ;;  %v4939_v45 = vpop.eup %4938  ;;  %v3220_v18 = vmul.f32 0.5, %v5812_v44  ;;  %v3222_v25 = vmul.f32 0.5, %v5814_v43 }
0x1027   : > { %v3269_v26 = vadd.f32 1.4214138, %v3265_v21  ;;  %v3266_v36 = vmul.f32 %v4931_v22, %v3262_v31 }
0x1028   : > { %v3271_v28 = vmul.f32 %v4925_v2, %v3267_v24  ;;  %v3268_v34 = vadd.f32 1.4214138, %v3264_v29 }
0x1029   : > { %v3273_v30 = vmul.f32 %v4927_v10, %v3269_v26  ;;  %v3270_v42 = vadd.f32 1.4214138, %v3266_v36 }
0x102a   : > { %v3275_v33 = vadd.f32 -0.28449672, %v3271_v28  ;;  %v3272_v38 = vmul.f32 %v4929_v16, %v3268_v34 }
0x102b   : > { %v3277_v35 = vadd.f32 -0.28449672, %v3273_v30  ;;  %v3274_v50 = vmul.f32 %v4931_v22, %v3270_v42 }
0x102c   : > { %v3279_v37 = vmul.f32 %v4925_v2, %v3275_v33  ;;  %v3276_v49 = vadd.f32 -0.28449672, %v3272_v38 }
0x102d   : > { %v3281_v41 = vmul.f32 %v4927_v10, %v3277_v35  ;;  %v3278_v57 = vadd.f32 -0.28449672, %v3274_v50 }
0x102e   : > { %v3283_v48 = vadd.f32 0.2548296, %v3279_v37  ;;  %v3280_v54 = vmul.f32 %v4929_v16, %v3276_v49 }
0x102f   : > { %v3285_v46 = vadd.f32 0.2548296, %v3281_v41  ;;  %v3282_v62 = vmul.f32 %v4931_v22, %v3278_v57 }
0x1030   : > { %v3287_v53 = vmul.f32 %v4925_v2, %v3283_v48  ;;  %v3284_v60 = vadd.f32 0.2548296, %v3280_v54 }
0x1031   : > { %v3289_v56 = vmul.f32 %v4927_v10, %v3285_v46  ;;  %v3286_v52 = vadd.f32 0.2548296, %v3282_v62  ;;  %v3233_v10 = vsel %vm3229_vm11, 1.0, %v5051_v3 }
0x1032   : > { %v3307_v59 = vmul.f32 %v4933_v55, %v3287_v53  ;;  %v3288_v0 = vmul.f32 %v4929_v16, %v3284_v60  ;;  %v3219_v16 = vmul.f32 0.5, %v5802_v39 }
0x1033   : > { %v3309_v61 = vmul.f32 %v4935_v4, %v3289_v56  ;;  %v3290_v13 = vmul.f32 %v4931_v22, %v3286_v52  ;;  %v3221_v22 = vmul.f32 0.5, %v5804_v40  ;;  %v4271_v40 = vld [vmem:[%s1146_s7] ss:$0 sm:$0xff]  ;;  %s6051_s7 = sld [smem:[#allocation43_spill]] (!%p4304_p1) }
0x1034   : > { %v3311_v63 = vsub.f32 1.0, %v3307_v59  ;;  %v3308_v8 = vmul.f32 %v4937_v32, %v3288_v0 }
0x1035   : > { %v3313_v6 = vsub.f32 1.0, %v3309_v61  ;;  %v3310_v47 = vmul.f32 %v4939_v45, %v3290_v13 }
0x1036   : > { %v3315_v2 = vmul.f32 %v3311_v63, %v3231_v5  ;;  %v3312_v9 = vsub.f32 1.0, %v3308_v8 }
0x1037   : > { %v3317_v14 = vmul.f32 %v3313_v6, %v3233_v10  ;;  %v3314_v17 = vsub.f32 1.0, %v3310_v47 }
0x1038   : > { %v3319_v1 = vadd.f32 1.0, %v3315_v2  ;;  %v3316_v15 = vmul.f32 %v3312_v9, %v3232_v23 }
0x1039   : > { %v3321_v7 = vadd.f32 1.0, %v3317_v14  ;;  %v3318_v21 = vmul.f32 %v3314_v17, %v3234_v19 }
0x103a   : > { %v3320_v51 = vadd.f32 1.0, %v3316_v15  ;;  %v3323_v20 = vmul.f32 %v3319_v1, %v3219_v16 }
0x103b   : > { %v3322_v26 = vadd.f32 1.0, %v3318_v21  ;;  %v3325_v58 = vmul.f32 %v3321_v7, %v3221_v22 }
0x103c   : > { %v3324_v24 = vmul.f32 %v3320_v51, %v3220_v18  ;;  %v3327_v12 = vpack.c.bf16 %v3323_v20, %v3323_v20 }
0x103d   : > { %v3326_v28 = vmul.f32 %v3322_v26, %v3222_v25  ;;  %v3329_v29 = vpack.c.bf16 %v3325_v58, %v3325_v58 }
0x103e   : > { %v3328_v27 = vpack.c.bf16 %v3324_v24, %v3324_v24 }
0x103f   : > { %v3330_v39 = vpack.c.bf16 %v3326_v28, %v3326_v28 }
0x1040   : > { %3626 = vmatprep.mubr.bf16.mxu1 %v3328_v27 }
0x1041   : > { %3627 = vmatmul.mubr.bf16.vlgmr.msra.gmra.mxu1 %v3327_v12  ;;  %3666 = vmatprep.mubr.bf16.mxu0 %v3330_v39 }
0x1042   : > { %3667 = vmatmul.mubr.bf16.vlgmr.msra.gmra.mxu0 %v3329_v29 }
0x1101   : > { %v4410_v44 = vpop.f32.mrf.mxu1 }
0x1102   : > { %v4432_v31 = vpop.f32.mrf.mxu0 }
0x1103   : > { %v4411_v30 = vpop.f32.mrf.mxu1 }
0x1104   : > { %v4412_v43 = vadd.f32 %v4411_v30, %v4410_v44  ;;  %v4433_v35 = vpop.f32.mrf.mxu0 }
0x1105   : > { %v4413_v33 = vpop.f32.mrf.mxu1  ;;  %v4434_v36 = vadd.f32 %v4433_v35, %v4432_v31 }
0x1106   : > { %v3629_v34 = vadd.f32 %v4412_v43, %v4271_v40  ;;  %v4435_v38 = vpop.f32.mrf.mxu0 }
0x1107   : > { %v4414_v37 = vpop.f32.mrf.mxu1 }
0x1108   : > { %v3669_v41 = vadd.f32 %v4434_v36, %v3629_v34  ;;  %v4436_v42 = vpop.f32.mrf.mxu0  ;;  %3679 = sbr.rel (%p4304_p1) target bundleno = 4872 (0x1308), region = 132 }
0x110a   : > { %v3674_v48 = vadd.f32 %v3669_v41, %v5718_v11 }
0x110c   : > { %3675 = vst [vmem:[#allocation2] sm:$0xff] %v3674_v48 }
0x110d   : > { %3682 = vadd.xlane.f32.xlu0 %v3674_v48  ;;  %v4940_v49 = vld [vmem:[%s6048_s19 + $0x38] sm:$0xff]   ;;  %v5052_v46 = vmov 0.0   ;;  %v4941_v11 = vld [vmem:[%s6048_s19 + $0x30] sm:$0xff]   ;;  %v4942_v56 = vld [vmem:[%s6048_s19 + $0x28] sm:$0xff]   ;;  %vm5053_vm14 = vmmov 0  }
0x110e   : > { %4623 = vmatprep.subr.bf16.mxu0 %v5052_v46  ;;  %v4943_v57 = vld [vmem:[%s6048_s19 + $0x20] sm:$0xff]   ;;  %4639 = vmatprep.mubr.msk.bf16.mxu0 %vm5053_vm14, %v5052_v46  ;;  %v4944_v4 = vld [vmem:[%s6048_s19 + $0x18] sm:$0xff]   ;;  %v4945_v59 = vld [vmem:[%s6048_s19 + $0x10] sm:$0xff]  }
0x110f   : > { %4624 = vmatpush3.bf16.msra.mxu0 %v4940_v49  ;;  %v4946_v60 = vld [vmem:[%s6048_s19 + $0x8] sm:$0xff]   ;;  %v4947_v61 = vld [vmem:[%s6048_s19] sm:$0xff]  }
0x1110   : > { %4625 = vmatprep.subr.bf16.mxu0 %v5052_v46  ;;  %v4305_v3 = vld [vmem:[%s6049_s23] ss:$0 sm:$0xff] }
0x1111   : > { %v4306_v6 = vld [vmem:[%s6050_s30] ss:$0 sm:$0xff] }
0x1112   : > { %v4307_v10 = vld [vmem:[%s6051_s7] ss:$0 sm:$0xff] }
0x1113   : > { %4626 = vmatpush3.bf16.msra.mxu0 %v4941_v11 }
0x1114   : > { %4627 = vmatprep.subr.bf16.mxu0 %v5052_v46 }
0x1117   : > { %4628 = vmatpush3.bf16.msra.mxu0 %v4942_v56 }
0x1118   : > { %4629 = vmatprep.subr.bf16.mxu0 %v5052_v46 }
0x111b   : > { %4630 = vmatpush3.bf16.msra.mxu0 %v4943_v57 }
0x111c   : > { %4631 = vmatprep.subr.bf16.mxu0 %v5052_v46 }
0x111f   : > { %4632 = vmatpush3.bf16.msra.mxu0 %v4944_v4 }
0x1120   : > { %4633 = vmatprep.subr.bf16.mxu0 %v5052_v46 }
0x1123   : > { %4634 = vmatpush3.bf16.msra.mxu0 %v4945_v59 }
0x1124   : > { %4635 = vmatprep.subr.bf16.mxu0 %v5052_v46 }
0x1127   : > { %4636 = vmatpush3.bf16.msra.mxu0 %v4946_v60 }
0x1128   : > { %4637 = vmatprep.subr.bf16.mxu0 %v5052_v46 }
0x112b   : > { %4638 = vmatpush3.bf16.msra.mxu0 %v4947_v61 }
0x1196   : > { %v3683_v50 = vpop.xlane.xlu0 %3682 }
0x1197   : > { %v3684_v53 = vmul.f32 0.0078125, %v3683_v50 }
0x1199   : > { %v3685_v54 = vsub.f32 %v3674_v48, %v3684_v53 }
0x119b   : > { %v3686_v55 = vmul.f32 %v3685_v54, %v3685_v54 }
0x119d   : > { %3687 = vadd.xlane.f32.xlu0 %v3686_v55 }
0x1226   : > { %v3688_v62 = vpop.xlane.xlu0 %3687 }
0x1227   : > { %v3689_v63 = vmul.f32 0.0078125, %v3688_v62 }
0x1229   : > { %v3690_v0 = vadd.f32 1e-05, %v3689_v63 }
0x122b   : > { %4948 = vrsqrt.f32 %v3690_v0 }
0x1238   : > { %v4949_v32 = vpop.eup %4948 }
0x1239   : > { %v3692_v5 = vmul.f32 %v4949_v32, %v3685_v54 }
0x123b   : > { %v3699_v52 = vmul.f32 %v4305_v3, %v3692_v5 }
0x123d   : > { %v3706_v2 = vadd.f32 %v4306_v6, %v3699_v52 }
0x123f   : > { %v3707_v8 = vpack.c.bf16 %v3706_v2, %v3706_v2 }
0x1241   : > { %4640 = vmatmul.mubr.bf16.vlgmr.msra.gmra.mxu0 %v3707_v8 }
0x1301   : > { %v3813_v13 = vpop.f32.mrf.mxu0 }
0x1302   : > { %v3814_v45 = vadd.f32 %v4307_v10, %v3813_v13 }
0x1303   : > { %v4641_v14 = vpop.f32.mrf.mxu0 }
0x1304   : > { %3819 = vst [vmem:[%s1061_s13] sm:$0xff] %v3814_v45 }
0x1305   : > { %v3816_v9 = vpop.f32.mrf.mxu0 }
0x1307   : > { %v4642_v1 = vpop.f32.mrf.mxu0 }
0x1308 PF: > { %s6052_s20 = sld [smem:[#allocation10_spill]]  ;;  %s3834_s26 = sshll.u32 %s1061_s13, 4  ;;  %s3835_s26 = int_to_ptr.vmem [resolvable:$true] %s3834_s26 }
0x1309   : > { %s6053_s5 = sld [smem:[#allocation7_spill]]  ;;  %s4950_s9 = scalar_lea.vmem %s3835_s26, 128 }
0x130a   : > { %s6055_s29 = sld [smem:[#allocation44_spill]]  ;;  %p4951_p2 = scmp.ne.s32.totalorder %s3835_s26, %s4950_s9 }
0x130b   : > { %s5054_s12 = smov [#allocation3]  }
0x130c   : > { %p4952_p4 = pnand %p4951_p2, %p5239_p3  ;;  %s4954_s24 = sshll.u32 %s5054_s12, 4  ;;  %s4955_s24 = int_to_ptr.vmem [resolvable:$false] %s4954_s24 }
0x130d   : > { %s4956_s14 = scalar_lea.vmem %s4955_s24, 256  ;;  %p4957_p6 = scmp.lt.s32.totalorder %s3835_s26, %s4955_s24 }
0x130e   : > { %s4317_s10 = sshll.u32 %s6052_s20, 7  ;;  %p4953_p5 = pneg %p4952_p4 }
0x130f   : > { %s6057_s22 = sand.u32 1, %s6053_s5   ;;  %p4958_p7 = scmp.lt.s32.totalorder %s4956_s14, %s4950_s9 }
0x1310   : > { %s6056_s1 = smov %s6055_s29  ;;  %s3832_s28 = scalar_lea.hbm %s6055_s29, %s4317_s10 }
0x1311   : > { %s3821_s2 = scalar_lea.sflag [#allocation4], %s6057_s22  ;;  %p4959_p8 = por %p4958_p7, %p4957_p6 }
0x1313   : > { %p4960_p10 = pnand %p4959_p8, %p4953_p5 }
0x1315   : > { %4963 = shalt.err (!%p4960_p10)
}
0x1316   : > { %s4964_s23 = scalar_lea.hbm %s3832_s28, 128  ;;  %s4968_s3 = scalar_lea.hbm %s6056_s1, 256 }
0x1317   : > { %p4965_p11 = scmp.ne.s32.totalorder %s3832_s28, %s4964_s23  ;;  %p4969_p0 = scmp.lt.s32.totalorder %s3832_s28, %s6056_s1 }
0x1318   : > { %p4970_p1 = scmp.lt.s32.totalorder %s4968_s3, %s4964_s23 }
0x1319   : > { %p4966_p12 = pnand %p4965_p11, %p5239_p3 }
0x131a   : > { %p4971_p2 = por %p4970_p1, %p4969_p0 }
0x131b   : > { %p4967_p13 = pneg %p4966_p12 }
0x131d   : > { %p4972_p4 = pnand %p4971_p2, %p4967_p13 }
0x131f   : > { %4975 = shalt.err (!%p4972_p4)
}
0x1320   : > { %4645 = dma.vmem_to_hbm [thread:$0]  (%p5239_p3), %s3835_s26, 128, %s3832_s28, %s3821_s2  }
0x1321 PF: > { %s6058_s6 = sld [smem:[#allocation13_spill]] }
0x1322   : > { %s6059_s27 = sld [smem:[#allocation6_spill]] }
0x1327   : > { %p4651_p5 = scmp.ge.s32.totalorder %s6058_s6, 2 }
0x1328   : > { %s3846_s20 = sand.u32 1, %s6059_s27  }
0x1329   : > { %p4648_p6 = pnand %p4651_p5, %p5249_p9  ;;  %s3847_s5 = scalar_lea.sflag [#allocation4], %s3846_s20 }
0x132b   : > { %p4649_p7 = pneg %p4648_p6 }
0x132d   : > { %5009 = dma.done.wait (%p4649_p7), %s3847_s5, 128  }
0x132e   : > { %5011 = vsyncadd (%p4649_p7), %s3847_s5, 4294967168  ;;  %s39_s0 = sadd.s32 1, %s6058_s6   ;;  %s6061_s27 = sld [smem:[#allocation7_spill]] }
0x132f   : > { %p36_p8 = scmp.ge.s32.totalorder %s39_s0, 6   ;;  %s6062_s3 = sld [smem:[#allocation8_spill]] }
0x1330   : > { %s6063_s7 = sld [smem:[#allocation18_spill]] }
0x1331   : > { %s6064_s28 = sld [smem:[#allocation11_spill]]  ;;  %38 = sbr.rel (!%p36_p8) target bundleno = 28 (0x1c), region = 230 }
0x1332   : > { %s6065_s8 = sld [smem:[#allocation12_spill]] }
0x1333   : > { %s6066_s4 = sld [smem:[#allocation14_spill]] }
0x1334   : > { %s6067_s29 = sld [smem:[#allocation16_spill]] }
0x1336   :  { %3852 = vsyncpa [#allocation4], 1 }
0x1337   :  { %3854 = vsyncpa [#allocation4 + $0x1], 1 }

</bundles_post_ra>
